<compile_context>
chip_gen: v7x
topology: tpu7x:2x2x1
jax: 0.10.0
libtpu: 0.0.40
codegen_flags: <defaults>
</compile_context>

<pallas_src>
import functools

import jax
import jax.numpy as jnp
from jax.experimental import pallas as pl
from jax.experimental.pallas import tpu as pltpu

KSIZE = 5
STRIDE = 2
LANE = 128      # all channel*width (lane) dims are padded to multiples of this
B_TILE = 16     # images per grid step (bf16 sublane tile; fills MXU rows)


def conv_out_size(size, k=KSIZE, stride=STRIDE):
    return (size - (k - 1) - 1) // stride + 1


def _round_up(x, m):
    return (x + m - 1) // m * m


# ----------------------------------------------------------------------------
# Fused whole-network kernel: one grid step == B_TILE images.
# ----------------------------------------------------------------------------
def _conv_bn_relu(a, m_ref, s_ref):
    """(IH, B, Kin) bf16 -> (OH, B, Kout) bf16; conv5x5/s2 + folded BN + ReLU.

    m_ref[kh] is the (Kin, Kout) matrix that folds the kernel-column loop, the
    input-channel contraction, the stride-2 column subsampling and the BN
    scale; only stride-2 ROW selection remains, done with outer-dim slices.
    """
    ih, b, kin = a.shape
    oh = conv_out_size(ih)
    kout = m_ref.shape[2]
    if ih % 2:  # pad height to even so the even/odd split below is exact
        a = jnp.concatenate([a, jnp.zeros((1, b, kin), a.dtype)], axis=0)
        ih += 1
    # Even/odd row planes: leading-dim-only reshape + index (no strided slices,
    # no gathers, no selection matmuls).
    half = a.reshape(ih // 2, 2, b, kin)
    parity = (half[:, 0], half[:, 1])
    acc = jnp.zeros((oh * b, kout), jnp.float32)
    for kh in range(KSIZE):
        rows = parity[kh % 2][kh // 2:kh // 2 + oh]          # (OH, B, Kin)
        acc = acc + jnp.dot(rows.reshape(oh * b, kin), m_ref[kh],
                            preferred_element_type=jnp.float32)
    act = jnp.maximum(acc + s_ref[...], 0.0).astype(jnp.bfloat16)
    return act.reshape(oh, b, kout)


def _dqn_fused_kernel(x_ref, m1_ref, s1_ref, m2_ref, s2_ref, m3_ref, s3_ref,
                      wh_ref, bh_ref, o_ref):
    a = x_ref[0]                                             # (H, B, K0) bf16
    a = _conv_bn_relu(a, m1_ref, s1_ref)
    a = _conv_bn_relu(a, m2_ref, s2_ref)
    a = _conv_bn_relu(a, m3_ref, s3_ref)
    # Head: concatenate the OH3 spatial rows along lanes -> one (B, OH3*K3)
    # operand, then a single MXU dot against the pre-permuted head weight.
    oh3 = a.shape[0]
    feat = a[0] if oh3 == 1 else jnp.concatenate(
        [a[h] for h in range(oh3)], axis=-1)
    q = jnp.dot(feat, wh_ref[...], preferred_element_type=jnp.float32)
    o_ref[0] = q + bh_ref[...]                               # (B, npad), lane-dense


# ----------------------------------------------------------------------------
# One-time wrapper-side weight preparation.
# ----------------------------------------------------------------------------
def _fold_bn(conv_w, conv_b, bn, eps=1e-5):
    gamma, beta, mean, var = bn
    scale = gamma / jnp.sqrt(var + eps)                      # (Cout,)
    wf = jnp.transpose(conv_w, (2, 3, 1, 0)) * scale         # (KH,KW,Cin,Cout)
    shift = (conv_b - mean) * scale + beta                   # (Cout,)
    return wf, shift


def _expand_conv_layer(conv_w, conv_b, bn, iw):
    """Per-kh matrices M_kh folding kw/cin contraction, stride-2 columns and BN."""
    wf, shift = _fold_bn(conv_w, conv_b, bn)
    kh_n, kw_n, cin, cout = wf.shape
    ow = conv_out_size(iw)
    kin, kout = iw * cin, ow * cout
    kin_p, kout_p = _round_up(kin, LANE), _round_up(kout, LANE)
    iw_idx = jnp.arange(iw)[None, :, None]
    ow_idx = jnp.arange(ow)[None, None, :]
    kw_idx = jnp.arange(kw_n)[:, None, None]
    sel = (iw_idx == STRIDE * ow_idx + kw_idx).astype(wf.dtype)   # (KW, IW, OW)
    m = jnp.einsum('kio,hkcd->hicod', sel, wf).reshape(kh_n, kin, kout)
    m = jnp.pad(m, ((0, 0), (0, kin_p - kin), (0, kout_p - kout)))
    shift_row = jnp.pad(jnp.tile(shift, ow), (0, kout_p - kout)).reshape(1, kout_p)
    return m.astype(jnp.bfloat16), shift_row.astype(jnp.float32), ow


def _prep_head(head_w, head_b, oh3, ow3, cout, k3_pad, npad):
    """Permute PyTorch (c,h,w)-flattened head weight to (h, (w,c)) lane order."""
    outputs = head_w.shape[0]
    w = head_w.reshape(outputs, cout, oh3, ow3)
    w = jnp.transpose(w, (2, 3, 1, 0)).reshape(oh3, ow3 * cout, outputs)
    w = jnp.pad(w, ((0, 0), (0, k3_pad - ow3 * cout), (0, npad - outputs)))
    w = w.reshape(oh3 * k3_pad, npad).astype(jnp.bfloat16)
    b = jnp.pad(head_b, (0, npad - outputs)).reshape(1, npad).astype(jnp.float32)
    return w, b


def prepare_dqn(params, h, w):
    """One-time prep: fold BN, expand convs to per-kh matrices, permute head."""
    m1, s1, ow1 = _expand_conv_layer(params["conv1_w"], params["conv1_b"],
                                     params["bn1"], w)
    m2, s2, ow2 = _expand_conv_layer(params["conv2_w"], params["conv2_b"],
                                     params["bn2"], ow1)
    m3, s3, ow3 = _expand_conv_layer(params["conv3_w"], params["conv3_b"],
                                     params["bn3"], ow2)
    oh3 = conv_out_size(conv_out_size(conv_out_size(h)))
    cout3 = params["conv3_w"].shape[0]
    outputs = params["head_w"].shape[0]
    npad = _round_up(outputs, LANE)
    wh, bh = _prep_head(params["head_w"], params["head_b"], oh3, ow3, cout3,
                        m3.shape[2], npad)
    return dict(m1=m1, s1=s1, m2=m2, s2=s2, m3=m3, s3=s3, wh=wh, bh=bh)


# ----------------------------------------------------------------------------
# Forward pass (weights already prepared).
# ----------------------------------------------------------------------------
def dqn_apply(prepped, x_nchw, *, outputs, b_tile=B_TILE):
    """x_nchw: (N, 3, H, W) float32 -> (N, outputs) float32."""
    assert b_tile % 8 == 0
    n, cin, h, w = x_nchw.shape
    m1, s1 = prepped["m1"], prepped["s1"]
    m2, s2 = prepped["m2"], prepped["s2"]
    m3, s3 = prepped["m3"], prepped["s3"]
    wh, bh = prepped["wh"], prepped["bh"]
    k0 = m1.shape[1]
    npad = bh.shape[1]
    g = -(-n // b_tile)
    n_pad = g * b_tile

    # NCHW -> (grid, H, B_TILE, W*Cin) bf16, lanes zero-padded to k0.
    x = jnp.transpose(x_nchw, (0, 2, 3, 1)).reshape(n, h, w * cin)
    x = jnp.pad(x, ((0, n_pad - n), (0, 0), (0, k0 - w * cin)))
    x = x.reshape(g, b_tile, h, k0).transpose(0, 2, 1, 3).astype(jnp.bfloat16)

    oh1 = conv_out_size(h)
    oh2 = conv_out_size(oh1)
    oh3 = conv_out_size(oh2)
    flops = 2 * g * b_tile * KSIZE * (
        oh1 * m1.shape[1] * m1.shape[2]
        + oh2 * m2.shape[1] * m2.shape[2]
        + oh3 * m3.shape[1] * m3.shape[2]
    ) + 2 * g * b_tile * wh.shape[0] * wh.shape[1]
    bytes_accessed = (
        x.size * x.dtype.itemsize
        + sum(a.size * a.dtype.itemsize for a in (m1, s1, m2, s2, m3, s3, wh, bh))
        + g * b_tile * npad * 4)

    out = pl.pallas_call(
        _dqn_fused_kernel,
        out_shape=jax.ShapeDtypeStruct((g, b_tile, npad), jnp.float32),
        grid=(g,),
        in_specs=[
            pl.BlockSpec((1, h, b_tile, k0), lambda i: (i, 0, 0, 0)),
            pl.BlockSpec(m1.shape, lambda i: (0, 0, 0)),
            pl.BlockSpec(s1.shape, lambda i: (0, 0)),
            pl.BlockSpec(m2.shape, lambda i: (0, 0, 0)),
            pl.BlockSpec(s2.shape, lambda i: (0, 0)),
            pl.BlockSpec(m3.shape, lambda i: (0, 0, 0)),
            pl.BlockSpec(s3.shape, lambda i: (0, 0)),
            pl.BlockSpec(wh.shape, lambda i: (0, 0)),
            pl.BlockSpec(bh.shape, lambda i: (0, 0)),
        ],
        out_specs=pl.BlockSpec((1, b_tile, npad), lambda i: (i, 0, 0)),
        compiler_params=pltpu.CompilerParams(
            dimension_semantics=("parallel",)),
        cost_estimate=pl.CostEstimate(
            flops=flops, transcendentals=0, bytes_accessed=bytes_accessed),
    )(x, m1, s1, m2, s2, m3, s3, wh, bh)

    return out.reshape(n_pad, npad)[:n, :outputs]


def dqn_forward(params, x_nchw, b_tile=B_TILE):
    """Convenience wrapper: prepare + apply in one call."""
    _, _, h, w = x_nchw.shape
    outputs = params["head_w"].shape[0]
    prepped = prepare_dqn(params, h, w)
    return dqn_apply(prepped, x_nchw, outputs=outputs, b_tile=b_tile)


# ----------------------------------------------------------------------------
# Parameter initialization (deterministic; PyTorch-default-style uniform).
# ----------------------------------------------------------------------------
def _init_conv(key, cin, cout, k):
    fan_in = cin * k * k
    bound = 1.0 / jnp.sqrt(fan_in)
    kw_, kb_ = jax.random.split(key)
    w = jax.random.uniform(kw_, (cout, cin, k, k), jnp.float32, -bound, bound)
    b = jax.random.uniform(kb_, (cout,), jnp.float32, -bound, bound)
    return w, b


def _init_linear(key, fin, fout):
    bound = 1.0 / jnp.sqrt(fin)
    kw_, kb_ = jax.random.split(key)
    w = jax.random.uniform(kw_, (fout, fin), jnp.float32, -bound, bound)
    b = jax.random.uniform(kb_, (fout,), jnp.float32, -bound, bound)
    return w, b


def _init_bn(key, c):
    k1, k2, k3 = jax.random.split(key, 3)
    gamma = 1.0 + 0.1 * jax.random.normal(k1, (c,), jnp.float32)
    beta = 0.1 * jax.random.normal(k2, (c,), jnp.float32)
    mean = 0.1 * jax.random.normal(k3, (c,), jnp.float32)
    var = jnp.ones((c,), jnp.float32)
    return gamma, beta, mean, var


def init_dqn_params(key, h, w, outputs):
    keys = jax.random.split(key, 7)
    p = {}
    p["conv1_w"], p["conv1_b"] = _init_conv(keys[0], 3, 16, 5)
    p["bn1"] = _init_bn(keys[1], 16)
    p["conv2_w"], p["conv2_b"] = _init_conv(keys[2], 16, 32, 5)
    p["bn2"] = _init_bn(keys[3], 32)
    p["conv3_w"], p["conv3_b"] = _init_conv(keys[4], 32, 32, 5)
    p["bn3"] = _init_bn(keys[5], 32)
    convw = conv_out_size(conv_out_size(conv_out_size(w)))
    convh = conv_out_size(conv_out_size(conv_out_size(h)))
    p["head_w"], p["head_b"] = _init_linear(keys[6], convw * convh * 32, outputs)
    return p


# ----------------------------------------------------------------------------
# Pure-JAX float32 reference (for correctness check only).
# ----------------------------------------------------------------------------
def _dqn_reference(params, x, eps=1e-5):
    def conv_bn_relu(x, wkey, bkey, bn):
        y = jax.lax.conv_general_dilated(
            x, params[wkey], window_strides=(STRIDE, STRIDE), padding="VALID",
            dimension_numbers=("NCHW", "OIHW", "NCHW"))
        y = y + params[bkey][None, :, None, None]
        gamma, beta, mean, var = bn
        y = (y - mean[None, :, None, None]) * (
            gamma / jnp.sqrt(var + eps))[None, :, None, None]
        y = y + beta[None, :, None, None]
        return jnp.maximum(y, 0.0)

    x = conv_bn_relu(x, "conv1_w", "conv1_b", params["bn1"])
    x = conv_bn_relu(x, "conv2_w", "conv2_b", params["bn2"])
    x = conv_bn_relu(x, "conv3_w", "conv3_b", params["bn3"])
    x = x.reshape(x.shape[0], -1)
    return x @ params["head_w"].T + params["head_b"]


if __name__ == "__main__":
    key = jax.random.PRNGKey(0)
    k_param, k_x = jax.random.split(key)

    batch, h, w, n_actions = 2, 40, 40, 4
    params = init_dqn_params(k_param, h, w, n_actions)
    x = jax.random.normal(k_x, (batch, 3, h, w), jnp.float32)

    # One-time weight preparation, hoisted out of the forward pass.
    prepped = prepare_dqn(params, h, w)
    prepped = jax.tree_util.tree_map(jax.block_until_ready, prepped)

    apply_fn = jax.jit(dqn_apply, static_argnames=("outputs", "b_tile"))
    q_values = apply_fn(prepped, x, outputs=n_actions, b_tile=B_TILE)
    jax.block_until_ready(q_values)

    assert q_values.shape == (batch, n_actions), q_values.shape
    assert q_values.dtype == jnp.float32
    assert bool(jnp.all(jnp.isfinite(q_values)))

    # Numerical check vs. float32 reference (bf16 MXU tolerance).
    q_ref = _dqn_reference(params, x)
    assert bool(jnp.allclose(q_values, q_ref, rtol=5e-2, atol=5e-2)), (
        float(jnp.max(jnp.abs(q_values - q_ref))))

    print("KERNEL_OK")
</pallas_src>

<mosaic_0001>
module attributes {stable_mosaic.version = 11 : i64} {
  func.func @_dqn_fused_kernel(%arg0: i32, %arg1: memref<1x40x16x128xbf16, #tpu.memory_space<vmem>>, %arg2: memref<5x128x384xbf16, #tpu.memory_space<vmem>>, %arg3: memref<1x384xf32, #tpu.memory_space<vmem>>, %arg4: memref<5x384x256xbf16, #tpu.memory_space<vmem>>, %arg5: memref<1x256xf32, #tpu.memory_space<vmem>>, %arg6: memref<5x256x128xbf16, #tpu.memory_space<vmem>>, %arg7: memref<1x128xf32, #tpu.memory_space<vmem>>, %arg8: memref<256x128xbf16, #tpu.memory_space<vmem>>, %arg9: memref<1x128xf32, #tpu.memory_space<vmem>>, %arg10: memref<1x16x128xf32, #tpu.memory_space<vmem>>) attributes {dimension_semantics = [#tpu.dimension_semantics<parallel>], iteration_bounds = array<i64: 1>, scalar_prefetch = 0 : i64, scratch_operands = 0 : i64, tpu.core_type = #tpu.core_type<tc>, window_params = [{transform_indices = @transform_0, window_bounds = array<i64: 1, 40, 16, 128>}, {pipeline_mode = #tpu.pipeline_mode<synchronous>, transform_indices = @transform_1, window_bounds = array<i64: 5, 128, 384>}, {pipeline_mode = #tpu.pipeline_mode<synchronous>, transform_indices = @transform_2, window_bounds = array<i64: 1, 384>}, {pipeline_mode = #tpu.pipeline_mode<synchronous>, transform_indices = @transform_3, window_bounds = array<i64: 5, 384, 256>}, {pipeline_mode = #tpu.pipeline_mode<synchronous>, transform_indices = @transform_4, window_bounds = array<i64: 1, 256>}, {pipeline_mode = #tpu.pipeline_mode<synchronous>, transform_indices = @transform_5, window_bounds = array<i64: 5, 256, 128>}, {pipeline_mode = #tpu.pipeline_mode<synchronous>, transform_indices = @transform_6, window_bounds = array<i64: 1, 128>}, {pipeline_mode = #tpu.pipeline_mode<synchronous>, transform_indices = @transform_7, window_bounds = array<i64: 256, 128>}, {pipeline_mode = #tpu.pipeline_mode<synchronous>, transform_indices = @transform_8, window_bounds = array<i64: 1, 128>}, {transform_indices = @transform_9, window_bounds = array<i64: 1, 16, 128>}]} {
    %c0 = arith.constant 0 : index
    %c0_0 = arith.constant 0 : index
    %c0_1 = arith.constant 0 : index
    %c0_2 = arith.constant 0 : index
    %0 = vector.load %arg1[%c0, %c0_0, %c0_1, %c0_2] : memref<1x40x16x128xbf16, #tpu.memory_space<vmem>>, vector<1x40x16x128xbf16>
    %1 = vector.shape_cast %0 : vector<1x40x16x128xbf16> to vector<40x16x128xbf16>
    %2 = vector.shape_cast %1 : vector<40x16x128xbf16> to vector<20x2x16x128xbf16>
    %3 = vector.extract_strided_slice %2 {offsets = [0, 0, 0, 0], sizes = [20, 1, 16, 128], strides = [1, 1, 1, 1]} : vector<20x2x16x128xbf16> to vector<20x1x16x128xbf16>
    %4 = vector.shape_cast %3 : vector<20x1x16x128xbf16> to vector<20x16x128xbf16>
    %5 = vector.extract_strided_slice %2 {offsets = [0, 1, 0, 0], sizes = [20, 1, 16, 128], strides = [1, 1, 1, 1]} : vector<20x2x16x128xbf16> to vector<20x1x16x128xbf16>
    %6 = vector.shape_cast %5 : vector<20x1x16x128xbf16> to vector<20x16x128xbf16>
    %cst = arith.constant 0.000000e+00 : f32
    %7 = vector.broadcast %cst : f32 to vector<288x384xf32>
    %8 = vector.extract_strided_slice %4 {offsets = [0, 0, 0], sizes = [18, 16, 128], strides = [1, 1, 1]} : vector<20x16x128xbf16> to vector<18x16x128xbf16>
    %9 = vector.shape_cast %8 : vector<18x16x128xbf16> to vector<288x128xbf16>
    %c0_3 = arith.constant 0 : index
    %c0_4 = arith.constant 0 : index
    %c0_5 = arith.constant 0 : index
    %10 = vector.load %arg2[%c0_3, %c0_4, %c0_5] : memref<5x128x384xbf16, #tpu.memory_space<vmem>>, vector<1x128x384xbf16>
    %11 = vector.shape_cast %10 : vector<1x128x384xbf16> to vector<128x384xbf16>
    %cst_6 = arith.constant dense<0.000000e+00> : vector<288x384xf32>
    %12 = tpu.matmul %9, %11, %cst_6 {dimension_numbers = #tpu.dot_dimension_numbers<[1], [0], [0], [1], [0, 0, 1, 1], [], []>} : vector<288x128xbf16>, vector<128x384xbf16>, vector<288x384xf32> -> vector<288x384xf32>
    %13 = arith.addf %7, %12 : vector<288x384xf32>
    %14 = vector.extract_strided_slice %6 {offsets = [0, 0, 0], sizes = [18, 16, 128], strides = [1, 1, 1]} : vector<20x16x128xbf16> to vector<18x16x128xbf16>
    %15 = vector.shape_cast %14 : vector<18x16x128xbf16> to vector<288x128xbf16>
    %c1 = arith.constant 1 : index
    %c0_7 = arith.constant 0 : index
    %c0_8 = arith.constant 0 : index
    %16 = vector.load %arg2[%c1, %c0_7, %c0_8] : memref<5x128x384xbf16, #tpu.memory_space<vmem>>, vector<1x128x384xbf16>
    %17 = vector.shape_cast %16 : vector<1x128x384xbf16> to vector<128x384xbf16>
    %cst_9 = arith.constant dense<0.000000e+00> : vector<288x384xf32>
    %18 = tpu.matmul %15, %17, %cst_9 {dimension_numbers = #tpu.dot_dimension_numbers<[1], [0], [0], [1], [0, 0, 1, 1], [], []>} : vector<288x128xbf16>, vector<128x384xbf16>, vector<288x384xf32> -> vector<288x384xf32>
    %19 = arith.addf %13, %18 : vector<288x384xf32>
    %20 = vector.extract_strided_slice %4 {offsets = [1, 0, 0], sizes = [18, 16, 128], strides = [1, 1, 1]} : vector<20x16x128xbf16> to vector<18x16x128xbf16>
    %21 = vector.shape_cast %20 : vector<18x16x128xbf16> to vector<288x128xbf16>
    %c2 = arith.constant 2 : index
    %c0_10 = arith.constant 0 : index
    %c0_11 = arith.constant 0 : index
    %22 = vector.load %arg2[%c2, %c0_10, %c0_11] : memref<5x128x384xbf16, #tpu.memory_space<vmem>>, vector<1x128x384xbf16>
    %23 = vector.shape_cast %22 : vector<1x128x384xbf16> to vector<128x384xbf16>
    %cst_12 = arith.constant dense<0.000000e+00> : vector<288x384xf32>
    %24 = tpu.matmul %21, %23, %cst_12 {dimension_numbers = #tpu.dot_dimension_numbers<[1], [0], [0], [1], [0, 0, 1, 1], [], []>} : vector<288x128xbf16>, vector<128x384xbf16>, vector<288x384xf32> -> vector<288x384xf32>
    %25 = arith.addf %19, %24 : vector<288x384xf32>
    %26 = vector.extract_strided_slice %6 {offsets = [1, 0, 0], sizes = [18, 16, 128], strides = [1, 1, 1]} : vector<20x16x128xbf16> to vector<18x16x128xbf16>
    %27 = vector.shape_cast %26 : vector<18x16x128xbf16> to vector<288x128xbf16>
    %c3 = arith.constant 3 : index
    %c0_13 = arith.constant 0 : index
    %c0_14 = arith.constant 0 : index
    %28 = vector.load %arg2[%c3, %c0_13, %c0_14] : memref<5x128x384xbf16, #tpu.memory_space<vmem>>, vector<1x128x384xbf16>
    %29 = vector.shape_cast %28 : vector<1x128x384xbf16> to vector<128x384xbf16>
    %cst_15 = arith.constant dense<0.000000e+00> : vector<288x384xf32>
    %30 = tpu.matmul %27, %29, %cst_15 {dimension_numbers = #tpu.dot_dimension_numbers<[1], [0], [0], [1], [0, 0, 1, 1], [], []>} : vector<288x128xbf16>, vector<128x384xbf16>, vector<288x384xf32> -> vector<288x384xf32>
    %31 = arith.addf %25, %30 : vector<288x384xf32>
    %32 = vector.extract_strided_slice %4 {offsets = [2, 0, 0], sizes = [18, 16, 128], strides = [1, 1, 1]} : vector<20x16x128xbf16> to vector<18x16x128xbf16>
    %33 = vector.shape_cast %32 : vector<18x16x128xbf16> to vector<288x128xbf16>
    %c4 = arith.constant 4 : index
    %c0_16 = arith.constant 0 : index
    %c0_17 = arith.constant 0 : index
    %34 = vector.load %arg2[%c4, %c0_16, %c0_17] : memref<5x128x384xbf16, #tpu.memory_space<vmem>>, vector<1x128x384xbf16>
    %35 = vector.shape_cast %34 : vector<1x128x384xbf16> to vector<128x384xbf16>
    %cst_18 = arith.constant dense<0.000000e+00> : vector<288x384xf32>
    %36 = tpu.matmul %33, %35, %cst_18 {dimension_numbers = #tpu.dot_dimension_numbers<[1], [0], [0], [1], [0, 0, 1, 1], [], []>} : vector<288x128xbf16>, vector<128x384xbf16>, vector<288x384xf32> -> vector<288x384xf32>
    %37 = arith.addf %31, %36 : vector<288x384xf32>
    %c0_19 = arith.constant 0 : index
    %c0_20 = arith.constant 0 : index
    %38 = vector.load %arg3[%c0_19, %c0_20] : memref<1x384xf32, #tpu.memory_space<vmem>>, vector<1x384xf32>
    %39 = vector.broadcast %38 : vector<1x384xf32> to vector<288x384xf32>
    %40 = arith.addf %37, %39 : vector<288x384xf32>
    %cst_21 = arith.constant 0.000000e+00 : f32
    %41 = vector.broadcast %cst_21 : f32 to vector<288x384xf32>
    %42 = arith.maximumf %40, %41 : vector<288x384xf32>
    %43 = arith.truncf %42 : vector<288x384xf32> to vector<288x384xbf16>
    %44 = vector.shape_cast %43 : vector<288x384xbf16> to vector<18x16x384xbf16>
    %45 = vector.shape_cast %44 : vector<18x16x384xbf16> to vector<9x2x16x384xbf16>
    %46 = vector.extract_strided_slice %45 {offsets = [0, 0, 0, 0], sizes = [9, 1, 16, 384], strides = [1, 1, 1, 1]} : vector<9x2x16x384xbf16> to vector<9x1x16x384xbf16>
    %47 = vector.shape_cast %46 : vector<9x1x16x384xbf16> to vector<9x16x384xbf16>
    %48 = vector.extract_strided_slice %45 {offsets = [0, 1, 0, 0], sizes = [9, 1, 16, 384], strides = [1, 1, 1, 1]} : vector<9x2x16x384xbf16> to vector<9x1x16x384xbf16>
    %49 = vector.shape_cast %48 : vector<9x1x16x384xbf16> to vector<9x16x384xbf16>
    %cst_22 = arith.constant 0.000000e+00 : f32
    %50 = vector.broadcast %cst_22 : f32 to vector<112x256xf32>
    %51 = vector.extract_strided_slice %47 {offsets = [0, 0, 0], sizes = [7, 16, 384], strides = [1, 1, 1]} : vector<9x16x384xbf16> to vector<7x16x384xbf16>
    %52 = vector.shape_cast %51 : vector<7x16x384xbf16> to vector<112x384xbf16>
    %c0_23 = arith.constant 0 : index
    %c0_24 = arith.constant 0 : index
    %c0_25 = arith.constant 0 : index
    %53 = vector.load %arg4[%c0_23, %c0_24, %c0_25] : memref<5x384x256xbf16, #tpu.memory_space<vmem>>, vector<1x384x256xbf16>
    %54 = vector.shape_cast %53 : vector<1x384x256xbf16> to vector<384x256xbf16>
    %cst_26 = arith.constant dense<0.000000e+00> : vector<112x256xf32>
    %55 = tpu.matmul %52, %54, %cst_26 {dimension_numbers = #tpu.dot_dimension_numbers<[1], [0], [0], [1], [0, 0, 1, 1], [], []>} : vector<112x384xbf16>, vector<384x256xbf16>, vector<112x256xf32> -> vector<112x256xf32>
    %56 = arith.addf %50, %55 : vector<112x256xf32>
    %57 = vector.extract_strided_slice %49 {offsets = [0, 0, 0], sizes = [7, 16, 384], strides = [1, 1, 1]} : vector<9x16x384xbf16> to vector<7x16x384xbf16>
    %58 = vector.shape_cast %57 : vector<7x16x384xbf16> to vector<112x384xbf16>
    %c1_27 = arith.constant 1 : index
    %c0_28 = arith.constant 0 : index
    %c0_29 = arith.constant 0 : index
    %59 = vector.load %arg4[%c1_27, %c0_28, %c0_29] : memref<5x384x256xbf16, #tpu.memory_space<vmem>>, vector<1x384x256xbf16>
    %60 = vector.shape_cast %59 : vector<1x384x256xbf16> to vector<384x256xbf16>
    %cst_30 = arith.constant dense<0.000000e+00> : vector<112x256xf32>
    %61 = tpu.matmul %58, %60, %cst_30 {dimension_numbers = #tpu.dot_dimension_numbers<[1], [0], [0], [1], [0, 0, 1, 1], [], []>} : vector<112x384xbf16>, vector<384x256xbf16>, vector<112x256xf32> -> vector<112x256xf32>
    %62 = arith.addf %56, %61 : vector<112x256xf32>
    %63 = vector.extract_strided_slice %47 {offsets = [1, 0, 0], sizes = [7, 16, 384], strides = [1, 1, 1]} : vector<9x16x384xbf16> to vector<7x16x384xbf16>
    %64 = vector.shape_cast %63 : vector<7x16x384xbf16> to vector<112x384xbf16>
    %c2_31 = arith.constant 2 : index
    %c0_32 = arith.constant 0 : index
    %c0_33 = arith.constant 0 : index
    %65 = vector.load %arg4[%c2_31, %c0_32, %c0_33] : memref<5x384x256xbf16, #tpu.memory_space<vmem>>, vector<1x384x256xbf16>
    %66 = vector.shape_cast %65 : vector<1x384x256xbf16> to vector<384x256xbf16>
    %cst_34 = arith.constant dense<0.000000e+00> : vector<112x256xf32>
    %67 = tpu.matmul %64, %66, %cst_34 {dimension_numbers = #tpu.dot_dimension_numbers<[1], [0], [0], [1], [0, 0, 1, 1], [], []>} : vector<112x384xbf16>, vector<384x256xbf16>, vector<112x256xf32> -> vector<112x256xf32>
    %68 = arith.addf %62, %67 : vector<112x256xf32>
    %69 = vector.extract_strided_slice %49 {offsets = [1, 0, 0], sizes = [7, 16, 384], strides = [1, 1, 1]} : vector<9x16x384xbf16> to vector<7x16x384xbf16>
    %70 = vector.shape_cast %69 : vector<7x16x384xbf16> to vector<112x384xbf16>
    %c3_35 = arith.constant 3 : index
    %c0_36 = arith.constant 0 : index
    %c0_37 = arith.constant 0 : index
    %71 = vector.load %arg4[%c3_35, %c0_36, %c0_37] : memref<5x384x256xbf16, #tpu.memory_space<vmem>>, vector<1x384x256xbf16>
    %72 = vector.shape_cast %71 : vector<1x384x256xbf16> to vector<384x256xbf16>
    %cst_38 = arith.constant dense<0.000000e+00> : vector<112x256xf32>
    %73 = tpu.matmul %70, %72, %cst_38 {dimension_numbers = #tpu.dot_dimension_numbers<[1], [0], [0], [1], [0, 0, 1, 1], [], []>} : vector<112x384xbf16>, vector<384x256xbf16>, vector<112x256xf32> -> vector<112x256xf32>
    %74 = arith.addf %68, %73 : vector<112x256xf32>
    %75 = vector.extract_strided_slice %47 {offsets = [2, 0, 0], sizes = [7, 16, 384], strides = [1, 1, 1]} : vector<9x16x384xbf16> to vector<7x16x384xbf16>
    %76 = vector.shape_cast %75 : vector<7x16x384xbf16> to vector<112x384xbf16>
    %c4_39 = arith.constant 4 : index
    %c0_40 = arith.constant 0 : index
    %c0_41 = arith.constant 0 : index
    %77 = vector.load %arg4[%c4_39, %c0_40, %c0_41] : memref<5x384x256xbf16, #tpu.memory_space<vmem>>, vector<1x384x256xbf16>
    %78 = vector.shape_cast %77 : vector<1x384x256xbf16> to vector<384x256xbf16>
    %cst_42 = arith.constant dense<0.000000e+00> : vector<112x256xf32>
    %79 = tpu.matmul %76, %78, %cst_42 {dimension_numbers = #tpu.dot_dimension_numbers<[1], [0], [0], [1], [0, 0, 1, 1], [], []>} : vector<112x384xbf16>, vector<384x256xbf16>, vector<112x256xf32> -> vector<112x256xf32>
    %80 = arith.addf %74, %79 : vector<112x256xf32>
    %c0_43 = arith.constant 0 : index
    %c0_44 = arith.constant 0 : index
    %81 = vector.load %arg5[%c0_43, %c0_44] : memref<1x256xf32, #tpu.memory_space<vmem>>, vector<1x256xf32>
    %82 = vector.broadcast %81 : vector<1x256xf32> to vector<112x256xf32>
    %83 = arith.addf %80, %82 : vector<112x256xf32>
    %cst_45 = arith.constant 0.000000e+00 : f32
    %84 = vector.broadcast %cst_45 : f32 to vector<112x256xf32>
    %85 = arith.maximumf %83, %84 : vector<112x256xf32>
    %86 = arith.truncf %85 : vector<112x256xf32> to vector<112x256xbf16>
    %87 = vector.shape_cast %86 : vector<112x256xbf16> to vector<7x16x256xbf16>
    %cst_46 = arith.constant 0.000000e+00 : bf16
    %88 = vector.broadcast %cst_46 : bf16 to vector<1x16x256xbf16>
    %89 = tpu.concatenate %87, %88 in 0 : vector<7x16x256xbf16>, vector<1x16x256xbf16> -> vector<8x16x256xbf16>
    %90 = vector.shape_cast %89 : vector<8x16x256xbf16> to vector<4x2x16x256xbf16>
    %91 = vector.extract_strided_slice %90 {offsets = [0, 0, 0, 0], sizes = [4, 1, 16, 256], strides = [1, 1, 1, 1]} : vector<4x2x16x256xbf16> to vector<4x1x16x256xbf16>
    %92 = vector.shape_cast %91 : vector<4x1x16x256xbf16> to vector<4x16x256xbf16>
    %93 = vector.extract_strided_slice %90 {offsets = [0, 1, 0, 0], sizes = [4, 1, 16, 256], strides = [1, 1, 1, 1]} : vector<4x2x16x256xbf16> to vector<4x1x16x256xbf16>
    %94 = vector.shape_cast %93 : vector<4x1x16x256xbf16> to vector<4x16x256xbf16>
    %cst_47 = arith.constant 0.000000e+00 : f32
    %95 = vector.broadcast %cst_47 : f32 to vector<32x128xf32>
    %96 = vector.extract_strided_slice %92 {offsets = [0, 0, 0], sizes = [2, 16, 256], strides = [1, 1, 1]} : vector<4x16x256xbf16> to vector<2x16x256xbf16>
    %97 = vector.shape_cast %96 : vector<2x16x256xbf16> to vector<32x256xbf16>
    %c0_48 = arith.constant 0 : index
    %c0_49 = arith.constant 0 : index
    %c0_50 = arith.constant 0 : index
    %98 = vector.load %arg6[%c0_48, %c0_49, %c0_50] : memref<5x256x128xbf16, #tpu.memory_space<vmem>>, vector<1x256x128xbf16>
    %99 = vector.shape_cast %98 : vector<1x256x128xbf16> to vector<256x128xbf16>
    %cst_51 = arith.constant dense<0.000000e+00> : vector<32x128xf32>
    %100 = tpu.matmul %97, %99, %cst_51 {dimension_numbers = #tpu.dot_dimension_numbers<[1], [0], [0], [1], [0, 0, 1, 1], [], []>} : vector<32x256xbf16>, vector<256x128xbf16>, vector<32x128xf32> -> vector<32x128xf32>
    %101 = arith.addf %95, %100 : vector<32x128xf32>
    %102 = vector.extract_strided_slice %94 {offsets = [0, 0, 0], sizes = [2, 16, 256], strides = [1, 1, 1]} : vector<4x16x256xbf16> to vector<2x16x256xbf16>
    %103 = vector.shape_cast %102 : vector<2x16x256xbf16> to vector<32x256xbf16>
    %c1_52 = arith.constant 1 : index
    %c0_53 = arith.constant 0 : index
    %c0_54 = arith.constant 0 : index
    %104 = vector.load %arg6[%c1_52, %c0_53, %c0_54] : memref<5x256x128xbf16, #tpu.memory_space<vmem>>, vector<1x256x128xbf16>
    %105 = vector.shape_cast %104 : vector<1x256x128xbf16> to vector<256x128xbf16>
    %cst_55 = arith.constant dense<0.000000e+00> : vector<32x128xf32>
    %106 = tpu.matmul %103, %105, %cst_55 {dimension_numbers = #tpu.dot_dimension_numbers<[1], [0], [0], [1], [0, 0, 1, 1], [], []>} : vector<32x256xbf16>, vector<256x128xbf16>, vector<32x128xf32> -> vector<32x128xf32>
    %107 = arith.addf %101, %106 : vector<32x128xf32>
    %108 = vector.extract_strided_slice %92 {offsets = [1, 0, 0], sizes = [2, 16, 256], strides = [1, 1, 1]} : vector<4x16x256xbf16> to vector<2x16x256xbf16>
    %109 = vector.shape_cast %108 : vector<2x16x256xbf16> to vector<32x256xbf16>
    %c2_56 = arith.constant 2 : index
    %c0_57 = arith.constant 0 : index
    %c0_58 = arith.constant 0 : index
    %110 = vector.load %arg6[%c2_56, %c0_57, %c0_58] : memref<5x256x128xbf16, #tpu.memory_space<vmem>>, vector<1x256x128xbf16>
    %111 = vector.shape_cast %110 : vector<1x256x128xbf16> to vector<256x128xbf16>
    %cst_59 = arith.constant dense<0.000000e+00> : vector<32x128xf32>
    %112 = tpu.matmul %109, %111, %cst_59 {dimension_numbers = #tpu.dot_dimension_numbers<[1], [0], [0], [1], [0, 0, 1, 1], [], []>} : vector<32x256xbf16>, vector<256x128xbf16>, vector<32x128xf32> -> vector<32x128xf32>
    %113 = arith.addf %107, %112 : vector<32x128xf32>
    %114 = vector.extract_strided_slice %94 {offsets = [1, 0, 0], sizes = [2, 16, 256], strides = [1, 1, 1]} : vector<4x16x256xbf16> to vector<2x16x256xbf16>
    %115 = vector.shape_cast %114 : vector<2x16x256xbf16> to vector<32x256xbf16>
    %c3_60 = arith.constant 3 : index
    %c0_61 = arith.constant 0 : index
    %c0_62 = arith.constant 0 : index
    %116 = vector.load %arg6[%c3_60, %c0_61, %c0_62] : memref<5x256x128xbf16, #tpu.memory_space<vmem>>, vector<1x256x128xbf16>
    %117 = vector.shape_cast %116 : vector<1x256x128xbf16> to vector<256x128xbf16>
    %cst_63 = arith.constant dense<0.000000e+00> : vector<32x128xf32>
    %118 = tpu.matmul %115, %117, %cst_63 {dimension_numbers = #tpu.dot_dimension_numbers<[1], [0], [0], [1], [0, 0, 1, 1], [], []>} : vector<32x256xbf16>, vector<256x128xbf16>, vector<32x128xf32> -> vector<32x128xf32>
    %119 = arith.addf %113, %118 : vector<32x128xf32>
    %120 = vector.extract_strided_slice %92 {offsets = [2, 0, 0], sizes = [2, 16, 256], strides = [1, 1, 1]} : vector<4x16x256xbf16> to vector<2x16x256xbf16>
    %121 = vector.shape_cast %120 : vector<2x16x256xbf16> to vector<32x256xbf16>
    %c4_64 = arith.constant 4 : index
    %c0_65 = arith.constant 0 : index
    %c0_66 = arith.constant 0 : index
    %122 = vector.load %arg6[%c4_64, %c0_65, %c0_66] : memref<5x256x128xbf16, #tpu.memory_space<vmem>>, vector<1x256x128xbf16>
    %123 = vector.shape_cast %122 : vector<1x256x128xbf16> to vector<256x128xbf16>
    %cst_67 = arith.constant dense<0.000000e+00> : vector<32x128xf32>
    %124 = tpu.matmul %121, %123, %cst_67 {dimension_numbers = #tpu.dot_dimension_numbers<[1], [0], [0], [1], [0, 0, 1, 1], [], []>} : vector<32x256xbf16>, vector<256x128xbf16>, vector<32x128xf32> -> vector<32x128xf32>
    %125 = arith.addf %119, %124 : vector<32x128xf32>
    %c0_68 = arith.constant 0 : index
    %c0_69 = arith.constant 0 : index
    %126 = vector.load %arg7[%c0_68, %c0_69] : memref<1x128xf32, #tpu.memory_space<vmem>>, vector<1x128xf32>
    %127 = vector.broadcast %126 : vector<1x128xf32> to vector<32x128xf32>
    %128 = arith.addf %125, %127 : vector<32x128xf32>
    %cst_70 = arith.constant 0.000000e+00 : f32
    %129 = vector.broadcast %cst_70 : f32 to vector<32x128xf32>
    %130 = arith.maximumf %128, %129 : vector<32x128xf32>
    %131 = arith.truncf %130 : vector<32x128xf32> to vector<32x128xbf16>
    %132 = vector.shape_cast %131 : vector<32x128xbf16> to vector<2x16x128xbf16>
    %133 = vector.extract_strided_slice %132 {offsets = [0, 0, 0], sizes = [1, 16, 128], strides = [1, 1, 1]} : vector<2x16x128xbf16> to vector<1x16x128xbf16>
    %134 = vector.shape_cast %133 : vector<1x16x128xbf16> to vector<16x128xbf16>
    %135 = vector.extract_strided_slice %132 {offsets = [1, 0, 0], sizes = [1, 16, 128], strides = [1, 1, 1]} : vector<2x16x128xbf16> to vector<1x16x128xbf16>
    %136 = vector.shape_cast %135 : vector<1x16x128xbf16> to vector<16x128xbf16>
    %137 = tpu.concatenate %134, %136 in 1 : vector<16x128xbf16>, vector<16x128xbf16> -> vector<16x256xbf16>
    %c0_71 = arith.constant 0 : index
    %c0_72 = arith.constant 0 : index
    %138 = vector.load %arg8[%c0_71, %c0_72] : memref<256x128xbf16, #tpu.memory_space<vmem>>, vector<256x128xbf16>
    %cst_73 = arith.constant dense<0.000000e+00> : vector<16x128xf32>
    %139 = tpu.matmul %137, %138, %cst_73 {dimension_numbers = #tpu.dot_dimension_numbers<[1], [0], [0], [1], [0, 0, 1, 1], [], []>} : vector<16x256xbf16>, vector<256x128xbf16>, vector<16x128xf32> -> vector<16x128xf32>
    %c0_74 = arith.constant 0 : index
    %c0_75 = arith.constant 0 : index
    %140 = vector.load %arg9[%c0_74, %c0_75] : memref<1x128xf32, #tpu.memory_space<vmem>>, vector<1x128xf32>
    %141 = vector.broadcast %140 : vector<1x128xf32> to vector<16x128xf32>
    %142 = arith.addf %139, %141 : vector<16x128xf32>
    %c0_76 = arith.constant 0 : index
    %c0_77 = arith.constant 0 : index
    %c0_78 = arith.constant 0 : index
    %143 = vector.load %arg10[%c0_76, %c0_77, %c0_78] : memref<1x16x128xf32, #tpu.memory_space<vmem>>, vector<1x16x128xf32>
    %144 = vector.shape_cast %143 : vector<1x16x128xf32> to vector<16x128xf32>
    %145 = vector.shape_cast %142 : vector<16x128xf32> to vector<1x16x128xf32>
    tpu.vector_store %arg10[%c0_76, %c0_77, %c0_78], %145 {strides = array<i32>} : memref<1x16x128xf32, #tpu.memory_space<vmem>>, vector<1x16x128xf32>,
    return
  }
  func.func @transform_0(%arg0: i32) -> (i32, i32, i32, i32) {
    %c0_i32 = arith.constant 0 : i32
    %c0_i32_0 = arith.constant 0 : i32
    %c0_i32_1 = arith.constant 0 : i32
    %c0_i32_2 = arith.constant 0 : i32
    return %arg0, %c0_i32, %c0_i32_0, %c0_i32_1 : i32, i32, i32, i32
  }
  func.func @transform_1(%arg0: i32) -> (i32, i32, i32) {
    %c0_i32 = arith.constant 0 : i32
    %c0_i32_0 = arith.constant 0 : i32
    %c0_i32_1 = arith.constant 0 : i32
    %c0_i32_2 = arith.constant 0 : i32
    return %c0_i32, %c0_i32_0, %c0_i32_1 : i32, i32, i32
  }
  func.func @transform_2(%arg0: i32) -> (i32, i32) {
    %c0_i32 = arith.constant 0 : i32
    %c0_i32_0 = arith.constant 0 : i32
    %c0_i32_1 = arith.constant 0 : i32
    return %c0_i32, %c0_i32_0 : i32, i32
  }
  func.func @transform_3(%arg0: i32) -> (i32, i32, i32) {
    %c0_i32 = arith.constant 0 : i32
    %c0_i32_0 = arith.constant 0 : i32
    %c0_i32_1 = arith.constant 0 : i32
    %c0_i32_2 = arith.constant 0 : i32
    return %c0_i32, %c0_i32_0, %c0_i32_1 : i32, i32, i32
  }
  func.func @transform_4(%arg0: i32) -> (i32, i32) {
    %c0_i32 = arith.constant 0 : i32
    %c0_i32_0 = arith.constant 0 : i32
    %c0_i32_1 = arith.constant 0 : i32
    return %c0_i32, %c0_i32_0 : i32, i32
  }
  func.func @transform_5(%arg0: i32) -> (i32, i32, i32) {
    %c0_i32 = arith.constant 0 : i32
    %c0_i32_0 = arith.constant 0 : i32
    %c0_i32_1 = arith.constant 0 : i32
    %c0_i32_2 = arith.constant 0 : i32
    return %c0_i32, %c0_i32_0, %c0_i32_1 : i32, i32, i32
  }
  func.func @transform_6(%arg0: i32) -> (i32, i32) {
    %c0_i32 = arith.constant 0 : i32
    %c0_i32_0 = arith.constant 0 : i32
    %c0_i32_1 = arith.constant 0 : i32
    return %c0_i32, %c0_i32_0 : i32, i32
  }
  func.func @transform_7(%arg0: i32) -> (i32, i32) {
    %c0_i32 = arith.constant 0 : i32
    %c0_i32_0 = arith.constant 0 : i32
    %c0_i32_1 = arith.constant 0 : i32
    return %c0_i32, %c0_i32_0 : i32, i32
  }
  func.func @transform_8(%arg0: i32) -> (i32, i32) {
    %c0_i32 = arith.constant 0 : i32
    %c0_i32_0 = arith.constant 0 : i32
    %c0_i32_1 = arith.constant 0 : i32
    return %c0_i32, %c0_i32_0 : i32, i32
  }
  func.func @transform_9(%arg0: i32) -> (i32, i32, i32) {
    %c0_i32 = arith.constant 0 : i32
    %c0_i32_0 = arith.constant 0 : i32
    %c0_i32_1 = arith.constant 0 : i32
    return %arg0, %c0_i32, %c0_i32_0 : i32, i32, i32
  }
}

</mosaic_0001>

<bundles_post_ra>
// kernel: dqn_apply.1
= control target key start
LH: loop header
LB: loop body
LE: loop exit
PB: predicated region body
PF: predicated region fallthrough
CT: control target
= control target key end

     0   :  { %14 = vsyncpa [#allocation3], 0  ;;  %s11695_s0 = inlined_call_operand.vmem [shape: bf16[1,40,16,128], index: 0, kind: input, shape index: {}]   ;;  %s11696_s1 = inlined_call_operand.vmem [shape: bf16[5,128,384], index: 1, kind: input, shape index: {}]   ;;  %s11697_s2 = inlined_call_operand.vmem [shape: f32[1,384], index: 2, kind: input, shape index: {}]   ;;  %s11698_s3 = inlined_call_operand.hbm [shape: bf16[5,384,256], index: 3, kind: input, shape index: {}]   ;;  %s11699_s4 = inlined_call_operand.vmem [shape: f32[1,256], index: 4, kind: input, shape index: {}]   ;;  %s11700_s5 = inlined_call_operand.hbm [shape: bf16[5,256,128], index: 5, kind: input, shape index: {}]   ;;  %s11701_s6 = inlined_call_operand.vmem [shape: f32[1,128], index: 6, kind: input, shape index: {}]   ;;  %s11702_s7 = inlined_call_operand.vmem [shape: bf16[256,128], index: 7, kind: input, shape index: {}]   ;;  %s11703_s8 = inlined_call_operand.vmem [shape: f32[1,128], index: 8, kind: input, shape index: {}]   ;;  %s11704_s9 = inlined_call_operand.vmem [shape: f32[1,16,128], index: 9, kind: output, shape index: {}]  }
   0x1   :  { %15 = vsyncpa [#allocation5], 0  ;;  %s10011_s30 = smov [#allocation2]   ;;  %s9963_s13 = scalar_lea.hbm %s11698_s3, 30720 }
   0x2   :  { %s27_s10 = sshll.u32 %s10011_s30, 4  ;;  %p9964_p0 = scmp.ne.s32.totalorder %s11698_s3, %s9963_s13  ;;  %s28_s10 = int_to_ptr.vmem [resolvable:$true] %s27_s10 }
   0x3   :  { %p9967_p1 = scmp.lt.u32.totalorder %s9963_s13, %s11698_s3 }
   0x5   :  { %p9969_p2 = pnand %p9967_p1, %p9964_p0 }
   0x7   :  { %9972 = shalt.err (!%p9969_p2)
}
   0x8   :  { %s9973_s18 = scalar_lea.vmem %s28_s10, 30720  ;;  %p9978_p4 = scmp.lt.s32.totalorder %s28_s10, %s28_s10 }
   0x9   :  { %p9974_p3 = scmp.ne.s32.totalorder %s28_s10, %s9973_s18  ;;  %p9979_p5 = scmp.lt.s32.totalorder %s9973_s18, %s9973_s18 }
   0xb   :  { %p9980_p6 = por %p9979_p5, %p9978_p4 }
   0xd   :  { %p9981_p7 = pnand %p9980_p6, %p9974_p3 }
   0xf   :  { %9984 = shalt.err (!%p9981_p7)
}
  0x10   :  { %s10012_s19 = smov 128   ;;  %s10013_s20 = smov 8  }
  0x11   :  { %33 = dma.hbm_to_vmem [thread:$0]  %s11698_s3, 30720, %s28_s10, [#allocation3], %s10012_s19, %s10012_s19, %s10013_s20  }
  0x12   :  { %s10014_s23 = smov [#allocation4]   ;;  %s9985_s27 = scalar_lea.hbm %s11700_s5, 10240 }
  0x13   :  { %s41_s24 = sshll.u32 %s10014_s23, 4  ;;  %p9986_p8 = scmp.ne.s32.totalorder %s11700_s5, %s9985_s27  ;;  %s42_s24 = int_to_ptr.vmem [resolvable:$true] %s41_s24 }
  0x14   :  { %p9989_p9 = scmp.lt.u32.totalorder %s9985_s27, %s11700_s5 }
  0x16   :  { %p9991_p10 = pnand %p9989_p9, %p9986_p8 }
  0x18   :  { %9994 = shalt.err (!%p9991_p10)
}
  0x19   :  { %s9995_s12 = scalar_lea.vmem %s42_s24, 10240  ;;  %p10000_p12 = scmp.lt.s32.totalorder %s42_s24, %s42_s24 }
  0x1a   :  { %p9996_p11 = scmp.ne.s32.totalorder %s42_s24, %s9995_s12  ;;  %p10001_p13 = scmp.lt.s32.totalorder %s9995_s12, %s9995_s12 }
  0x1c   :  { %p10002_p0 = por %p10001_p13, %p10000_p12 }
  0x1e   :  { %p10003_p1 = pnand %p10002_p0, %p9996_p11 }
  0x20   :  { %10006 = shalt.err (!%p10003_p1)
}
  0x21   :  { %s10015_s3 = smov 64   ;;  %s10016_s10 = smov 4  }
  0x22   :  { %47 = dma.hbm_to_vmem [thread:$0]  %s11700_s5, 10240, %s42_s24, [#allocation5], %s10015_s3, %s10015_s3, %s10016_s10  }
  0x23   :  { %10007 = dma.done.wait [#allocation3], 30720  }
  0x24   :  { %10008 = vsyncadd [#allocation3], 4294936576 }
  0x25   :  { %10009 = dma.done.wait [#allocation5], 10240  }
  0x26   :  { %10010 = vsyncadd [#allocation5], 4294957056  ;;  %v11705_v0 = vmov 0   ;;  %v9269_v1 = vld [vmem:[%s11696_s1 + $0xc4] ss:$12 sps:$4 sm:$0xff]   ;;  %v10171_v19 = vld [vmem:[%s11695_s0 + $0x88] sm:$0xff]  }
  0x27   :  { %472 = vmatprep.mubr.bf16.mxu0 %v11705_v0  ;;  %v10099_v2 = vld [vmem:[%s11696_s1 + $0xc8] ss:$12 sps:$4 sm:$0xff]   ;;  %440 = vmatprep.subr.bf16.mxu0 %v9269_v1  ;;  %v9272_v3 = vld [vmem:[%s11696_s1 + $0xc0] ss:$12 sps:$4 sm:$0xff]   ;;  %v9276_v6 = vld [vmem:[%s11696_s1 + $0xd8] ss:$12 sps:$4 sm:$0xff]  }
  0x28   :  { %8594 = vmatprep.subr.bf16.mxu1 %v10099_v2  ;;  %v9273_v4 = vld [vmem:[%s11696_s1 + $0xdc] ss:$12 sps:$4 sm:$0xff]   ;;  %441 = vmatpush1.bf16.msra.mxu0 %v9272_v3  ;;  %v10112_v5 = vld [vmem:[%s11696_s1 + $0xe0] ss:$12 sps:$4 sm:$0xff]   ;;  %v10124_v8 = vld [vmem:[%s11696_s1 + $0xf8] ss:$12 sps:$4 sm:$0xff]  }
  0x29   :  { %8602 = vmatpush3.bf16.msra.mxu1 %v10099_v2  ;;  %442 = vmatprep.subr.bf16.mxu0 %v9273_v4  ;;  %v9277_v7 = vld [vmem:[%s11696_s1 + $0xf4] ss:$12 sps:$4 sm:$0xff]   ;;  %v9280_v9 = vld [vmem:[%s11696_s1 + $0xf0] ss:$12 sps:$4 sm:$0xff]   ;;  %v9281_v10 = vld [vmem:[%s11696_s1 + $0x10c] ss:$12 sps:$4 sm:$0xff]  }
  0x2a   :  { %8595 = vmatprep.subr.bf16.mxu1 %v10112_v5  ;;  %v10137_v11 = vld [vmem:[%s11696_s1 + $0x110] ss:$12 sps:$4 sm:$0xff]   ;;  %v9284_v12 = vld [vmem:[%s11696_s1 + $0x108] ss:$12 sps:$4 sm:$0xff]   ;;  %v9288_v15 = vld [vmem:[%s11696_s1 + $0x120] ss:$12 sps:$4 sm:$0xff]   ;;  %8366 = vmatprep.mubr.bf16.mxu1 %v10171_v19 }
  0x2b   :  { %v9285_v13 = vld [vmem:[%s11696_s1 + $0x124] ss:$12 sps:$4 sm:$0xff]   ;;  %v10150_v14 = vld [vmem:[%s11696_s1 + $0x128] ss:$12 sps:$4 sm:$0xff]   ;;  %v10163_v17 = vld [vmem:[%s11696_s1 + $0x140] ss:$12 sps:$4 sm:$0xff]  }
  0x2c   :  { %443 = vmatpush1.bf16.msra.mxu0 %v9276_v6  ;;  %v9289_v16 = vld [vmem:[%s11696_s1 + $0x13c] ss:$12 sps:$4 sm:$0xff]   ;;  %v9292_v18 = vld [vmem:[%s11696_s1 + $0x138] ss:$12 sps:$4 sm:$0xff]   ;;  %v9293_v20 = vld [vmem:[%s11696_s1 + $0x154] ss:$12 sps:$4 sm:$0xff]  }
  0x2d   :  { %8603 = vmatpush3.bf16.msra.mxu1 %v10112_v5  ;;  %444 = vmatprep.subr.bf16.mxu0 %v9277_v7  ;;  %v10181_v21 = vld [vmem:[%s11696_s1 + $0x158] ss:$12 sps:$4 sm:$0xff]   ;;  %v9296_v22 = vld [vmem:[%s11696_s1 + $0x150] ss:$12 sps:$4 sm:$0xff]   ;;  %v9300_v25 = vld [vmem:[%s11696_s1 + $0x168] ss:$12 sps:$4 sm:$0xff]  }
  0x2e   :  { %8596 = vmatprep.subr.bf16.mxu1 %v10124_v8  ;;  %v9297_v23 = vld [vmem:[%s11696_s1 + $0x16c] ss:$12 sps:$4 sm:$0xff]   ;;  %v10195_v24 = vld [vmem:[%s11696_s1 + $0x170] ss:$12 sps:$4 sm:$0xff]   ;;  %v9307_v26 = vld [vmem:[%s11696_s1 + $0x8] ss:$12 sps:$4 sm:$0xff]  }
  0x2f   :  { %v9302_v27 = vld [vmem:[%s11695_s0 + $0x8] sm:$0xff]   ;;  %v10211_v28 = vld [vmem:[%s11695_s0 + $0x98] sm:$0xff]   ;;  %v9324_v49 = vld [vmem:[%s11695_s0] sm:$0xff]  }
  0x30   :  { %445 = vmatpush1.bf16.msra.mxu0 %v9280_v9  ;;  %v10218_v29 = vld [vmem:[%s11695_s0 + $0xa8] sm:$0xff]   ;;  %v9305_v31 = vld [vmem:[%s11695_s0 + $0x18] sm:$0xff]   ;;  %v10340_v51 = vld [vmem:[%s11695_s0 + $0x10] sm:$0xff]  }
  0x31   :  { %8604 = vmatpush3.bf16.msra.mxu1 %v10124_v8  ;;  %446 = vmatprep.subr.bf16.mxu0 %v9281_v10  ;;  %v9308_v30 = vld [vmem:[%s11696_s1 + $0x20] ss:$12 sps:$4 sm:$0xff]   ;;  %v9312_v32 = vld [vmem:[%s11696_s1 + $0x38] ss:$12 sps:$4 sm:$0xff]   ;;  %v9313_v35 = vld [vmem:[%s11696_s1 + $0x50] ss:$12 sps:$4 sm:$0xff]  }
  0x32   :  { %8597 = vmatprep.subr.bf16.mxu1 %v10137_v11  ;;  %v10237_v33 = vld [vmem:[%s11695_s0 + $0xb8] sm:$0xff]   ;;  %v10242_v34 = vld [vmem:[%s11695_s0 + $0xc8] sm:$0xff]   ;;  %v9355_v52 = vld [vmem:[%s11696_s1 + $0x4] ss:$12 sps:$4 sm:$0xff]  }
  0x33   :  { %v10255_v36 = vld [vmem:[%s11695_s0 + $0x28] sm:$0xff]   ;;  %v10265_v38 = vld [vmem:[%s11695_s0 + $0xd8] sm:$0xff]   ;;  %v10348_v53 = vld [vmem:[%s11695_s0 + $0x20] sm:$0xff]  }
  0x34   :  { %447 = vmatpush1.bf16.msra.mxu0 %v9284_v12  ;;  %v9317_v37 = vld [vmem:[%s11696_s1 + $0x68] ss:$12 sps:$4 sm:$0xff]   ;;  %v9318_v40 = vld [vmem:[%s11696_s1 + $0x80] ss:$12 sps:$4 sm:$0xff]   ;;  %v10284_v41 = vld [vmem:[%s11695_s0 + $0x38] sm:$0xff]  }
  0x35   :  { %8605 = vmatpush3.bf16.msra.mxu1 %v10137_v11  ;;  %448 = vmatprep.subr.bf16.mxu0 %v9285_v13  ;;  %v10270_v39 = vld [vmem:[%s11695_s0 + $0xe8] sm:$0xff]   ;;  %v9322_v42 = vld [vmem:[%s11696_s1 + $0x98] ss:$12 sps:$4 sm:$0xff]   ;;  %v9323_v45 = vld [vmem:[%s11696_s1 + $0xb0] ss:$12 sps:$4 sm:$0xff]  }
  0x36   :  { %8598 = vmatprep.subr.bf16.mxu1 %v10150_v14  ;;  %v10294_v43 = vld [vmem:[%s11695_s0 + $0xf8] sm:$0xff]   ;;  %v10299_v44 = vld [vmem:[%s11695_s0 + $0x108] sm:$0xff]   ;;  %v10368_v57 = vld [vmem:[%s11695_s0 + $0x30] sm:$0xff]  }
  0x37   :  { %v10313_v46 = vld [vmem:[%s11695_s0 + $0x48] sm:$0xff]   ;;  %v10323_v48 = vld [vmem:[%s11695_s0 + $0x118] sm:$0xff]   ;;  %v10373_v58 = vld [vmem:[%s11695_s0 + $0x40] sm:$0xff]  }
  0x38   :  { %449 = vmatpush1.bf16.msra.mxu0 %v9288_v15  ;;  %v9339_v47 = vld [vmem:[%s11696_s1 + $0x188] ss:$12 sps:$4 sm:$0xff]   ;;  %v10335_v50 = vld [vmem:[%s11695_s0 + $0x58] sm:$0xff]   ;;  %v9340_v54 = vld [vmem:[%s11696_s1 + $0x1a0] ss:$12 sps:$4 sm:$0xff]  }
  0x39   :  { %8606 = vmatpush3.bf16.msra.mxu1 %v10150_v14  ;;  %450 = vmatprep.subr.bf16.mxu0 %v9289_v16  ;;  %v10360_v55 = vld [vmem:[%s11695_s0 + $0x68] sm:$0xff]   ;;  %v9343_v56 = vld [vmem:[%s11696_s1 + $0x1b8] ss:$12 sps:$4 sm:$0xff]   ;;  %v9344_v59 = vld [vmem:[%s11696_s1 + $0x1d0] ss:$12 sps:$4 sm:$0xff]  }
  0x3a   :  { %8599 = vmatprep.subr.bf16.mxu1 %v10163_v17  ;;  %v10385_v60 = vld [vmem:[%s11695_s0 + $0x78] sm:$0xff]   ;;  %v9347_v61 = vld [vmem:[%s11696_s1 + $0x1e8] ss:$12 sps:$4 sm:$0xff]   ;;  %v10398_v63 = vld [vmem:[%s11695_s0 + $0x60] sm:$0xff]  }
  0x3b   :  { %v10393_v62 = vld [vmem:[%s11695_s0 + $0x50] sm:$0xff]   ;;  %v9348_v1 = vld [vmem:[%s11696_s1 + $0x200] ss:$12 sps:$4 sm:$0xff]  }
  0x3c   :  { %451 = vmatpush1.bf16.msra.mxu0 %v9292_v18  ;;  %v10413_v3 = vld [vmem:[%s11695_s0 + $0x70] sm:$0xff]   ;;  %v10418_v4 = vld [vmem:[%s11695_s0 + $0x80] sm:$0xff]  }
  0x3d   :  { %8607 = vmatpush3.bf16.msra.mxu1 %v10163_v17  ;;  %452 = vmatprep.subr.bf16.mxu0 %v9293_v20  ;;  %v9362_v6 = vld [vmem:[%s11696_s1 + $0x248] ss:$12 sps:$4 sm:$0xff]   ;;  %v10452_v10 = vld [vmem:[%s11695_s0 + $0xc0] sm:$0xff]   ;;  %v9374_v18 = vld [vmem:[%s11696_s1 + $0x290] ss:$12 sps:$4 sm:$0xff]  }
  0x3e   :  { %8600 = vmatprep.subr.bf16.mxu1 %v10181_v21  ;;  %v10433_v7 = vld [vmem:[%s11695_s0 + $0x90] sm:$0xff]   ;;  %v10466_v12 = vld [vmem:[%s11695_s0 + $0xe0] sm:$0xff]  }
  0x3f   :  { %v10447_v9 = vld [vmem:[%s11695_s0 + $0xb0] sm:$0xff]   ;;  %v9366_v16 = vld [vmem:[%s11696_s1 + $0x260] ss:$12 sps:$4 sm:$0xff]  }
  0x40   :  { %453 = vmatpush1.bf16.msra.mxu0 %v9296_v22  ;;  %v10475_v13 = vld [vmem:[%s11695_s0 + $0xf0] sm:$0xff]   ;;  %v9382_v20 = vld [vmem:[%s11696_s1 + $0x2c0] ss:$12 sps:$4 sm:$0xff]  }
  0x41   :  { %8608 = vmatpush3.bf16.msra.mxu1 %v10181_v21  ;;  %454 = vmatprep.subr.bf16.mxu0 %v9297_v23  ;;  %v10489_v15 = vld [vmem:[%s11695_s0 + $0x110] sm:$0xff]   ;;  %v9924_v23 = vld [vmem:[%s11695_s0 + $0x8] sm:$0xff]  }
  0x42   :  { %8601 = vmatprep.subr.bf16.mxu1 %v10195_v24  ;;  %v9388_v22 = vld [vmem:[%s11696_s1 + $0x2f0] ss:$12 sps:$4 sm:$0xff]  }
  0x44   :  { %455 = vmatpush1.bf16.msra.mxu0 %v9300_v25  ;;  %v9353_v25 = vld [vmem:[%s11696_s1] ss:$12 sps:$4 sm:$0xff]  }
  0x45   :  { %8609 = vmatpush3.bf16.msra.mxu1 %v10195_v24  ;;  %8334 = vmatprep.subr.bf16.mxu0 %v10099_v2 }
  0x46   :  { %8386 = vmatprep.subr.bf16.mxu1 %v9307_v26 }
  0x47   :  { %473 = vmatmul.mubr.bf16.vlgmr.msra.gmra.mrb[0].mxu0 %v9302_v27  ;;  %v9356_v27 = vld [vmem:[%s11696_s1 + $0x18] ss:$12 sps:$4 sm:$0xff]  }
  0x48   :  { %8367 = vmatmul.mubr.bf16.vlgmr.msra.gmra.mrb[0].mxu1 %v10211_v28  ;;  %8335 = vmatpush3.bf16.msra.mxu0 %v10099_v2  ;;  %v9351_v2 = vld [vmem:[%s11696_s1 + $0x218] ss:$12 sps:$4 sm:$0xff]  }
  0x49   :  { %482 = vmatprep.mubr.bf16.mxu0 %v11705_v0  ;;  %8370 = vmatprep.mubr.bf16.mxu1 %v10218_v29 }
  0x4a   :  { %8387 = vmatpush3.bf16.msra.mxu1 %v9307_v26  ;;  %8336 = vmatprep.subr.bf16.mxu0 %v10112_v5  ;;  %v9358_v26 = vld [vmem:[%s11696_s1 + $0x1c] ss:$12 sps:$4 sm:$0xff]  }
  0x4b   :  { %8388 = vmatprep.subr.bf16.mxu1 %v9308_v30 }
  0x4c   :  { %8337 = vmatpush3.bf16.msra.mxu0 %v10112_v5  ;;  %v9352_v5 = vld [vmem:[%s11696_s1 + $0x230] ss:$12 sps:$4 sm:$0xff]  }
  0x4d   :  { %8338 = vmatprep.subr.bf16.mxu0 %v10124_v8 }
  0x4e   :  { %8389 = vmatpush3.bf16.msra.mxu1 %v9308_v30  ;;  %v9359_v30 = vld [vmem:[%s11696_s1 + $0x30] ss:$12 sps:$4 sm:$0xff]  }
  0x4f   :  { %8390 = vmatprep.subr.bf16.mxu1 %v9312_v32  ;;  %483 = vmatmul.mubr.bf16.gmra.mrb[4].mxu0 %v9305_v31  ;;  %v9365_v31 = vld [vmem:[%s11696_s1 + $0x4c] ss:$12 sps:$4 sm:$0xff]  }
  0x50   :  { %8371 = vmatmul.mubr.bf16.gmra.mrb[4].mxu1 %v10237_v33  ;;  %492 = vmatprep.mubr.bf16.mxu0 %v11705_v0 }
  0x51   :  { %8374 = vmatprep.mubr.bf16.mxu1 %v10242_v34  ;;  %8339 = vmatpush3.bf16.msra.mxu0 %v10124_v8  ;;  %v10438_v8 = vld [vmem:[%s11695_s0 + $0xa0] sm:$0xff]  }
  0x52   :  { %8391 = vmatpush3.bf16.msra.mxu1 %v9312_v32  ;;  %8340 = vmatprep.subr.bf16.mxu0 %v10137_v11  ;;  %v9363_v32 = vld [vmem:[%s11696_s1 + $0x48] ss:$12 sps:$4 sm:$0xff]  }
  0x53   :  { %8392 = vmatprep.subr.bf16.mxu1 %v9313_v35 }
  0x55   :  { %8341 = vmatpush3.bf16.msra.mxu0 %v10137_v11  ;;  %v10461_v11 = vld [vmem:[%s11695_s0 + $0xd0] sm:$0xff]  }
  0x56   :  { %8393 = vmatpush3.bf16.msra.mxu1 %v9313_v35  ;;  %8342 = vmatprep.subr.bf16.mxu0 %v10150_v14  ;;  %v9373_v35 = vld [vmem:[%s11696_s1 + $0x7c] ss:$12 sps:$4 sm:$0xff]  }
  0x57   :  { %8394 = vmatprep.subr.bf16.mxu1 %v9317_v37  ;;  %493 = vmatmul.mubr.bf16.gmra.mrb[8].mxu0 %v10255_v36 }
  0x58   :  { %8375 = vmatmul.mubr.bf16.gmra.mrb[8].mxu1 %v10265_v38  ;;  %502 = vmatprep.mubr.bf16.mxu0 %v11705_v0 }
  0x59   :  { %8378 = vmatprep.mubr.bf16.mxu1 %v10270_v39  ;;  %8343 = vmatpush3.bf16.msra.mxu0 %v10150_v14  ;;  %v10480_v14 = vld [vmem:[%s11695_s0 + $0x100] sm:$0xff]  }
  0x5a   :  { %8395 = vmatpush3.bf16.msra.mxu1 %v9317_v37  ;;  %8344 = vmatprep.subr.bf16.mxu0 %v10163_v17  ;;  %v9377_v37 = vld [vmem:[%s11696_s1 + $0x94] ss:$12 sps:$4 sm:$0xff]  }
  0x5b   :  { %8396 = vmatprep.subr.bf16.mxu1 %v9318_v40 }
  0x5d   :  { %8345 = vmatpush3.bf16.msra.mxu0 %v10163_v17  ;;  %v9370_v17 = vld [vmem:[%s11696_s1 + $0x278] ss:$12 sps:$4 sm:$0xff]  }
  0x5e   :  { %8397 = vmatpush3.bf16.msra.mxu1 %v9318_v40  ;;  %8346 = vmatprep.subr.bf16.mxu0 %v10181_v21  ;;  %v9379_v40 = vld [vmem:[%s11696_s1 + $0xa8] ss:$12 sps:$4 sm:$0xff]  }
  0x5f   :  { %8398 = vmatprep.subr.bf16.mxu1 %v9322_v42  ;;  %503 = vmatmul.mubr.bf16.gmra.mrb[12].mxu0 %v10284_v41 }
  0x60   :  { %8379 = vmatmul.mubr.bf16.gmra.mrb[12].mxu1 %v10294_v43  ;;  %512 = vmatprep.mubr.bf16.mxu0 %v11705_v0 }
  0x61   :  { %8382 = vmatprep.mubr.bf16.mxu1 %v10299_v44  ;;  %8347 = vmatpush3.bf16.msra.mxu0 %v10181_v21  ;;  %v9387_v21 = vld [vmem:[%s11696_s1 + $0x2d8] ss:$12 sps:$4 sm:$0xff]  }
  0x62   :  { %8399 = vmatpush3.bf16.msra.mxu1 %v9322_v42  ;;  %8348 = vmatprep.subr.bf16.mxu0 %v10195_v24  ;;  %v10609_v42 = vld [vmem:[%s11695_s0 + $0x120] sm:$0xff]  }
  0x63   :  { %8400 = vmatprep.subr.bf16.mxu1 %v9323_v45 }
  0x65   :  { %8349 = vmatpush3.bf16.msra.mxu0 %v10195_v24  ;;  %v10537_v24 = vld [vmem:[%s11696_s1 + $0x308] ss:$12 sps:$4 sm:$0xff]  }
  0x66   :  { %8401 = vmatpush3.bf16.msra.mxu1 %v9323_v45  ;;  %1060 = vmatprep.subr.bf16.mxu0 %v9355_v52  ;;  %v9389_v45 = vld [vmem:[%s11696_s1 + $0x198] ss:$12 sps:$4 sm:$0xff]   ;;  %v10646_v52 = vld [vmem:[%s11695_s0 + $0x28] sm:$0xff]  }
  0x67   :  { %8438 = vmatprep.subr.bf16.mxu1 %v9339_v47  ;;  %513 = vmatmul.mubr.bf16.gmra.mrb[16].mxu0 %v10313_v46 }
  0x68   :  { %8383 = vmatmul.mubr.bf16.gmra.mrb[16].mxu1 %v10323_v48  ;;  %522 = vmatprep.mubr.bf16.mxu0 %v11705_v0 }
  0x69   :  { %8402 = vmatprep.mubr.bf16.mxu1 %v9324_v49  ;;  %v9396_v49 = vld [vmem:[%s11696_s1 + $0x320] ss:$12 sps:$4 sm:$0xff]  }
  0x6f   :  { %523 = vmatmul.mubr.bf16.gmra.mrb[20].mxu0 %v10335_v50 }
  0x70   :  { %8403 = vmatmul.mubr.bf16.vlgmr.msra.gmra.mrb[20].mxu1 %v10340_v51  ;;  %532 = vmatprep.mubr.bf16.mxu0 %v11705_v0 }
  0x71   :  { %8406 = vmatprep.mubr.bf16.mxu1 %v10348_v53  ;;  %8439 = vmatpush3.bf16.msra.mxu1 %v9339_v47  ;;  %v9394_v47 = vld [vmem:[%s11696_s1 + $0x1b4] ss:$12 sps:$4 sm:$0xff]  }
  0x72   :  { %8440 = vmatprep.subr.bf16.mxu1 %v9340_v54 }
  0x75   :  { %8441 = vmatpush3.bf16.msra.mxu1 %v9340_v54  ;;  %v10656_v54 = vld [vmem:[%s11695_s0 + $0x38] sm:$0xff]  }
  0x76   :  { %8442 = vmatprep.subr.bf16.mxu1 %v9343_v56 }
  0x77   :  { %533 = vmatmul.mubr.bf16.gmra.mrb[24].mxu0 %v10360_v55 }
  0x78   :  { %8407 = vmatmul.mubr.bf16.gmra.mrb[24].mxu1 %v10368_v57  ;;  %542 = vmatprep.mubr.bf16.mxu0 %v11705_v0 }
  0x79   :  { %8410 = vmatprep.mubr.bf16.mxu1 %v10373_v58  ;;  %8443 = vmatpush3.bf16.msra.mxu1 %v9343_v56  ;;  %v9406_v56 = vld [vmem:[%s11696_s1 + $0x1e4] ss:$12 sps:$4 sm:$0xff]  }
  0x7a   :  { %8444 = vmatprep.subr.bf16.mxu1 %v9344_v59 }
  0x7d   :  { %8445 = vmatpush3.bf16.msra.mxu1 %v9344_v59  ;;  %v9412_v59 = vld [vmem:[%s11696_s1 + $0x1fc] ss:$12 sps:$4 sm:$0xff]  }
  0x7e   :  { %8446 = vmatprep.subr.bf16.mxu1 %v9347_v61 }
  0x7f   :  { %543 = vmatmul.mubr.bf16.gmra.mrb[28].mxu0 %v10385_v60 }
  0x80   :  { %8411 = vmatmul.mubr.bf16.gmra.mrb[28].mxu1 %v10393_v62  ;;  %552 = vmatprep.mubr.bf16.mxu0 %v11705_v0 }
  0x81   :  { %8414 = vmatprep.mubr.bf16.mxu1 %v10398_v63  ;;  %8447 = vmatpush3.bf16.msra.mxu1 %v9347_v61  ;;  %v10684_v61 = vld [vmem:[%s11695_s0 + $0x48] sm:$0xff]  }
  0x82   :  { %8448 = vmatprep.subr.bf16.mxu1 %v9348_v1 }
  0x85   :  { %8449 = vmatpush3.bf16.msra.mxu1 %v9348_v1  ;;  %v9402_v1 = vld [vmem:[%s11696_s1 + $0x368] ss:$12 sps:$4 sm:$0xff]  }
  0x86   :  { %8450 = vmatprep.subr.bf16.mxu1 %v9351_v2 }
  0x87   :  { %553 = vmatmul.mubr.bf16.gmra.mrb[32].mxu0 %v10171_v19  ;;  %v9378_v19 = vld [vmem:[%s11696_s1 + $0x2a8] ss:$12 sps:$4 sm:$0xff]  }
  0x88   :  { %8415 = vmatmul.mubr.bf16.gmra.mrb[32].mxu1 %v10413_v3  ;;  %562 = vmatprep.mubr.bf16.mxu0 %v11705_v0 }
  0x89   :  { %8418 = vmatprep.mubr.bf16.mxu1 %v10418_v4  ;;  %8451 = vmatpush3.bf16.msra.mxu1 %v9351_v2  ;;  %v9415_v2 = vld [vmem:[%s11696_s1 + $0x214] ss:$12 sps:$4 sm:$0xff]  }
  0x8a   :  { %8452 = vmatprep.subr.bf16.mxu1 %v9352_v5 }
  0x8d   :  { %8453 = vmatpush3.bf16.msra.mxu1 %v9352_v5  ;;  %v9418_v5 = vld [vmem:[%s11696_s1 + $0x22c] ss:$12 sps:$4 sm:$0xff]  }
  0x8e   :  { %8490 = vmatprep.subr.bf16.mxu1 %v9362_v6 }
  0x8f   :  { %563 = vmatmul.mubr.bf16.gmra.mrb[36].mxu0 %v10211_v28  ;;  %v9925_v28 = vld [vmem:[%s11695_s0 + $0x18] sm:$0xff]  }
  0x90   :  { %8419 = vmatmul.mubr.bf16.gmra.mrb[0].mxu1 %v10433_v7  ;;  %572 = vmatprep.mubr.bf16.mxu0 %v11705_v0 }
  0x91   :  { %8422 = vmatprep.mubr.bf16.mxu1 %v10438_v8 }
  0x97   :  { %573 = vmatmul.mubr.bf16.gmra.mrb[40].mxu0 %v10218_v29  ;;  %v9361_v29 = vld [vmem:[%s11696_s1 + $0x34] ss:$12 sps:$4 sm:$0xff]  }
  0x98   :  { %8423 = vmatmul.mubr.bf16.gmra.mrb[4].mxu1 %v10447_v9  ;;  %582 = vmatprep.mubr.bf16.mxu0 %v11705_v0 }
  0x99   :  { %8426 = vmatprep.mubr.bf16.mxu1 %v10452_v10 }
  0x9f   :  { %583 = vmatmul.mubr.bf16.gmra.mrb[44].mxu0 %v10237_v33  ;;  %v9369_v33 = vld [vmem:[%s11696_s1 + $0x64] ss:$12 sps:$4 sm:$0xff]  }
  0xa0   :  { %8427 = vmatmul.mubr.bf16.gmra.mrb[8].mxu1 %v10461_v11  ;;  %592 = vmatprep.mubr.bf16.mxu0 %v11705_v0 }
  0xa1   :  { %8430 = vmatprep.mubr.bf16.mxu1 %v10466_v12 }
  0xa7   :  { %593 = vmatmul.mubr.bf16.gmra.mrb[48].mxu0 %v10242_v34  ;;  %v9367_v34 = vld [vmem:[%s11696_s1 + $0x60] ss:$12 sps:$4 sm:$0xff]  }
  0xa8   :  { %8431 = vmatmul.mubr.bf16.gmra.mrb[12].mxu1 %v10475_v13  ;;  %602 = vmatprep.mubr.bf16.mxu0 %v11705_v0 }
  0xa9   :  { %8434 = vmatprep.mubr.bf16.mxu1 %v10480_v14 }
  0xaf   :  { %603 = vmatmul.mubr.bf16.gmra.mrb[52].mxu0 %v10265_v38  ;;  %v9375_v38 = vld [vmem:[%s11696_s1 + $0x90] ss:$12 sps:$4 sm:$0xff]  }
  0xb0   :  { %8435 = vmatmul.mubr.bf16.gmra.mrb[36].mxu1 %v10489_v15  ;;  %612 = vmatprep.mubr.bf16.mxu0 %v11705_v0 }
  0xb1   :  { %8454 = vmatprep.mubr.bf16.mxu1 %v10340_v51  ;;  %v10640_v51 = vld [vmem:[%s11695_s0 + $0x10] sm:$0xff]  }
  0xb7   :  { %613 = vmatmul.mubr.bf16.gmra.mrb[56].mxu0 %v10270_v39  ;;  %v9381_v39 = vld [vmem:[%s11696_s1 + $0xac] ss:$12 sps:$4 sm:$0xff]  }
  0xb8   :  { %8455 = vmatmul.mubr.bf16.vlgmr.msra.gmra.mrb[20].mxu1 %v10348_v53  ;;  %622 = vmatprep.mubr.bf16.mxu0 %v11705_v0  ;;  %v9397_v53 = vld [vmem:[%s11696_s1 + $0x1c8] ss:$12 sps:$4 sm:$0xff]  }
  0xb9   :  { %8458 = vmatprep.mubr.bf16.mxu1 %v10368_v57  ;;  %8491 = vmatpush3.bf16.msra.mxu1 %v9362_v6  ;;  %v9404_v57 = vld [vmem:[%s11696_s1 + $0x1e0] ss:$12 sps:$4 sm:$0xff]   ;;  %v10715_v6 = vld [vmem:[%s11695_s0 + $0x30] sm:$0xff]  }
  0xba   :  { %8492 = vmatprep.subr.bf16.mxu1 %v9366_v16 }
  0xbd   :  { %8493 = vmatpush3.bf16.msra.mxu1 %v9366_v16  ;;  %v10765_v16 = vld [vmem:[%s11695_s0 + $0x50] sm:$0xff]  }
  0xbe   :  { %8494 = vmatprep.subr.bf16.mxu1 %v9370_v17 }
  0xbf   :  { %623 = vmatmul.mubr.bf16.gmra.mrb[60].mxu0 %v10294_v43  ;;  %v9383_v43 = vld [vmem:[%s11696_s1 + $0x180] ss:$12 sps:$4 sm:$0xff]  }
  0xc0   :  { %8459 = vmatmul.mubr.bf16.gmra.mrb[24].mxu1 %v10373_v58  ;;  %632 = vmatprep.mubr.bf16.mxu0 %v11705_v0  ;;  %v9401_v58 = vld [vmem:[%s11696_s1 + $0x350] ss:$12 sps:$4 sm:$0xff]  }
  0xc1   :  { %8462 = vmatprep.mubr.bf16.mxu1 %v10393_v62  ;;  %8495 = vmatpush3.bf16.msra.mxu1 %v9370_v17  ;;  %v9410_v62 = vld [vmem:[%s11696_s1 + $0x1f8] ss:$12 sps:$4 sm:$0xff]   ;;  %v10771_v17 = vld [vmem:[%s11695_s0 + $0xa8] sm:$0xff]  }
  0xc2   :  { %8496 = vmatprep.subr.bf16.mxu1 %v9374_v18 }
  0xc5   :  { %8497 = vmatpush3.bf16.msra.mxu1 %v9374_v18  ;;  %v10778_v18 = vld [vmem:[%s11695_s0 + $0xb8] sm:$0xff]  }
  0xc6   :  { %8498 = vmatprep.subr.bf16.mxu1 %v9378_v19 }
  0xc7   :  { %633 = vmatmul.mubr.bf16.gmra.mrb[64].mxu0 %v10299_v44  ;;  %v9391_v44 = vld [vmem:[%s11696_s1 + $0x19c] ss:$12 sps:$4 sm:$0xff]  }
  0xc8   :  { %8463 = vmatmul.mubr.bf16.gmra.mrb[28].mxu1 %v10398_v63  ;;  %642 = vmatprep.mubr.bf16.mxu0 %v11705_v0  ;;  %v10694_v63 = vld [vmem:[%s11695_s0 + $0x58] sm:$0xff]  }
  0xc9   :  { %8466 = vmatprep.mubr.bf16.mxu1 %v10413_v3  ;;  %8499 = vmatpush3.bf16.msra.mxu1 %v9378_v19  ;;  %v9413_v3 = vld [vmem:[%s11696_s1 + $0x210] ss:$12 sps:$4 sm:$0xff]   ;;  %v10784_v19 = vld [vmem:[%s11695_s0 + $0x60] sm:$0xff]  }
  0xca   :  { %8500 = vmatprep.subr.bf16.mxu1 %v9382_v20 }
  0xcd   :  { %8501 = vmatpush3.bf16.msra.mxu1 %v9382_v20  ;;  %v10790_v20 = vld [vmem:[%s11695_s0 + $0xc8] sm:$0xff]  }
  0xce   :  { %8502 = vmatprep.subr.bf16.mxu1 %v9387_v21 }
  0xcf   :  { %643 = vmatmul.mubr.bf16.gmra.mrb[68].mxu0 %v10323_v48  ;;  %v9392_v48 = vld [vmem:[%s11696_s1 + $0x1b0] ss:$12 sps:$4 sm:$0xff]  }
  0xd0   :  { %8467 = vmatmul.mubr.bf16.gmra.mrb[32].mxu1 %v10418_v4  ;;  %8350 = vmatprep.mubr.bf16.mxu0 %v9924_v23  ;;  %v9403_v4 = vld [vmem:[%s11696_s1 + $0x380] ss:$12 sps:$4 sm:$0xff]  }
  0xd1   :  { %8470 = vmatprep.mubr.bf16.mxu1 %v10433_v7  ;;  %8503 = vmatpush3.bf16.msra.mxu1 %v9387_v21  ;;  %v10721_v7 = vld [vmem:[%s11695_s0 + $0x68] sm:$0xff]   ;;  %v10797_v21 = vld [vmem:[%s11695_s0 + $0xd8] sm:$0xff]  }
  0xd2   :  { %8504 = vmatprep.subr.bf16.mxu1 %v9388_v22  ;;  %v10809_v23 = vld [vmem:[%s11695_s0 + $0xe8] sm:$0xff]  }
  0xd5   :  { %8505 = vmatpush3.bf16.msra.mxu1 %v9388_v22  ;;  %v10803_v22 = vld [vmem:[%s11695_s0 + $0x70] sm:$0xff]  }
  0xd6   :  { %8542 = vmatprep.subr.bf16.mxu1 %v10537_v24 }
  0xd7   :  { %8351 = vmatmul.mubr.bf16.vlgmr.msra.gmra.mrb[72].mxu0 %v9925_v28 }
  0xd8   :  { %8471 = vmatmul.mubr.bf16.gmra.mrb[0].mxu1 %v10438_v8  ;;  %1061 = vmatpush1.bf16.msra.mxu0 %v9353_v25  ;;  %v9416_v8 = vld [vmem:[%s11696_s1 + $0x228] ss:$12 sps:$4 sm:$0xff]   ;;  %v10822_v25 = vld [vmem:[%s11695_s0 + $0x80] sm:$0xff]  }
  0xd9   :  { %8354 = vmatprep.mubr.bf16.mxu0 %v10255_v36  ;;  %1062 = vmatprep.subr.bf16.mxu0 %v9358_v26  ;;  %v9371_v36 = vld [vmem:[%s11696_s1 + $0x78] ss:$12 sps:$4 sm:$0xff]   ;;  %v10828_v26 = vld [vmem:[%s11695_s0 + $0x108] sm:$0xff]  }
  0xda   :  { %8474 = vmatprep.mubr.bf16.mxu1 %v10447_v9  ;;  %v10731_v9 = vld [vmem:[%s11695_s0 + $0x78] sm:$0xff]  }
  0xdc   :  { %1063 = vmatpush1.bf16.msra.mxu0 %v9356_v27  ;;  %v10835_v27 = vld [vmem:[%s11695_s0 + $0x118] sm:$0xff]  }
  0xdd   :  { %1064 = vmatprep.subr.bf16.mxu0 %v9361_v29  ;;  %v10841_v29 = vld [vmem:[%s11695_s0 + $0x128] sm:$0xff]  }
  0xdf   :  { %8355 = vmatmul.mubr.bf16.gmra.mrb[76].mxu0 %v10284_v41  ;;  %v9385_v41 = vld [vmem:[%s11696_s1 + $0x184] ss:$12 sps:$4 sm:$0xff]  }
  0xe0   :  { %8475 = vmatmul.mubr.bf16.gmra.mrb[4].mxu1 %v10452_v10  ;;  %1065 = vmatpush1.bf16.msra.mxu0 %v9359_v30  ;;  %v9408_v10 = vld [vmem:[%s11696_s1 + $0x398] ss:$12 sps:$4 sm:$0xff]   ;;  %v10846_v30 = vld [vmem:[%s11695_s0 + $0x90] sm:$0xff]  }
  0xe1   :  { %8358 = vmatprep.mubr.bf16.mxu0 %v10313_v46  ;;  %1066 = vmatprep.subr.bf16.mxu0 %v9365_v31  ;;  %v9926_v46 = vld [vmem:[%s11695_s0] sm:$0xff]  }
  0xe2   :  { %8478 = vmatprep.mubr.bf16.mxu1 %v10461_v11  ;;  %v9421_v11 = vld [vmem:[%s11696_s1 + $0x244] ss:$12 sps:$4 sm:$0xff]  }
  0xe3   :  { %v10855_v31 = vld [vmem:[%s11695_s0 + $0xa0] sm:$0xff]  }
  0xe4   :  { %1067 = vmatpush1.bf16.msra.mxu0 %v9363_v32  ;;  %v10864_v32 = vld [vmem:[%s11695_s0 + $0xb0] sm:$0xff]  }
  0xe5   :  { %1068 = vmatprep.subr.bf16.mxu0 %v9369_v33  ;;  %v10873_v33 = vld [vmem:[%s11695_s0 + $0xc0] sm:$0xff]  }
  0xe7   :  { %8359 = vmatmul.mubr.bf16.gmra.mrb[80].mxu0 %v10335_v50  ;;  %v9399_v50 = vld [vmem:[%s11696_s1 + $0x1cc] ss:$12 sps:$4 sm:$0xff]  }
  0xe8   :  { %8479 = vmatmul.mubr.bf16.gmra.mrb[8].mxu1 %v10466_v12  ;;  %1069 = vmatpush1.bf16.msra.mxu0 %v9367_v34  ;;  %v9409_v12 = vld [vmem:[%s11696_s1 + $0x3b0] ss:$12 sps:$4 sm:$0xff]  }
  0xe9   :  { %8362 = vmatprep.mubr.bf16.mxu0 %v10360_v55  ;;  %1070 = vmatprep.subr.bf16.mxu0 %v9373_v35  ;;  %v9400_v55 = vld [vmem:[%s11696_s1 + $0x338] ss:$12 sps:$4 sm:$0xff]   ;;  %v10882_v34 = vld [vmem:[%s11695_s0 + $0xd0] sm:$0xff]  }
  0xea   :  { %8482 = vmatprep.mubr.bf16.mxu1 %v10475_v13  ;;  %v10746_v13 = vld [vmem:[%s11695_s0 + $0x40] sm:$0xff]  }
  0xeb   :  { %v10891_v35 = vld [vmem:[%s11695_s0 + $0xe0] sm:$0xff]  }
  0xec   :  { %1071 = vmatpush1.bf16.msra.mxu0 %v9371_v36  ;;  %v10900_v36 = vld [vmem:[%s11695_s0 + $0xf0] sm:$0xff]  }
  0xed   :  { %1072 = vmatprep.subr.bf16.mxu0 %v9377_v37  ;;  %v10909_v37 = vld [vmem:[%s11695_s0 + $0x100] sm:$0xff]  }
  0xef   :  { %8363 = vmatmul.mubr.bf16.gmra.mrb[84].mxu0 %v10385_v60  ;;  %v10678_v60 = vld [vmem:[%s11695_s0 + $0x20] sm:$0xff]  }
  0xf0   :  { %8483 = vmatmul.mubr.bf16.gmra.mrb[12].mxu1 %v10480_v14  ;;  %1073 = vmatpush1.bf16.msra.mxu0 %v9375_v38  ;;  %v10752_v14 = vld [vmem:[%s11695_s0 + $0x88] sm:$0xff]   ;;  %v10918_v38 = vld [vmem:[%s11695_s0 + $0x110] sm:$0xff]  }
  0xf1   :  { %1092 = vmatprep.mubr.bf16.mxu0 %v11705_v0  ;;  %1074 = vmatprep.subr.bf16.mxu0 %v9381_v39  ;;  %11716 = vst [vmem:[#allocation8_spill] sm:$0xff] %v10918_v38  ;;  %v9419_v39 = vld [vmem:[%s11696_s1 + $0x240] ss:$12 sps:$4 sm:$0xff]  }
  0xf2   :  { %8486 = vmatprep.mubr.bf16.mxu1 %v10489_v15  ;;  %v10759_v15 = vld [vmem:[%s11695_s0 + $0x98] sm:$0xff]  }
  0xf4   :  { %1075 = vmatpush1.bf16.msra.mxu0 %v9379_v40  ;;  %v9424_v40 = vld [vmem:[%s11696_s1 + $0x25c] ss:$12 sps:$4 sm:$0xff]  }
  0xf5   :  { %1611 = vmatprep.subr.bf16.mxu0 %v9385_v41 }
  0xf7   :  { %1093 = vmatmul.mubr.bf16.vlgmr.msra.gmra.mrb[0].mxu0 %v9926_v46 }
  0xf8   :  { %8487 = vmatmul.mubr.bf16.gmra.mrb[40].mxu1 %v10609_v42  ;;  %1612 = vmatpush1.bf16.msra.mxu0 %v9383_v43  ;;  %v9422_v43 = vld [vmem:[%s11696_s1 + $0x258] ss:$12 sps:$4 sm:$0xff]  }
  0xf9   :  { %1102 = vmatprep.mubr.bf16.mxu0 %v11705_v0  ;;  %8506 = vmatprep.mubr.bf16.mxu1 %v9925_v28 }
  0xfa   :  { %1613 = vmatprep.subr.bf16.mxu0 %v9391_v44 }
  0xfc   :  { %1614 = vmatpush1.bf16.msra.mxu0 %v9389_v45  ;;  %v9427_v45 = vld [vmem:[%s11696_s1 + $0x274] ss:$12 sps:$4 sm:$0xff]  }
  0xfd   :  { %1615 = vmatprep.subr.bf16.mxu0 %v9394_v47 }
  0xff   :  { %1103 = vmatmul.mubr.bf16.gmra.mrb[4].mxu0 %v10640_v51 }
 0x100   :  { %8507 = vmatmul.mubr.bf16.vlgmr.msra.gmra.mrb[20].mxu1 %v10646_v52  ;;  %1112 = vmatprep.mubr.bf16.mxu0 %v11705_v0 }
 0x101   :  { %8510 = vmatprep.mubr.bf16.mxu1 %v10656_v54  ;;  %1616 = vmatpush1.bf16.msra.mxu0 %v9392_v48 }
 0x102   :  { %8543 = vmatpush3.bf16.msra.mxu1 %v10537_v24  ;;  %1617 = vmatprep.subr.bf16.mxu0 %v9399_v50  ;;  %v10816_v24 = vld [vmem:[%s11695_s0 + $0xf8] sm:$0xff]  }
 0x103   :  { %8544 = vmatprep.subr.bf16.mxu1 %v9396_v49 }
 0x105   :  { %1618 = vmatpush1.bf16.msra.mxu0 %v9397_v53  ;;  %v9430_v53 = vld [vmem:[%s11696_s1 + $0x28c] ss:$12 sps:$4 sm:$0xff]  }
 0x106   :  { %8545 = vmatpush3.bf16.msra.mxu1 %v9396_v49  ;;  %1619 = vmatprep.subr.bf16.mxu0 %v9406_v56  ;;  %v9425_v49 = vld [vmem:[%s11696_s1 + $0x270] ss:$12 sps:$4 sm:$0xff]   ;;  %v9428_v56 = vld [vmem:[%s11696_s1 + $0x288] ss:$12 sps:$4 sm:$0xff]  }
 0x107   :  { %8546 = vmatprep.subr.bf16.mxu1 %v9400_v55  ;;  %1113 = vmatmul.mubr.bf16.gmra.mrb[8].mxu0 %v10678_v60 }
 0x108   :  { %8511 = vmatmul.mubr.bf16.gmra.mrb[24].mxu1 %v10684_v61  ;;  %1122 = vmatprep.mubr.bf16.mxu0 %v11705_v0 }
 0x109   :  { %8514 = vmatprep.mubr.bf16.mxu1 %v10694_v63  ;;  %1620 = vmatpush1.bf16.msra.mxu0 %v9404_v57 }
 0x10a   :  { %8547 = vmatpush3.bf16.msra.mxu1 %v9400_v55  ;;  %1621 = vmatprep.subr.bf16.mxu0 %v9412_v59  ;;  %v9431_v59 = vld [vmem:[%s11696_s1 + $0x2a0] ss:$12 sps:$4 sm:$0xff]  }
 0x10b   :  { %8548 = vmatprep.subr.bf16.mxu1 %v9401_v58 }
 0x10d   :  { %1622 = vmatpush1.bf16.msra.mxu0 %v9410_v62  ;;  %v9434_v62 = vld [vmem:[%s11696_s1 + $0x2b8] ss:$12 sps:$4 sm:$0xff]  }
 0x10e   :  { %8549 = vmatpush3.bf16.msra.mxu1 %v9401_v58  ;;  %1623 = vmatprep.subr.bf16.mxu0 %v9415_v2  ;;  %v9433_v58 = vld [vmem:[%s11696_s1 + $0x2a4] ss:$12 sps:$4 sm:$0xff]  }
 0x10f   :  { %8550 = vmatprep.subr.bf16.mxu1 %v9402_v1  ;;  %1123 = vmatmul.mubr.bf16.gmra.mrb[12].mxu0 %v10715_v6  ;;  %v9437_v2 = vld [vmem:[%s11696_s1 + $0x2d0] ss:$12 sps:$4 sm:$0xff]  }
 0x110   :  { %8515 = vmatmul.mubr.bf16.gmra.mrb[28].mxu1 %v10721_v7  ;;  %1132 = vmatprep.mubr.bf16.mxu0 %v11705_v0 }
 0x111   :  { %8518 = vmatprep.mubr.bf16.mxu1 %v10731_v9  ;;  %1624 = vmatpush1.bf16.msra.mxu0 %v9413_v3  ;;  %v9442_v3 = vld [vmem:[%s11696_s1 + $0x2ec] ss:$12 sps:$4 sm:$0xff]  }
 0x112   :  { %8551 = vmatpush3.bf16.msra.mxu1 %v9402_v1  ;;  %1625 = vmatprep.subr.bf16.mxu0 %v9418_v5  ;;  %v9439_v1 = vld [vmem:[%s11696_s1 + $0x2d4] ss:$12 sps:$4 sm:$0xff]   ;;  %v9445_v5 = vld [vmem:[%s11696_s1 + $0x304] ss:$12 sps:$4 sm:$0xff]  }
 0x113   :  { %8552 = vmatprep.subr.bf16.mxu1 %v9403_v4 }
 0x115   :  { %1626 = vmatpush1.bf16.msra.mxu0 %v9416_v8 }
 0x116   :  { %8553 = vmatpush3.bf16.msra.mxu1 %v9403_v4  ;;  %2264 = vmatprep.subr.bf16.mxu0 %v9421_v11  ;;  %v9440_v4 = vld [vmem:[%s11696_s1 + $0x2e8] ss:$12 sps:$4 sm:$0xff]  }
 0x117   :  { %8554 = vmatprep.subr.bf16.mxu1 %v9408_v10  ;;  %1133 = vmatmul.mubr.bf16.gmra.mrb[16].mxu0 %v10746_v13 }
 0x118   :  { %8519 = vmatmul.mubr.bf16.gmra.mrb[32].mxu1 %v10752_v14  ;;  %1142 = vmatprep.mubr.bf16.mxu0 %v11705_v0 }
 0x119   :  { %8522 = vmatprep.mubr.bf16.mxu1 %v10759_v15 }
 0x11a   :  { %8555 = vmatpush3.bf16.msra.mxu1 %v9408_v10 }
 0x11b   :  { %8556 = vmatprep.subr.bf16.mxu1 %v9409_v12 }
 0x11e   :  { %8557 = vmatpush3.bf16.msra.mxu1 %v9409_v12 }
 0x11f   :  { %1143 = vmatmul.mubr.bf16.gmra.mrb[20].mxu0 %v10765_v16 }
 0x120   :  { %8523 = vmatmul.mubr.bf16.gmra.mrb[0].mxu1 %v10771_v17  ;;  %1152 = vmatprep.mubr.bf16.mxu0 %v11705_v0 }
 0x121   :  { %8526 = vmatprep.mubr.bf16.mxu1 %v10778_v18 }
 0x127   :  { %1153 = vmatmul.mubr.bf16.gmra.mrb[24].mxu0 %v10784_v19 }
 0x128   :  { %8527 = vmatmul.mubr.bf16.gmra.mrb[4].mxu1 %v10790_v20  ;;  %1162 = vmatprep.mubr.bf16.mxu0 %v11705_v0 }
 0x129   :  { %8530 = vmatprep.mubr.bf16.mxu1 %v10797_v21 }
 0x12f   :  { %1163 = vmatmul.mubr.bf16.gmra.mrb[28].mxu0 %v10803_v22 }
 0x130   :  { %8531 = vmatmul.mubr.bf16.gmra.mrb[8].mxu1 %v10809_v23  ;;  %1172 = vmatprep.mubr.bf16.mxu0 %v11705_v0 }
 0x131   :  { %8534 = vmatprep.mubr.bf16.mxu1 %v10816_v24 }
 0x137   :  { %1173 = vmatmul.mubr.bf16.gmra.mrb[32].mxu0 %v10822_v25 }
 0x138   :  { %8535 = vmatmul.mubr.bf16.gmra.mrb[12].mxu1 %v10828_v26  ;;  %1182 = vmatprep.mubr.bf16.mxu0 %v11705_v0 }
 0x139   :  { %8538 = vmatprep.mubr.bf16.mxu1 %v10835_v27 }
 0x13b   :  { %v8384_v28 = vpop.f32.mrb[16].mxu1 }
 0x13c   :  { %v811_v41 = vpop.f32.mrb[17].mxu1 }
 0x13d   :  { %v8385_v44 = vpop.f32.mrb[18].mxu1 }
 0x13e   :  { %v814_v46 = vpop.f32.mrb[19].mxu1 }
 0x13f   :  { %1183 = vmatmul.mubr.bf16.gmra.mrb[36].mxu0 %v10846_v30 }
 0x140   :  { %8539 = vmatmul.mubr.bf16.gmra.mrb[44].mxu1 %v10841_v29  ;;  %1192 = vmatprep.mubr.bf16.mxu0 %v11705_v0 }
 0x141   :  { %8558 = vmatprep.mubr.bf16.mxu1 %v10678_v60 }
 0x147   :  { %1193 = vmatmul.mubr.bf16.gmra.mrb[40].mxu0 %v10855_v31 }
 0x148   :  { %8559 = vmatmul.mubr.bf16.vlgmr.msra.gmra.mrb[20].mxu1 %v10715_v6  ;;  %1202 = vmatprep.mubr.bf16.mxu0 %v11705_v0 }
 0x149   :  { %8562 = vmatprep.mubr.bf16.mxu1 %v10746_v13 }
 0x14f   :  { %1203 = vmatmul.mubr.bf16.gmra.mrb[44].mxu0 %v10864_v32 }
 0x150   :  { %8563 = vmatmul.mubr.bf16.gmra.mrb[24].mxu1 %v10765_v16  ;;  %1212 = vmatprep.mubr.bf16.mxu0 %v11705_v0 }
 0x151   :  { %8566 = vmatprep.mubr.bf16.mxu1 %v10784_v19 }
 0x157   :  { %1213 = vmatmul.mubr.bf16.gmra.mrb[48].mxu0 %v10873_v33 }
 0x158   :  { %8567 = vmatmul.mubr.bf16.gmra.mrb[28].mxu1 %v10803_v22  ;;  %1222 = vmatprep.mubr.bf16.mxu0 %v11705_v0 }
 0x159   :  { %8570 = vmatprep.mubr.bf16.mxu1 %v10822_v25 }
 0x15f   :  { %1223 = vmatmul.mubr.bf16.gmra.mrb[52].mxu0 %v10882_v34 }
 0x160   :  { %8571 = vmatmul.mubr.bf16.gmra.mrb[32].mxu1 %v10846_v30  ;;  %1232 = vmatprep.mubr.bf16.mxu0 %v11705_v0 }
 0x161   :  { %8574 = vmatprep.mubr.bf16.mxu1 %v10855_v31 }
 0x167   :  { %1233 = vmatmul.mubr.bf16.gmra.mrb[56].mxu0 %v10891_v35 }
 0x168   :  { %8575 = vmatmul.mubr.bf16.gmra.mrb[0].mxu1 %v10864_v32  ;;  %1242 = vmatprep.mubr.bf16.mxu0 %v11705_v0 }
 0x169   :  { %8578 = vmatprep.mubr.bf16.mxu1 %v10873_v33 }
 0x16f   :  { %1243 = vmatmul.mubr.bf16.gmra.mrb[60].mxu0 %v10900_v36 }
 0x170   :  { %8579 = vmatmul.mubr.bf16.gmra.mrb[4].mxu1 %v10882_v34  ;;  %1252 = vmatprep.mubr.bf16.mxu0 %v11705_v0 }
 0x171   :  { %8582 = vmatprep.mubr.bf16.mxu1 %v10891_v35 }
 0x177   :  { %1253 = vmatmul.mubr.bf16.gmra.mrb[64].mxu0 %v10909_v37 }
 0x178   :  { %8583 = vmatmul.mubr.bf16.gmra.mrb[8].mxu1 %v10900_v36  ;;  %1262 = vmatprep.mubr.bf16.mxu0 %v11705_v0 }
 0x179   :  { %8586 = vmatprep.mubr.bf16.mxu1 %v10909_v37 }
 0x17f   :  { %1263 = vmatmul.mubr.bf16.gmra.mrb[88].mxu0 %v10918_v38 }
 0x180   :  { %8587 = vmatmul.mubr.bf16.gmra.mrb[12].mxu1 %v10918_v38  ;;  %1643 = vmatprep.mubr.bf16.mxu0 %v11705_v0 }
 0x181   :  { %8590 = vmatprep.mubr.bf16.mxu1 %v10609_v42 }
 0x183   :  { %v8436_v47 = vpop.f32.mrb[36].mxu1 }
 0x184   :  { %v1431_v48 = vpop.f32.mrb[37].mxu1  ;;  %v11007_v47 = vld [vmem:[%s11695_s0 + $0x130] sm:$0xff]  }
 0x185   :  { %v10941_v50 = vadd.f32 %v1431_v48, %v811_v41  ;;  %11717 = vst [vmem:[#allocation9_spill] sm:$0xff] %v11007_v47 }
 0x187   :  { %1644 = vmatmul.mubr.bf16.vlgmr.msra.gmra.mrb[0].mxu0 %v10640_v51  ;;  %v8437_v51 = vpop.f32.mrb[38].mxu1 }
 0x188   :  { %2265 = vmatpush1.bf16.msra.mxu0 %v9419_v39  ;;  %1653 = vmatprep.mubr.bf16.mxu0 %v11705_v0  ;;  %v1434_v55 = vpop.f32.mrb[39].mxu1 }
 0x189   :  { %2266 = vmatprep.subr.bf16.mxu0 %v9424_v40  ;;  %v1435_v57 = vadd.f32 %v1434_v55, %v814_v46  ;;  %8591 = vmatmul.mubr.bf16.gmra.mrb[48].mxu1 %v11007_v47 }
 0x18c   :  { %2267 = vmatpush1.bf16.msra.mxu0 %v9422_v43 }
 0x18d   :  { %2268 = vmatprep.subr.bf16.mxu0 %v9427_v45 }
 0x18f   :  { %1654 = vmatmul.mubr.bf16.gmra.mrb[4].mxu0 %v10678_v60  ;;  %v9436_v60 = vld [vmem:[%s11696_s1 + $0x2bc] ss:$12 sps:$4 sm:$0xff]  }
 0x190   :  { %1663 = vmatprep.mubr.bf16.mxu0 %v11705_v0  ;;  %2269 = vmatpush1.bf16.msra.mxu0 %v9425_v49 }
 0x191   :  { %2270 = vmatprep.subr.bf16.mxu0 %v9430_v53 }
 0x194   :  { %2271 = vmatpush1.bf16.msra.mxu0 %v9428_v56 }
 0x195   :  { %2272 = vmatprep.subr.bf16.mxu0 %v9433_v58 }
 0x197   :  { %1664 = vmatmul.mubr.bf16.gmra.mrb[8].mxu0 %v10715_v6 }
 0x198   :  { %1673 = vmatprep.mubr.bf16.mxu0 %v11705_v0  ;;  %2273 = vmatpush1.bf16.msra.mxu0 %v9431_v59 }
 0x199   :  { %2274 = vmatprep.subr.bf16.mxu0 %v9436_v60 }
 0x19c   :  { %2275 = vmatpush1.bf16.msra.mxu0 %v9434_v62 }
 0x19d   :  { %2276 = vmatprep.subr.bf16.mxu0 %v9439_v1 }
 0x19f   :  { %1674 = vmatmul.mubr.bf16.gmra.mrb[12].mxu0 %v10746_v13 }
 0x1a0   :  { %1683 = vmatprep.mubr.bf16.mxu0 %v11705_v0  ;;  %2277 = vmatpush1.bf16.msra.mxu0 %v9437_v2 }
 0x1a1   :  { %2278 = vmatprep.subr.bf16.mxu0 %v9442_v3 }
 0x1a2   :  { %v644_v8 = vpop.f32.mrb[68].mxu0 }
 0x1a3   :  { %v645_v10 = vpop.f32.mrb[69].mxu0 }
 0x1a4   :  { %v646_v11 = vpop.f32.mrb[70].mxu0  ;;  %2279 = vmatpush1.bf16.msra.mxu0 %v9440_v4 }
 0x1a5   :  { %v647_v12 = vpop.f32.mrb[71].mxu0  ;;  %2917 = vmatprep.subr.bf16.mxu0 %v9445_v5  ;;  %v9443_v11 = vld [vmem:[%s11696_s1 + $0x300] ss:$12 sps:$4 sm:$0xff]  }
 0x1a7   :  { %1684 = vmatmul.mubr.bf16.gmra.mrb[16].mxu0 %v10765_v16 }
 0x1a8   :  { %1693 = vmatprep.mubr.bf16.mxu0 %v11705_v0 }
 0x1aa   :  { %v10984_v28 = vpop.f32.mrb[72].mxu0 }
 0x1ab   :  { %v10986_v39 = vpop.f32.mrb[73].mxu0 }
 0x1ac   :  { %v10988_v40 = vpop.f32.mrb[74].mxu0 }
 0x1ad   :  { %v10990_v41 = vpop.f32.mrb[75].mxu0 }
 0x1af   :  { %1694 = vmatmul.mubr.bf16.gmra.mrb[20].mxu0 %v10784_v19 }
 0x1b0   :  { %1703 = vmatprep.mubr.bf16.mxu0 %v11705_v0 }
 0x1b2   :  { %v10994_v43 = vpop.f32.mrb[76].mxu0 }
 0x1b3   :  { %v10996_v44 = vpop.f32.mrb[77].mxu0 }
 0x1b4   :  { %v10998_v45 = vpop.f32.mrb[78].mxu0 }
 0x1b5   :  { %v11000_v46 = vpop.f32.mrb[79].mxu0 }
 0x1b7   :  { %1704 = vmatmul.mubr.bf16.gmra.mrb[24].mxu0 %v10803_v22 }
 0x1b8   :  { %1713 = vmatprep.mubr.bf16.mxu0 %v11705_v0 }
 0x1ba   :  { %v11009_v48 = vpop.f32.mrb[80].mxu0 }
 0x1bb   :  { %v11012_v49 = vpop.f32.mrb[81].mxu0 }
 0x1bc   :  { %v11014_v51 = vpop.f32.mrb[82].mxu0 }
 0x1bd   :  { %v11016_v53 = vpop.f32.mrb[83].mxu0 }
 0x1bf   :  { %1714 = vmatmul.mubr.bf16.gmra.mrb[28].mxu0 %v10822_v25 }
 0x1c0   :  { %1723 = vmatprep.mubr.bf16.mxu0 %v11705_v0 }
 0x1c2   :  { %v11020_v55 = vpop.f32.mrb[84].mxu0 }
 0x1c3   :  { %v11022_v56 = vpop.f32.mrb[85].mxu0 }
 0x1c4   :  { %v11024_v58 = vpop.f32.mrb[86].mxu0 }
 0x1c5   :  { %v11026_v59 = vpop.f32.mrb[87].mxu0 }
 0x1c7   :  { %1724 = vmatmul.mubr.bf16.gmra.mrb[32].mxu0 %v10846_v30 }
 0x1c8   :  { %1733 = vmatprep.mubr.bf16.mxu0 %v11705_v0 }
 0x1cb   :  { %v8488_v60 = vpop.f32.mrb[40].mxu1 }
 0x1cc   :  { %v1982_v62 = vpop.f32.mrb[41].mxu1 }
 0x1cd   :  { %v2093_v1 = vadd.f32 %v1982_v62, %v10941_v50  ;;  %v8489_v2 = vpop.f32.mrb[42].mxu1  ;;  %v3405_v50 = vlaneseq }
 0x1ce   :  { %v1985_v3 = vpop.f32.mrb[43].mxu1 }
 0x1cf   :  { %v2096_v4 = vadd.f32 %v1985_v3, %v1435_v57  ;;  %1734 = vmatmul.mubr.bf16.gmra.mrb[36].mxu0 %v10855_v31  ;;  %v11049_v57 = vshrl.u32 %v3405_v50, 7  ;;  %v11065_v3 = vld [vmem:[%s11697_s2] sm:$0x7]  ;;  %v9446_v50 = vld [vmem:[%s11696_s1 + $0x318] ss:$12 sps:$4 sm:$0xff]  }
 0x1d0   :  { %1743 = vmatprep.mubr.bf16.mxu0 %v11705_v0  ;;  %11719 = vst [vmem:[#allocation11_spill] sm:$0xff] %v11065_v3 }
 0x1d1   :  { %11718 = vst [vmem:[#allocation10_spill] sm:$0xff] %v11049_v57  ;;  %v3415_v62 = vsub.s32 2, %v11049_v57  ;;  %v9455_v57 = vld [vmem:[%s11696_s1 + $0x34c] ss:$12 sps:$4 sm:$0xff]  }
 0x1d7   :  { %1744 = vmatmul.mubr.bf16.gmra.mrb[40].mxu0 %v10864_v32 }
 0x1d8   :  { %1753 = vmatprep.mubr.bf16.mxu0 %v11705_v0 }
 0x1df   :  { %1754 = vmatmul.mubr.bf16.gmra.mrb[44].mxu0 %v10873_v33 }
 0x1e0   :  { %1763 = vmatprep.mubr.bf16.mxu0 %v11705_v0 }
 0x1e7   :  { %1764 = vmatmul.mubr.bf16.gmra.mrb[48].mxu0 %v10882_v34 }
 0x1e8   :  { %1773 = vmatprep.mubr.bf16.mxu0 %v11705_v0 }
 0x1ef   :  { %1774 = vmatmul.mubr.bf16.gmra.mrb[52].mxu0 %v10891_v35 }
 0x1f0   :  { %1783 = vmatprep.mubr.bf16.mxu0 %v11705_v0 }
 0x1f7   :  { %1784 = vmatmul.mubr.bf16.gmra.mrb[56].mxu0 %v10900_v36 }
 0x1f8   :  { %1793 = vmatprep.mubr.bf16.mxu0 %v11705_v0 }
 0x1ff   :  { %1794 = vmatmul.mubr.bf16.gmra.mrb[60].mxu0 %v10909_v37 }
 0x200   :  { %1803 = vmatprep.mubr.bf16.mxu0 %v11705_v0 }
 0x207   :  { %1804 = vmatmul.mubr.bf16.gmra.mrb[64].mxu0 %v10918_v38 }
 0x208   :  { %1813 = vmatprep.mubr.bf16.mxu0 %v11705_v0 }
 0x20f   :  { %1814 = vmatmul.mubr.bf16.gmra.mrb[92].mxu0 %v10609_v42  ;;  %v9448_v42 = vld [vmem:[%s11696_s1 + $0x31c] ss:$12 sps:$4 sm:$0xff]  }
 0x210   :  { %2296 = vmatprep.mubr.bf16.mxu0 %v11705_v0 }
 0x213   :  { %v8540_v5 = vpop.f32.mrb[44].mxu1 }
 0x214   :  { %v2635_v8 = vpop.f32.mrb[45].mxu1  ;;  %v9452_v5 = vld [vmem:[%s11696_s1 + $0x334] ss:$12 sps:$4 sm:$0xff]  }
 0x215   :  { %v11051_v10 = vadd.f32 %v2635_v8, %v2093_v1  ;;  %v8541_v12 = vpop.f32.mrb[46].mxu1  ;;  %v9960_v1 = vld [vmem:[%s11695_s0 + $0x18] sm:$0xff]  }
 0x216   :  { %v2638_v60 = vpop.f32.mrb[47].mxu1 }
 0x217   :  { %v11060_v2 = vadd.f32 %v2638_v60, %v2096_v4  ;;  %2297 = vmatmul.mubr.bf16.vlgmr.msra.gmra.mrb[0].mxu0 %v9960_v1  ;;  %v11075_v4 = vrot.slane %v11065_v3, %v3415_v62 }
 0x218   :  { %2918 = vmatpush1.bf16.msra.mxu0 %v9443_v11  ;;  %2306 = vmatprep.mubr.bf16.mxu0 %v11705_v0  ;;  %v9450_v0 = vld [vmem:[%s11696_s1 + $0x330] ss:$12 sps:$4 sm:$0xff]  }
 0x219   :  { %2919 = vmatprep.subr.bf16.mxu0 %v9448_v42 }
 0x21b   :  { %v8560_v8 = vpop.f32.mrb[20].mxu1 }
 0x21c   :  { %v8610_v12 = vadd.f32 %v8560_v8, %v10984_v28  ;;  %v3160_v60 = vpop.f32.mrb[21].mxu1  ;;  %2920 = vmatpush1.bf16.msra.mxu0 %v9446_v50 }
 0x21d   :  { %v8611_v11 = vadd.f32 %v3160_v60, %v10986_v39  ;;  %v8561_v1 = vpop.f32.mrb[22].mxu1  ;;  %2921 = vmatprep.subr.bf16.mxu0 %v9452_v5  ;;  %v11720_v60 = vmov 0  }
 0x21e   :  { %v3428_v62 = vadd.f32 %v8610_v12, %v11075_v4  ;;  %v8612_v42 = vadd.f32 %v8561_v1, %v10988_v40  ;;  %v3163_v3 = vpop.f32.mrb[23].mxu1  ;;  %v9453_v40 = vld [vmem:[%s11696_s1 + $0x348] ss:$12 sps:$4 sm:$0xff]  }
 0x21f   :  { %v3422_v28 = vadd.f32 %v8611_v11, %v11075_v4  ;;  %v8613_v39 = vadd.f32 %v3163_v3, %v10990_v41  ;;  %2307 = vmatmul.mubr.bf16.gmra.mrb[4].mxu0 %v10646_v52  ;;  %v9458_v41 = vld [vmem:[%s11696_s1 + $0x364] ss:$12 sps:$4 sm:$0xff]  }
 0x220   :  { %v3431_v50 = vadd.f32 %v8612_v42, %v11075_v4  ;;  %2316 = vmatprep.mubr.bf16.mxu0 %v11720_v60  ;;  %2922 = vmatpush1.bf16.msra.mxu0 %v9450_v0  ;;  %v3530_v5 = vmax.f32 %v3428_v62, 0.0 }
 0x221   :  { %v3425_v8 = vadd.f32 %v8613_v39, %v11075_v4  ;;  %2923 = vmatprep.subr.bf16.mxu0 %v9455_v57  ;;  %v3524_v3 = vmax.f32 %v3422_v28, 0.0  ;;  %v9456_v57 = vld [vmem:[%s11696_s1 + $0x360] ss:$12 sps:$4 sm:$0xff]  }
 0x222   :  { %v3533_v12 = vmax.f32 %v3431_v50, 0.0 }
 0x223   :  { %v3527_v11 = vmax.f32 %v3425_v8, 0.0  ;;  %v8564_v1 = vpop.f32.mrb[24].mxu1 }
 0x224   :  { %v11102_v52 = vpack.c.bf16 %v3533_v12, %v3530_v5  ;;  %v8614_v42 = vadd.f32 %v8564_v1, %v10994_v43  ;;  %v3176_v39 = vpop.f32.mrb[25].mxu1  ;;  %2924 = vmatpush1.bf16.msra.mxu0 %v9453_v40  ;;  %v9461_v43 = vld [vmem:[%s11696_s1 + $0x37c] ss:$12 sps:$4 sm:$0xff]  }
 0x225   :  { %v11105_v0 = vpack.c.bf16 %v3527_v11, %v3524_v3  ;;  %v8615_v47 = vadd.f32 %v3176_v39, %v10996_v44  ;;  %v8565_v38 = vpop.f32.mrb[26].mxu1  ;;  %2925 = vmatprep.subr.bf16.mxu0 %v9458_v41 }
 0x226   :  { %v3440_v62 = vadd.f32 %v8614_v42, %v11075_v4  ;;  %v8616_v28 = vadd.f32 %v8565_v38, %v10998_v45  ;;  %v3179_v50 = vpop.f32.mrb[27].mxu1  ;;  %v9459_v38 = vld [vmem:[%s11696_s1 + $0x378] ss:$12 sps:$4 sm:$0xff]  }
 0x227   :  { %v3434_v8 = vadd.f32 %v8615_v47, %v11075_v4  ;;  %v8617_v44 = vadd.f32 %v3179_v50, %v11000_v46  ;;  %2317 = vmatmul.mubr.bf16.gmra.mrb[8].mxu0 %v10656_v54  ;;  %v9464_v46 = vld [vmem:[%s11696_s1 + $0x394] ss:$12 sps:$4 sm:$0xff]  }
 0x228   :  { %v3443_v40 = vadd.f32 %v8616_v28, %v11075_v4  ;;  %2326 = vmatprep.mubr.bf16.mxu0 %v11720_v60  ;;  %2926 = vmatpush1.bf16.msra.mxu0 %v9456_v57  ;;  %v3542_v45 = vmax.f32 %v3440_v62, 0.0  ;;  %v9462_v57 = vld [vmem:[%s11696_s1 + $0x390] ss:$12 sps:$4 sm:$0xff]  }
 0x229   :  { %v3437_v5 = vadd.f32 %v8617_v44, %v11075_v4  ;;  %2927 = vmatprep.subr.bf16.mxu0 %v9461_v43  ;;  %v3536_v47 = vmax.f32 %v3434_v8, 0.0 }
 0x22a   :  { %v3545_v12 = vmax.f32 %v3443_v40, 0.0 }
 0x22b   :  { %v3539_v41 = vmax.f32 %v3437_v5, 0.0  ;;  %v8568_v3 = vpop.f32.mrb[28].mxu1 }
 0x22c   :  { %v8618_v54 = vadd.f32 %v8568_v3, %v11009_v48  ;;  %v3192_v11 = vpop.f32.mrb[29].mxu1  ;;  %v11129_v1 = vpack.c.bf16 %v3545_v12, %v3542_v45  ;;  %2928 = vmatpush1.bf16.msra.mxu0 %v9459_v38  ;;  %v9467_v48 = vld [vmem:[%s11696_s1 + $0x3ac] ss:$12 sps:$4 sm:$0xff]  }
 0x22d   :  { %v8619_v42 = vadd.f32 %v3192_v11, %v11012_v49  ;;  %v8569_v39 = vpop.f32.mrb[30].mxu1  ;;  %v11135_v62 = vpack.c.bf16 %v3539_v41, %v3536_v47  ;;  %2929 = vmatprep.subr.bf16.mxu0 %v9464_v46 }
 0x22e   :  { %v3452_v28 = vadd.f32 %v8618_v54, %v11075_v4  ;;  %v8620_v50 = vadd.f32 %v8569_v39, %v11014_v51  ;;  %v3195_v43 = vpop.f32.mrb[31].mxu1  ;;  %v9465_v51 = vld [vmem:[%s11696_s1 + $0x3a8] ss:$12 sps:$4 sm:$0xff]  }
 0x22f   :  { %v3446_v49 = vadd.f32 %v8619_v42, %v11075_v4  ;;  %v8621_v8 = vadd.f32 %v3195_v43, %v11016_v53  ;;  %2327 = vmatmul.mubr.bf16.gmra.mrb[12].mxu0 %v10684_v61 }
 0x230   :  { %v3455_v44 = vadd.f32 %v8620_v50, %v11075_v4  ;;  %2336 = vmatprep.mubr.bf16.mxu0 %v11720_v60  ;;  %2930 = vmatpush1.bf16.msra.mxu0 %v9462_v57  ;;  %v3554_v5 = vmax.f32 %v3452_v28, 0.0 }
 0x231   :  { %v3449_v40 = vadd.f32 %v8621_v8, %v11075_v4  ;;  %2931 = vmatprep.subr.bf16.mxu0 %v9467_v48  ;;  %v3548_v45 = vmax.f32 %v3446_v49, 0.0 }
 0x232   :  { %v3557_v38 = vmax.f32 %v3455_v44, 0.0 }
 0x233   :  { %v3551_v12 = vmax.f32 %v3449_v40, 0.0  ;;  %v8572_v46 = vpop.f32.mrb[32].mxu1 }
 0x234   :  { %v8622_v53 = vadd.f32 %v8572_v46, %v11020_v55  ;;  %v3208_v47 = vpop.f32.mrb[33].mxu1  ;;  %v11152_v41 = vpack.c.bf16 %v3557_v38, %v3554_v5  ;;  %2932 = vmatpush1.bf16.msra.mxu0 %v9465_v51 }
 0x235   :  { %v8623_v61 = vadd.f32 %v3208_v47, %v11022_v56  ;;  %v8573_v3 = vpop.f32.mrb[34].mxu1  ;;  %v11155_v54 = vpack.c.bf16 %v3551_v12, %v3548_v45 }
 0x236   :  { %v3464_v11 = vadd.f32 %v8622_v53, %v11075_v4  ;;  %v8624_v42 = vadd.f32 %v8573_v3, %v11024_v58  ;;  %v3211_v39 = vpop.f32.mrb[35].mxu1 }
 0x237   :  { %v3458_v57 = vadd.f32 %v8623_v61, %v11075_v4  ;;  %v8625_v28 = vadd.f32 %v3211_v39, %v11026_v59  ;;  %2337 = vmatmul.mubr.bf16.gmra.mrb[16].mxu0 %v10694_v63 }
 0x238   :  { %v3467_v55 = vadd.f32 %v8624_v42, %v11075_v4  ;;  %2346 = vmatprep.mubr.bf16.mxu0 %v11720_v60  ;;  %v3566_v56 = vmax.f32 %v3464_v11, 0.0 }
 0x239   :  { %v3461_v50 = vadd.f32 %v8625_v28, %v11075_v4  ;;  %v3560_v48 = vmax.f32 %v3458_v57, 0.0 }
 0x23a   :  { %v3569_v43 = vmax.f32 %v3467_v55, 0.0 }
 0x23b   :  { %v3563_v49 = vmax.f32 %v3461_v50, 0.0 }
 0x23c   :  { %v11165_v8 = vpack.c.bf16 %v3569_v43, %v3566_v56 }
 0x23d   :  { %v11167_v58 = vpack.c.bf16 %v3563_v49, %v3560_v48 }
 0x23f   :  { %2347 = vmatmul.mubr.bf16.gmra.mrb[20].mxu0 %v10721_v7  ;;  %v8576_v7 = vpop.f32.mrb[0].mxu1 }
 0x240   :  { %2356 = vmatprep.mubr.bf16.mxu0 %v11720_v60 }
 0x247   :  { %2357 = vmatmul.mubr.bf16.gmra.mrb[24].mxu0 %v10731_v9  ;;  %v3476_v9 = vadd.f32 %v8576_v7, %v11075_v4 }
 0x248   :  { %2366 = vmatprep.mubr.bf16.mxu0 %v11720_v60 }
 0x249   :  { %v3578_v38 = vmax.f32 %v3476_v9, 0.0 }
 0x24f   :  { %2367 = vmatmul.mubr.bf16.gmra.mrb[28].mxu0 %v10752_v14  ;;  %v3224_v14 = vpop.f32.mrb[1].mxu1 }
 0x250   :  { %2376 = vmatprep.mubr.bf16.mxu0 %v11720_v60  ;;  %v3470_v51 = vadd.f32 %v11075_v4, %v3224_v14  ;;  %v8577_v5 = vpop.f32.mrb[2].mxu1 }
 0x251   :  { %v3227_v45 = vpop.f32.mrb[3].mxu1 }
 0x252   :  { %v1264_v63 = vpop.f32.mrb[88].mxu0  ;;  %v3572_v12 = vmax.f32 %v3470_v51, 0.0  ;;  %v8580_v61 = vpop.f32.mrb[4].mxu1 }
 0x253   :  { %v1265_v59 = vpop.f32.mrb[89].mxu0  ;;  %v3488_v3 = vadd.f32 %v8580_v61, %v11075_v4  ;;  %v3240_v11 = vpop.f32.mrb[5].mxu1 }
 0x254   :  { %v1266_v44 = vpop.f32.mrb[90].mxu0  ;;  %v3482_v42 = vadd.f32 %v11075_v4, %v3240_v11  ;;  %v8581_v39 = vpop.f32.mrb[6].mxu1 }
 0x255   :  { %v1267_v40 = vpop.f32.mrb[91].mxu0  ;;  %v3590_v57 = vmax.f32 %v3488_v3, 0.0  ;;  %v3491_v28 = vadd.f32 %v8581_v39, %v11075_v4  ;;  %v3243_v55 = vpop.f32.mrb[7].mxu1 }
 0x256   :  { %v3584_v50 = vmax.f32 %v3482_v42, 0.0  ;;  %v3485_v56 = vadd.f32 %v11075_v4, %v3243_v55  ;;  %v8584_v63 = vpop.f32.mrb[8].mxu1 }
 0x257   :  { %2377 = vmatmul.mubr.bf16.gmra.mrb[32].mxu0 %v10759_v15  ;;  %v3479_v15 = vadd.f32 %v8577_v5, %v11075_v4  ;;  %v3593_v43 = vmax.f32 %v3491_v28, 0.0  ;;  %v3500_v59 = vadd.f32 %v8584_v63, %v11075_v4  ;;  %v3256_v44 = vpop.f32.mrb[9].mxu1 }
 0x258   :  { %2386 = vmatprep.mubr.bf16.mxu0 %v11720_v60  ;;  %v3494_v40 = vadd.f32 %v11075_v4, %v3256_v44  ;;  %v8585_v7 = vpop.f32.mrb[10].mxu1 }
 0x259   :  { %v3581_v46 = vmax.f32 %v3479_v15, 0.0  ;;  %v11195_v48 = vpack.c.bf16 %v3593_v43, %v3590_v57  ;;  %v3602_v9 = vmax.f32 %v3500_v59, 0.0  ;;  %v3503_v14 = vadd.f32 %v8585_v7, %v11075_v4  ;;  %v3259_v51 = vpop.f32.mrb[11].mxu1 }
 0x25a   :  { %v3596_v5 = vmax.f32 %v3494_v40, 0.0 }
 0x25b   :  { %v11185_v47 = vpack.c.bf16 %v3581_v46, %v3578_v38  ;;  %v3497_v38 = vadd.f32 %v11075_v4, %v3259_v51  ;;  %v3605_v15 = vmax.f32 %v3503_v14, 0.0 }
 0x25f   :  { %2387 = vmatmul.mubr.bf16.gmra.mrb[36].mxu0 %v10771_v17  ;;  %v3473_v17 = vadd.f32 %v11075_v4, %v3227_v45  ;;  %v11205_v45 = vpack.c.bf16 %v3605_v15, %v3602_v9  ;;  %v9477_v15 = vld [vmem:[#allocation2 + $0x1b0] ss:$8 sps:$4 sm:$0xff]  }
 0x260   :  { %2396 = vmatprep.mubr.bf16.mxu0 %v11720_v60 }
 0x261   :  { %v3575_v53 = vmax.f32 %v3473_v17, 0.0  ;;  %v8588_v17 = vpop.f32.mrb[12].mxu1 }
 0x262   :  { %v3512_v46 = vadd.f32 %v8588_v17, %v11075_v4  ;;  %v9480_v17 = vld [vmem:[#allocation2 + $0x1c0] ss:$8 sps:$4 sm:$0xff]  }
 0x264   :  { %v3614_v11 = vmax.f32 %v3512_v46, 0.0  ;;  %v9485_v46 = vld [vmem:[#allocation2 + $0x1d4] ss:$8 sps:$4 sm:$0xff]  }
 0x267   :  { %2397 = vmatmul.mubr.bf16.gmra.mrb[40].mxu0 %v10778_v18  ;;  %v11188_v18 = vpack.c.bf16 %v3575_v53, %v3572_v12  ;;  %v3272_v53 = vpop.f32.mrb[13].mxu1 }
 0x268   :  { %2406 = vmatprep.mubr.bf16.mxu0 %v11720_v60  ;;  %v3506_v61 = vadd.f32 %v11075_v4, %v3272_v53  ;;  %v8589_v3 = vpop.f32.mrb[14].mxu1  ;;  %v9483_v53 = vld [vmem:[#allocation2 + $0x1d0] ss:$8 sps:$4 sm:$0xff]  }
 0x269   :  { %v3515_v42 = vadd.f32 %v8589_v3, %v11075_v4  ;;  %v3275_v39 = vpop.f32.mrb[15].mxu1  ;;  %v9491_v3 = vld [vmem:[#allocation2 + $0x1f4] ss:$8 sps:$4 sm:$0xff]  }
 0x26a   :  { %v3608_v57 = vmax.f32 %v3506_v61, 0.0  ;;  %v3509_v28 = vadd.f32 %v11075_v4, %v3275_v39  ;;  %v8592_v43 = vpop.f32.mrb[48].mxu1  ;;  %v9486_v61 = vld [vmem:[#allocation2 + $0x1e0] ss:$8 sps:$4 sm:$0xff]   ;;  %v9497_v39 = vld [vmem:[#allocation2 + $0x214] ss:$8 sps:$4 sm:$0xff]  }
 0x26b   :  { %v3617_v55 = vmax.f32 %v3515_v42, 0.0  ;;  %v9492_v42 = vld [vmem:[#allocation2 + $0x200] ss:$8 sps:$4 sm:$0xff]   ;;  %v9506_v43 = vld [vmem:[#allocation2 + $0x244] ss:$8 sps:$4 sm:$0xff]  }
 0x26f   :  { %2407 = vmatmul.mubr.bf16.gmra.mrb[44].mxu0 %v10790_v20  ;;  %v3587_v20 = vmax.f32 %v3485_v56, 0.0 }
 0x270   :  { %2416 = vmatprep.mubr.bf16.mxu0 %v11720_v60 }
 0x271   :  { %v11198_v49 = vpack.c.bf16 %v3587_v20, %v3584_v50  ;;  %v11215_v50 = vpack.c.bf16 %v3617_v55, %v3614_v11  ;;  %v3288_v20 = vpop.f32.mrb[49].mxu1  ;;  %v9489_v11 = vld [vmem:[#allocation2 + $0x1f0] ss:$8 sps:$4 sm:$0xff]  }
 0x272   :  { %v3399_v63 = vadd.f32 %v3288_v20, %v11051_v10  ;;  %v8593_v59 = vpop.f32.mrb[50].mxu1  ;;  %v9468_v10 = vld [vmem:[#allocation2 + $0x180] ss:$8 sps:$4 sm:$0xff]   ;;  %v9507_v20 = vld [vmem:[#allocation2 + $0x250] ss:$8 sps:$4 sm:$0xff]  }
 0x273   :  { %11721 = vst [vmem:[#allocation12_spill] sm:$0xff] %v11215_v50  ;;  %v3291_v44 = vpop.f32.mrb[51].mxu1  ;;  %v9510_v59 = vld [vmem:[#allocation2 + $0x260] ss:$8 sps:$4 sm:$0xff]  }
 0x274   :  { %v3402_v40 = vadd.f32 %v3291_v44, %v11060_v2  ;;  %v3518_v7 = vadd.f32 %v11075_v4, %v3399_v63  ;;  %v9470_v2 = vld [vmem:[#allocation2 + $0x184] ss:$8 sps:$4 sm:$0xff]   ;;  %v9513_v44 = vld [vmem:[#allocation2 + $0x270] ss:$8 sps:$4 sm:$0xff]  }
 0x275   :  { %4012 = vmatprep.subr.bf16.mxu1 %v9470_v2  ;;  %v9512_v63 = vld [vmem:[#allocation2 + $0x264] ss:$8 sps:$4 sm:$0xff]   ;;  %v11726_v2 = vld [vmem:[#allocation11_spill] sm:$0xff] }
 0x276   :  { %v3620_v9 = vmax.f32 %v3518_v7, 0.0  ;;  %4013 = vmatpush1.bf16.msra.mxu1 %v9468_v10 }
 0x277   :  { %2417 = vmatmul.mubr.bf16.gmra.mrb[48].mxu0 %v10797_v21  ;;  %v3599_v21 = vmax.f32 %v3497_v38, 0.0  ;;  %v9474_v38 = vld [vmem:[#allocation2 + $0x1a0] ss:$8 sps:$4 sm:$0xff]  }
 0x278   :  { %2426 = vmatprep.mubr.bf16.mxu0 %v11720_v60 }
 0x279   :  { %v11208_v12 = vpack.c.bf16 %v3599_v21, %v3596_v5  ;;  %v9476_v5 = vld [vmem:[#allocation2 + $0x1a4] ss:$8 sps:$4 sm:$0xff]  }
 0x27a   :  { %v9482_v21 = vld [vmem:[#allocation2 + $0x1c4] ss:$8 sps:$4 sm:$0xff]  }
 0x27f   :  { %2427 = vmatmul.mubr.bf16.gmra.mrb[52].mxu0 %v10809_v23  ;;  %v3611_v23 = vmax.f32 %v3509_v28, 0.0 }
 0x280   :  { %2436 = vmatprep.mubr.bf16.mxu0 %v11720_v60 }
 0x281   :  { %v11218_v56 = vpack.c.bf16 %v3611_v23, %v3608_v57  ;;  %v9495_v57 = vld [vmem:[#allocation2 + $0x210] ss:$8 sps:$4 sm:$0xff]   ;;  %v9503_v23 = vld [vmem:[#allocation2 + $0x234] ss:$8 sps:$4 sm:$0xff]  }
 0x287   :  { %2437 = vmatmul.mubr.bf16.gmra.mrb[56].mxu0 %v10816_v24  ;;  %v3521_v24 = vadd.f32 %v11075_v4, %v3402_v40  ;;  %v9471_v4 = vld [vmem:[#allocation2 + $0x190] ss:$8 sps:$4 sm:$0xff]   ;;  %v11724_v40 = vld [vmem:[#allocation9_spill] sm:$0xff] }
 0x288   :  { %2446 = vmatprep.mubr.bf16.mxu0 %v11720_v60 }
 0x289   :  { %v3623_v14 = vmax.f32 %v3521_v24, 0.0 }
 0x28b   :  { %v11229_v51 = vpack.c.bf16 %v3623_v14, %v3620_v9 }
 0x28d   :  { %11722 = vst [vmem:[#allocation13_spill] sm:$0xff] %v11229_v51 }
 0x28f   :  { %2447 = vmatmul.mubr.bf16.gmra.mrb[60].mxu0 %v10828_v26  ;;  %v9961_v26 = vld [vmem:[%s11695_s0 + $0x20] sm:$0xff]  }
 0x290   :  { %2456 = vmatprep.mubr.bf16.mxu0 %v11720_v60 }
 0x297   :  { %2457 = vmatmul.mubr.bf16.gmra.mrb[64].mxu0 %v10835_v27  ;;  %v9473_v27 = vld [vmem:[#allocation2 + $0x194] ss:$8 sps:$4 sm:$0xff]  }
 0x298   :  { %2466 = vmatprep.mubr.bf16.mxu0 %v11720_v60  ;;  %4014 = vmatprep.subr.bf16.mxu1 %v9473_v27 }
 0x299   :  { %4015 = vmatpush1.bf16.msra.mxu1 %v9471_v4 }
 0x29a   :  { %4016 = vmatprep.subr.bf16.mxu1 %v9476_v5 }
 0x29d   :  { %4017 = vmatpush1.bf16.msra.mxu1 %v9474_v38 }
 0x29f   :  { %2467 = vmatmul.mubr.bf16.gmra.mrb[96].mxu0 %v10841_v29  ;;  %v9479_v29 = vld [vmem:[#allocation2 + $0x1b4] ss:$8 sps:$4 sm:$0xff]  }
 0x2a0   :  { %2949 = vmatprep.mubr.bf16.mxu0 %v11720_v60  ;;  %4018 = vmatprep.subr.bf16.mxu1 %v9479_v29 }
 0x2a1   :  { %4019 = vmatpush1.bf16.msra.mxu1 %v9477_v15 }
 0x2a2   :  { %4020 = vmatprep.subr.bf16.mxu1 %v9482_v21 }
 0x2a5   :  { %4021 = vmatpush1.bf16.msra.mxu1 %v9480_v17 }
 0x2a6   :  { %4022 = vmatprep.subr.bf16.mxu1 %v9485_v46 }
 0x2a7   :  { %2950 = vmatmul.mubr.bf16.vlgmr.msra.gmra.mrb[0].mxu0 %v9961_v26 }
 0x2a8   :  { %2959 = vmatprep.mubr.bf16.mxu0 %v11720_v60 }
 0x2a9   :  { %4023 = vmatpush1.bf16.msra.mxu1 %v9483_v53 }
 0x2af   :  { %2960 = vmatmul.mubr.bf16.gmra.mrb[4].mxu0 %v10715_v6  ;;  %v9488_v6 = vld [vmem:[#allocation2 + $0x1e4] ss:$8 sps:$4 sm:$0xff]  }
 0x2b0   :  { %2969 = vmatprep.mubr.bf16.mxu0 %v11720_v60  ;;  %4024 = vmatprep.subr.bf16.mxu1 %v9488_v6 }
 0x2b1   :  { %4025 = vmatpush1.bf16.msra.mxu1 %v9486_v61 }
 0x2b2   :  { %4026 = vmatprep.subr.bf16.mxu1 %v9491_v3 }
 0x2b5   :  { %4027 = vmatpush1.bf16.msra.mxu1 %v9489_v11 }
 0x2b7   :  { %2970 = vmatmul.mubr.bf16.gmra.mrb[8].mxu0 %v10746_v13  ;;  %v9494_v13 = vld [vmem:[#allocation2 + $0x204] ss:$8 sps:$4 sm:$0xff]  }
 0x2b8   :  { %2979 = vmatprep.mubr.bf16.mxu0 %v11720_v60  ;;  %4028 = vmatprep.subr.bf16.mxu1 %v9494_v13 }
 0x2b9   :  { %4029 = vmatpush1.bf16.msra.mxu1 %v9492_v42 }
 0x2ba   :  { %4030 = vmatprep.subr.bf16.mxu1 %v9497_v39 }
 0x2bd   :  { %4031 = vmatpush1.bf16.msra.mxu1 %v9495_v57 }
 0x2bf   :  { %2980 = vmatmul.mubr.bf16.gmra.mrb[12].mxu0 %v10765_v16 }
 0x2c0   :  { %2989 = vmatprep.mubr.bf16.mxu0 %v11720_v60 }
 0x2c7   :  { %2990 = vmatmul.mubr.bf16.gmra.mrb[16].mxu0 %v10784_v19 }
 0x2c8   :  { %2999 = vmatprep.mubr.bf16.mxu0 %v11720_v60 }
 0x2cf   :  { %3000 = vmatmul.mubr.bf16.gmra.mrb[20].mxu0 %v10803_v22  ;;  %v9500_v22 = vld [vmem:[#allocation2 + $0x224] ss:$8 sps:$4 sm:$0xff]  }
 0x2d0   :  { %3009 = vmatprep.mubr.bf16.mxu0 %v11720_v60  ;;  %4032 = vmatprep.subr.bf16.mxu1 %v9500_v22 }
 0x2d7   :  { %3010 = vmatmul.mubr.bf16.gmra.mrb[24].mxu0 %v10822_v25  ;;  %v9498_v25 = vld [vmem:[#allocation2 + $0x220] ss:$8 sps:$4 sm:$0xff]  }
 0x2d8   :  { %3019 = vmatprep.mubr.bf16.mxu0 %v11720_v60  ;;  %4033 = vmatpush1.bf16.msra.mxu1 %v9498_v25 }
 0x2d9   :  { %4034 = vmatprep.subr.bf16.mxu1 %v9503_v23 }
 0x2df   :  { %3020 = vmatmul.mubr.bf16.gmra.mrb[28].mxu0 %v10846_v30  ;;  %v9501_v30 = vld [vmem:[#allocation2 + $0x230] ss:$8 sps:$4 sm:$0xff]  }
 0x2e0   :  { %3029 = vmatprep.mubr.bf16.mxu0 %v11720_v60  ;;  %4035 = vmatpush1.bf16.msra.mxu1 %v9501_v30 }
 0x2e1   :  { %4036 = vmatprep.subr.bf16.mxu1 %v9506_v43 }
 0x2e2   :  { %v1815_v16 = vpop.f32.mrb[92].mxu0 }
 0x2e3   :  { %v1816_v19 = vpop.f32.mrb[93].mxu0 }
 0x2e4   :  { %v1817_v28 = vpop.f32.mrb[94].mxu0 }
 0x2e5   :  { %v1818_v55 = vpop.f32.mrb[95].mxu0 }
 0x2e7   :  { %3030 = vmatmul.mubr.bf16.gmra.mrb[32].mxu0 %v10855_v31  ;;  %v9504_v31 = vld [vmem:[#allocation2 + $0x240] ss:$8 sps:$4 sm:$0xff]  }
 0x2e8   :  { %3039 = vmatprep.mubr.bf16.mxu0 %v11720_v60  ;;  %4037 = vmatpush1.bf16.msra.mxu1 %v9504_v31 }
 0x2ef   :  { %3040 = vmatmul.mubr.bf16.gmra.mrb[36].mxu0 %v10864_v32  ;;  %v9509_v32 = vld [vmem:[#allocation2 + $0x254] ss:$8 sps:$4 sm:$0xff]  }
 0x2f0   :  { %3049 = vmatprep.mubr.bf16.mxu0 %v11720_v60  ;;  %4038 = vmatprep.subr.bf16.mxu1 %v9509_v32 }
 0x2f1   :  { %4039 = vmatpush1.bf16.msra.mxu1 %v9507_v20 }
 0x2f2   :  { %4040 = vmatprep.subr.bf16.mxu1 %v9512_v63 }
 0x2f5   :  { %4041 = vmatpush1.bf16.msra.mxu1 %v9510_v59  ;;  %v9516_v59 = vld [vmem:[#allocation2 + $0x280] ss:$8 sps:$4 sm:$0xff]  }
 0x2f7   :  { %3050 = vmatmul.mubr.bf16.gmra.mrb[40].mxu0 %v10873_v33  ;;  %v9515_v33 = vld [vmem:[#allocation2 + $0x274] ss:$8 sps:$4 sm:$0xff]  }
 0x2f8   :  { %3059 = vmatprep.mubr.bf16.mxu0 %v11720_v60  ;;  %4042 = vmatprep.subr.bf16.mxu1 %v9515_v33 }
 0x2f9   :  { %4043 = vmatpush1.bf16.msra.mxu1 %v9513_v44 }
 0x2ff   :  { %3060 = vmatmul.mubr.bf16.gmra.mrb[44].mxu0 %v10882_v34  ;;  %v11723_v34 = vld [vmem:[#allocation8_spill] sm:$0xff] }
 0x300   :  { %3069 = vmatprep.mubr.bf16.mxu0 %v11720_v60 }
 0x307   :  { %3070 = vmatmul.mubr.bf16.gmra.mrb[48].mxu0 %v10891_v35  ;;  %v9962_v35 = vld [vmem:[%s11695_s0 + $0x120] sm:$0xff]  }
 0x308   :  { %3079 = vmatprep.mubr.bf16.mxu0 %v11720_v60 }
 0x30f   :  { %3080 = vmatmul.mubr.bf16.gmra.mrb[52].mxu0 %v10900_v36  ;;  %v9518_v36 = vld [vmem:[#allocation2 + $0x284] ss:$8 sps:$4 sm:$0xff]  }
 0x310   :  { %3089 = vmatprep.mubr.bf16.mxu0 %v11720_v60  ;;  %4115 = vmatprep.subr.bf16.mxu1 %v9518_v36 }
 0x317   :  { %3090 = vmatmul.mubr.bf16.gmra.mrb[56].mxu0 %v10909_v37  ;;  %v11725_v37 = vld [vmem:[#allocation10_spill] sm:$0xff] }
 0x318   :  { %3099 = vmatprep.mubr.bf16.mxu0 %v11720_v60  ;;  %v11714_v9 = vsub.s32 0, %v11725_v37  ;;  %v11713_v26 = vsub.s32 1, %v11725_v37 }
 0x31a   :  { %v11277_v27 = vrot.slane %v11726_v2, %v11714_v9  ;;  %v11282_v4 = vrot.slane %v11726_v2, %v11713_v26  ;;  %v9545_v26 = vld [vmem:[#allocation2 + $0x14] ss:$8 sps:$4 sm:$0xff]  }
 0x31f   :  { %3100 = vmatmul.mubr.bf16.gmra.mrb[60].mxu0 %v11723_v34  ;;  %v9521_v34 = vld [vmem:[#allocation2 + $0x294] ss:$8 sps:$4 sm:$0xff]  }
 0x320   :  { %3109 = vmatprep.mubr.bf16.mxu0 %v11720_v60 }
 0x327   :  { %3110 = vmatmul.mubr.bf16.gmra.mrb[64].mxu0 %v9962_v35 }
 0x328   :  { %3119 = vmatprep.mubr.bf16.mxu0 %v11720_v60 }
 0x32f   :  { %3120 = vmatmul.mubr.bf16.gmra.mrb[100].mxu0 %v11724_v40 }
 0x372   :  { %v2468_v7 = vpop.f32.mrb[96].mxu0 }
 0x373   :  { %v2469_v24 = vpop.f32.mrb[97].mxu0 }
 0x374   :  { %v2470_v14 = vpop.f32.mrb[98].mxu0 }
 0x375   :  { %v2471_v10 = vpop.f32.mrb[99].mxu0  ;;  %v9519_v14 = vld [vmem:[#allocation2 + $0x290] ss:$8 sps:$4 sm:$0xff]  }
 0x37a   :  { %v2951_v5 = vpop.f32.mrb[0].mxu0 }
 0x37b   :  { %v3420_v38 = vadd.f32 %v11277_v27, %v2951_v5  ;;  %v2953_v29 = vpop.f32.mrb[1].mxu0  ;;  %v9524_v5 = vld [vmem:[#allocation2 + $0x2a4] ss:$8 sps:$4 sm:$0xff]  }
 0x37c   :  { %v3421_v15 = vadd.f32 %v11282_v4, %v2953_v29  ;;  %v2955_v21 = vpop.f32.mrb[2].mxu0 }
 0x37d   :  { %v3423_v17 = vadd.f32 %v11277_v27, %v2955_v21  ;;  %v2957_v46 = vpop.f32.mrb[3].mxu0  ;;  %v3522_v6 = vmax.f32 %v3420_v38, 0.0 }
 0x37e   :  { %v3424_v53 = vadd.f32 %v11282_v4, %v2957_v46  ;;  %v3523_v3 = vmax.f32 %v3421_v15, 0.0  ;;  %v9522_v46 = vld [vmem:[#allocation2 + $0x2a0] ss:$8 sps:$4 sm:$0xff]  }
 0x37f   :  { %v3525_v61 = vmax.f32 %v3423_v17, 0.0 }
 0x380   :  { %v3526_v11 = vmax.f32 %v3424_v53, 0.0 }
 0x381   :  { %v11288_v13 = vpack.c.bf16 %v3525_v61, %v3522_v6  ;;  %v9527_v61 = vld [vmem:[#allocation2 + $0x2b4] ss:$8 sps:$4 sm:$0xff]  }
 0x382   :  { %v11290_v42 = vpack.c.bf16 %v3526_v11, %v3523_v3  ;;  %v2961_v39 = vpop.f32.mrb[4].mxu0 }
 0x383   :  { %v3426_v57 = vadd.f32 %v11277_v27, %v2961_v39  ;;  %v2963_v16 = vpop.f32.mrb[5].mxu0 }
 0x384   :  { %v3427_v19 = vadd.f32 %v11282_v4, %v2963_v16  ;;  %v2965_v28 = vpop.f32.mrb[6].mxu0 }
 0x385   :  { %v3429_v55 = vadd.f32 %v11277_v27, %v2965_v28  ;;  %v2967_v22 = vpop.f32.mrb[7].mxu0  ;;  %v3528_v23 = vmax.f32 %v3426_v57, 0.0 }
 0x386   :  { %v3430_v25 = vadd.f32 %v11282_v4, %v2967_v22  ;;  %v3529_v43 = vmax.f32 %v3427_v19, 0.0  ;;  %v9525_v19 = vld [vmem:[#allocation2 + $0x2b0] ss:$8 sps:$4 sm:$0xff]   ;;  %v9530_v22 = vld [vmem:[#allocation2 + $0x2c4] ss:$8 sps:$4 sm:$0xff]  }
 0x387   :  { %v3531_v30 = vmax.f32 %v3429_v55, 0.0 }
 0x388   :  { %v3532_v31 = vmax.f32 %v3430_v25, 0.0 }
 0x389   :  { %v3627_v32 = vpack.c.bf16 %v3531_v30, %v3528_v23 }
 0x38a   :  { %v3628_v20 = vpack.c.bf16 %v3532_v31, %v3529_v43  ;;  %v2971_v63 = vpop.f32.mrb[8].mxu0 }
 0x38b   :  { %v3432_v33 = vadd.f32 %v11277_v27, %v2971_v63  ;;  %v2973_v44 = vpop.f32.mrb[9].mxu0 }
 0x38c   :  { %v3433_v35 = vadd.f32 %v11282_v4, %v2973_v44  ;;  %v2975_v40 = vpop.f32.mrb[10].mxu0  ;;  %4044 = vmatprep.mubr.bf16.mxu1 %v3628_v20 }
 0x38d   :  { %v3435_v36 = vadd.f32 %v11277_v27, %v2975_v40  ;;  %v2977_v7 = vpop.f32.mrb[11].mxu0  ;;  %4045 = vmatmul.mubr.bf16.vlgmr.msra.gmra.mrb[52].mxu1 %v3627_v32  ;;  %v3534_v10 = vmax.f32 %v3432_v33, 0.0  ;;  %v9528_v32 = vld [vmem:[#allocation2 + $0x2c0] ss:$8 sps:$4 sm:$0xff]  }
 0x38e   :  { %v3436_v24 = vadd.f32 %v11282_v4, %v2977_v7  ;;  %4116 = vmatpush1.bf16.msra.mxu1 %v9516_v59  ;;  %v3535_v38 = vmax.f32 %v3433_v35, 0.0  ;;  %v9533_v59 = vld [vmem:[#allocation2 + $0x2d4] ss:$8 sps:$4 sm:$0xff]  }
 0x38f   :  { %v3537_v2 = vmax.f32 %v3435_v36, 0.0  ;;  %4117 = vmatprep.subr.bf16.mxu1 %v9521_v34  ;;  %v9531_v36 = vld [vmem:[#allocation2 + $0x2d0] ss:$8 sps:$4 sm:$0xff]  }
 0x390   :  { %v3538_v29 = vmax.f32 %v3436_v24, 0.0 }
 0x391   :  { %v11300_v15 = vpack.c.bf16 %v3537_v2, %v3534_v10 }
 0x392   :  { %v11302_v21 = vpack.c.bf16 %v3538_v29, %v3535_v38  ;;  %v2981_v17 = vpop.f32.mrb[12].mxu0  ;;  %4118 = vmatpush1.bf16.msra.mxu1 %v9519_v14  ;;  %v9536_v14 = vld [vmem:[#allocation2 + $0x2e4] ss:$8 sps:$4 sm:$0xff]  }
 0x393   :  { %v3438_v53 = vadd.f32 %v11277_v27, %v2981_v17  ;;  %v2983_v6 = vpop.f32.mrb[13].mxu0  ;;  %4119 = vmatprep.subr.bf16.mxu1 %v9524_v5  ;;  %v9534_v17 = vld [vmem:[#allocation2 + $0x2e0] ss:$8 sps:$4 sm:$0xff]  }
 0x394   :  { %v3439_v3 = vadd.f32 %v11282_v4, %v2983_v6  ;;  %v2985_v11 = vpop.f32.mrb[14].mxu0  ;;  %v9539_v6 = vld [vmem:[#allocation2 + $0x2f4] ss:$8 sps:$4 sm:$0xff]  }
 0x395   :  { %v3441_v39 = vadd.f32 %v11277_v27, %v2985_v11  ;;  %v2987_v57 = vpop.f32.mrb[15].mxu0  ;;  %v3540_v28 = vmax.f32 %v3438_v53, 0.0 }
 0x396   :  { %v3442_v16 = vadd.f32 %v11282_v4, %v2987_v57  ;;  %4120 = vmatpush1.bf16.msra.mxu1 %v9522_v46  ;;  %v3541_v25 = vmax.f32 %v3439_v3, 0.0 }
 0x397   :  { %v3543_v55 = vmax.f32 %v3441_v39, 0.0  ;;  %4121 = vmatprep.subr.bf16.mxu1 %v9527_v61 }
 0x398   :  { %v3544_v23 = vmax.f32 %v3442_v16, 0.0  ;;  %v9537_v16 = vld [vmem:[#allocation2 + $0x2f0] ss:$8 sps:$4 sm:$0xff]  }
 0x399   :  { %v11308_v30 = vpack.c.bf16 %v3543_v55, %v3540_v28  ;;  %v9542_v55 = vld [vmem:[#allocation2 + $0x4] ss:$8 sps:$4 sm:$0xff]  }
 0x39a   :  { %v11310_v43 = vpack.c.bf16 %v3544_v23, %v3541_v25  ;;  %v2991_v31 = vpop.f32.mrb[16].mxu0  ;;  %4122 = vmatpush1.bf16.msra.mxu1 %v9525_v19 }
 0x39b   :  { %v3444_v20 = vadd.f32 %v11277_v27, %v2991_v31  ;;  %v2993_v63 = vpop.f32.mrb[17].mxu0  ;;  %4123 = vmatprep.subr.bf16.mxu1 %v9530_v22 }
 0x39c   :  { %v3445_v33 = vadd.f32 %v11282_v4, %v2993_v63  ;;  %v2995_v44 = vpop.f32.mrb[18].mxu0  ;;  %4054 = vmatprep.mubr.bf16.mxu1 %v11310_v43 }
 0x39d   :  { %v3447_v34 = vadd.f32 %v11277_v27, %v2995_v44  ;;  %v2997_v35 = vpop.f32.mrb[19].mxu0  ;;  %4055 = vmatmul.mubr.bf16.gmra.mrb[56].mxu1 %v11308_v30  ;;  %v3546_v7 = vmax.f32 %v3444_v20, 0.0 }
 0x39e   :  { %v3448_v40 = vadd.f32 %v11282_v4, %v2997_v35  ;;  %4124 = vmatpush1.bf16.msra.mxu1 %v9528_v32  ;;  %v3547_v10 = vmax.f32 %v3445_v33, 0.0 }
 0x39f   :  { %v3549_v24 = vmax.f32 %v3447_v34, 0.0  ;;  %4125 = vmatprep.subr.bf16.mxu1 %v9533_v59 }
 0x3a0   :  { %v3550_v2 = vmax.f32 %v3448_v40, 0.0 }
 0x3a1   :  { %v11318_v5 = vpack.c.bf16 %v3549_v24, %v3546_v7 }
 0x3a2   :  { %v11320_v38 = vpack.c.bf16 %v3550_v2, %v3547_v10  ;;  %v3001_v29 = vpop.f32.mrb[20].mxu0  ;;  %4126 = vmatpush1.bf16.msra.mxu1 %v9531_v36 }
 0x3a3   :  { %v3450_v46 = vadd.f32 %v11277_v27, %v3001_v29  ;;  %v3003_v53 = vpop.f32.mrb[21].mxu0  ;;  %4127 = vmatprep.subr.bf16.mxu1 %v9536_v14 }
 0x3a4   :  { %v3451_v61 = vadd.f32 %v11282_v4, %v3003_v53  ;;  %v3005_v3 = vpop.f32.mrb[22].mxu0 }
 0x3a5   :  { %v3453_v11 = vadd.f32 %v11277_v27, %v3005_v3  ;;  %v3007_v39 = vpop.f32.mrb[23].mxu0  ;;  %v3552_v19 = vmax.f32 %v3450_v46, 0.0 }
 0x3a6   :  { %v3454_v57 = vadd.f32 %v11282_v4, %v3007_v39  ;;  %4128 = vmatpush1.bf16.msra.mxu1 %v9534_v17  ;;  %v3553_v22 = vmax.f32 %v3451_v61, 0.0 }
 0x3a7   :  { %v3555_v28 = vmax.f32 %v3453_v11, 0.0  ;;  %4129 = vmatprep.subr.bf16.mxu1 %v9539_v6 }
 0x3a8   :  { %v3556_v25 = vmax.f32 %v3454_v57, 0.0 }
 0x3a9   :  { %v11326_v23 = vpack.c.bf16 %v3555_v28, %v3552_v19 }
 0x3aa   :  { %v11328_v31 = vpack.c.bf16 %v3556_v25, %v3553_v22  ;;  %v3011_v32 = vpop.f32.mrb[24].mxu0  ;;  %4130 = vmatpush1.bf16.msra.mxu1 %v9537_v16 }
 0x3ab   :  { %v3456_v20 = vadd.f32 %v11277_v27, %v3011_v32  ;;  %v3013_v63 = vpop.f32.mrb[25].mxu0  ;;  %4458 = vmatprep.subr.bf16.mxu1 %v9542_v55 }
 0x3ac   :  { %v3457_v59 = vadd.f32 %v11282_v4, %v3013_v63  ;;  %v3015_v33 = vpop.f32.mrb[26].mxu0  ;;  %4064 = vmatprep.mubr.bf16.mxu1 %v11328_v31 }
 0x3ad   :  { %v3459_v44 = vadd.f32 %v11277_v27, %v3015_v33  ;;  %v3017_v34 = vpop.f32.mrb[27].mxu0  ;;  %4065 = vmatmul.mubr.bf16.gmra.mrb[60].mxu1 %v11326_v23  ;;  %v3558_v40 = vmax.f32 %v3456_v20, 0.0 }
 0x3ae   :  { %v3460_v35 = vadd.f32 %v11282_v4, %v3017_v34  ;;  %v3559_v7 = vmax.f32 %v3457_v59, 0.0 }
 0x3af   :  { %v3561_v36 = vmax.f32 %v3459_v44, 0.0 }
 0x3b0   :  { %v3562_v24 = vmax.f32 %v3460_v35, 0.0 }
 0x3b1   :  { %v11336_v14 = vpack.c.bf16 %v3561_v36, %v3558_v40 }
 0x3b2   :  { %v11338_v10 = vpack.c.bf16 %v3562_v24, %v3559_v7  ;;  %v3021_v2 = vpop.f32.mrb[28].mxu0 }
 0x3b3   :  { %v3462_v29 = vadd.f32 %v11277_v27, %v3021_v2  ;;  %v3023_v17 = vpop.f32.mrb[29].mxu0 }
 0x3b4   :  { %v3463_v46 = vadd.f32 %v11282_v4, %v3023_v17  ;;  %v3025_v53 = vpop.f32.mrb[30].mxu0 }
 0x3b5   :  { %v3465_v6 = vadd.f32 %v11277_v27, %v3025_v53  ;;  %v3027_v61 = vpop.f32.mrb[31].mxu0  ;;  %v3564_v11 = vmax.f32 %v3462_v29, 0.0 }
 0x3b6   :  { %v3466_v3 = vadd.f32 %v11282_v4, %v3027_v61  ;;  %v3565_v57 = vmax.f32 %v3463_v46, 0.0 }
 0x3b7   :  { %v3567_v39 = vmax.f32 %v3465_v6, 0.0 }
 0x3b8   :  { %v3568_v16 = vmax.f32 %v3466_v3, 0.0 }
 0x3b9   :  { %v11344_v19 = vpack.c.bf16 %v3567_v39, %v3564_v11 }
 0x3ba   :  { %v11346_v28 = vpack.c.bf16 %v3568_v16, %v3565_v57  ;;  %v3031_v55 = vpop.f32.mrb[32].mxu0 }
 0x3bb   :  { %v3468_v22 = vadd.f32 %v11277_v27, %v3031_v55  ;;  %v3033_v25 = vpop.f32.mrb[33].mxu0 }
 0x3bc   :  { %v3469_v32 = vadd.f32 %v11282_v4, %v3033_v25  ;;  %v3035_v20 = vpop.f32.mrb[34].mxu0  ;;  %4074 = vmatprep.mubr.bf16.mxu1 %v11346_v28 }
 0x3bd   :  { %v3471_v63 = vadd.f32 %v11277_v27, %v3035_v20  ;;  %v3037_v59 = vpop.f32.mrb[35].mxu0  ;;  %4075 = vmatmul.mubr.bf16.gmra.mrb[64].mxu1 %v11344_v19  ;;  %v3570_v44 = vmax.f32 %v3468_v22, 0.0 }
 0x3be   :  { %v3472_v33 = vadd.f32 %v11282_v4, %v3037_v59  ;;  %v3571_v35 = vmax.f32 %v3469_v32, 0.0 }
 0x3bf   :  { %v3573_v34 = vmax.f32 %v3471_v63, 0.0 }
 0x3c0   :  { %v3574_v40 = vmax.f32 %v3472_v33, 0.0 }
 0x3c1   :  { %v11354_v36 = vpack.c.bf16 %v3573_v34, %v3570_v44 }
 0x3c2   :  { %v11356_v7 = vpack.c.bf16 %v3574_v40, %v3571_v35  ;;  %v3041_v24 = vpop.f32.mrb[36].mxu0 }
 0x3c3   :  { %v3474_v2 = vadd.f32 %v11277_v27, %v3041_v24  ;;  %v3043_v29 = vpop.f32.mrb[37].mxu0 }
 0x3c4   :  { %v3475_v17 = vadd.f32 %v11282_v4, %v3043_v29  ;;  %v3045_v46 = vpop.f32.mrb[38].mxu0 }
 0x3c5   :  { %v3477_v53 = vadd.f32 %v11277_v27, %v3045_v46  ;;  %v3047_v6 = vpop.f32.mrb[39].mxu0  ;;  %v3576_v3 = vmax.f32 %v3474_v2, 0.0 }
 0x3c6   :  { %v3478_v61 = vadd.f32 %v11282_v4, %v3047_v6  ;;  %v3577_v39 = vmax.f32 %v3475_v17, 0.0 }
 0x3c7   :  { %v3579_v11 = vmax.f32 %v3477_v53, 0.0 }
 0x3c8   :  { %v3580_v57 = vmax.f32 %v3478_v61, 0.0 }
 0x3c9   :  { %v11362_v16 = vpack.c.bf16 %v3579_v11, %v3576_v3 }
 0x3ca   :  { %v11364_v55 = vpack.c.bf16 %v3580_v57, %v3577_v39  ;;  %v3051_v22 = vpop.f32.mrb[40].mxu0 }
 0x3cb   :  { %v3480_v25 = vadd.f32 %v11277_v27, %v3051_v22  ;;  %v3053_v32 = vpop.f32.mrb[41].mxu0 }
 0x3cc   :  { %v3481_v20 = vadd.f32 %v11282_v4, %v3053_v32  ;;  %v3055_v63 = vpop.f32.mrb[42].mxu0  ;;  %4084 = vmatprep.mubr.bf16.mxu1 %v11364_v55 }
 0x3cd   :  { %v3483_v59 = vadd.f32 %v11277_v27, %v3055_v63  ;;  %v3057_v33 = vpop.f32.mrb[43].mxu0  ;;  %4085 = vmatmul.mubr.bf16.gmra.mrb[68].mxu1 %v11362_v16  ;;  %v3582_v34 = vmax.f32 %v3480_v25, 0.0 }
 0x3ce   :  { %v3484_v44 = vadd.f32 %v11282_v4, %v3057_v33  ;;  %v3583_v40 = vmax.f32 %v3481_v20, 0.0 }
 0x3cf   :  { %v3585_v35 = vmax.f32 %v3483_v59, 0.0 }
 0x3d0   :  { %v3586_v24 = vmax.f32 %v3484_v44, 0.0 }
 0x3d1   :  { %v11372_v2 = vpack.c.bf16 %v3585_v35, %v3582_v34 }
 0x3d2   :  { %v11374_v29 = vpack.c.bf16 %v3586_v24, %v3583_v40  ;;  %v3061_v17 = vpop.f32.mrb[44].mxu0 }
 0x3d3   :  { %v3486_v46 = vadd.f32 %v11277_v27, %v3061_v17  ;;  %v3063_v53 = vpop.f32.mrb[45].mxu0 }
 0x3d4   :  { %v3487_v6 = vadd.f32 %v11282_v4, %v3063_v53  ;;  %v3065_v61 = vpop.f32.mrb[46].mxu0 }
 0x3d5   :  { %v3489_v3 = vadd.f32 %v11277_v27, %v3065_v61  ;;  %v3067_v11 = vpop.f32.mrb[47].mxu0  ;;  %v3588_v57 = vmax.f32 %v3486_v46, 0.0 }
 0x3d6   :  { %v3490_v39 = vadd.f32 %v11282_v4, %v3067_v11  ;;  %v3589_v25 = vmax.f32 %v3487_v6, 0.0 }
 0x3d7   :  { %v3591_v22 = vmax.f32 %v3489_v3, 0.0 }
 0x3d8   :  { %v3592_v32 = vmax.f32 %v3490_v39, 0.0 }
 0x3d9   :  { %v11380_v20 = vpack.c.bf16 %v3591_v22, %v3588_v57 }
 0x3da   :  { %v11382_v63 = vpack.c.bf16 %v3592_v32, %v3589_v25  ;;  %v3071_v59 = vpop.f32.mrb[48].mxu0 }
 0x3db   :  { %v3492_v33 = vadd.f32 %v11277_v27, %v3071_v59  ;;  %v3073_v44 = vpop.f32.mrb[49].mxu0 }
 0x3dc   :  { %v3493_v34 = vadd.f32 %v11282_v4, %v3073_v44  ;;  %v3075_v35 = vpop.f32.mrb[50].mxu0  ;;  %4094 = vmatprep.mubr.bf16.mxu1 %v11382_v63 }
 0x3dd   :  { %v3495_v40 = vadd.f32 %v11277_v27, %v3075_v35  ;;  %v3077_v24 = vpop.f32.mrb[51].mxu0  ;;  %4095 = vmatmul.mubr.bf16.gmra.mrb[72].mxu1 %v11380_v20  ;;  %v3594_v46 = vmax.f32 %v3492_v33, 0.0 }
 0x3de   :  { %v3496_v17 = vadd.f32 %v11282_v4, %v3077_v24  ;;  %v3595_v6 = vmax.f32 %v3493_v34, 0.0 }
 0x3df   :  { %v3597_v53 = vmax.f32 %v3495_v40, 0.0 }
 0x3e0   :  { %v3598_v61 = vmax.f32 %v3496_v17, 0.0 }
 0x3e1   :  { %v11390_v3 = vpack.c.bf16 %v3597_v53, %v3594_v46 }
 0x3e2   :  { %v11392_v11 = vpack.c.bf16 %v3598_v61, %v3595_v6  ;;  %v3081_v39 = vpop.f32.mrb[52].mxu0 }
 0x3e3   :  { %v3498_v57 = vadd.f32 %v11277_v27, %v3081_v39  ;;  %v3083_v22 = vpop.f32.mrb[53].mxu0 }
 0x3e4   :  { %v3499_v25 = vadd.f32 %v11282_v4, %v3083_v22  ;;  %v3085_v32 = vpop.f32.mrb[54].mxu0 }
 0x3e5   :  { %v3501_v59 = vadd.f32 %v11277_v27, %v3085_v32  ;;  %v3087_v44 = vpop.f32.mrb[55].mxu0  ;;  %v3600_v33 = vmax.f32 %v3498_v57, 0.0 }
 0x3e6   :  { %v3502_v35 = vadd.f32 %v11282_v4, %v3087_v44  ;;  %v3601_v34 = vmax.f32 %v3499_v25, 0.0 }
 0x3e7   :  { %v3603_v40 = vmax.f32 %v3501_v59, 0.0 }
 0x3e8   :  { %v3604_v24 = vmax.f32 %v3502_v35, 0.0 }
 0x3e9   :  { %v11398_v17 = vpack.c.bf16 %v3603_v40, %v3600_v33 }
 0x3ea   :  { %v11400_v46 = vpack.c.bf16 %v3604_v24, %v3601_v34  ;;  %v3091_v53 = vpop.f32.mrb[56].mxu0 }
 0x3eb   :  { %v3504_v6 = vadd.f32 %v11277_v27, %v3091_v53  ;;  %v3093_v61 = vpop.f32.mrb[57].mxu0  ;;  %v9540_v53 = vld [vmem:[#allocation2] ss:$8 sps:$4 sm:$0xff]  }
 0x3ec   :  { %v3505_v39 = vadd.f32 %v11282_v4, %v3093_v61  ;;  %v3095_v22 = vpop.f32.mrb[58].mxu0  ;;  %4104 = vmatprep.mubr.bf16.mxu1 %v11400_v46 }
 0x3ed   :  { %v3507_v32 = vadd.f32 %v11277_v27, %v3095_v22  ;;  %v3097_v44 = vpop.f32.mrb[59].mxu0  ;;  %4105 = vmatmul.mubr.bf16.gmra.mrb[76].mxu1 %v11398_v17  ;;  %v3606_v25 = vmax.f32 %v3504_v6, 0.0 }
 0x3ee   :  { %v3508_v57 = vadd.f32 %v11282_v4, %v3097_v44  ;;  %4147 = vmatprep.mubr.bf16.mxu1 %v11720_v60  ;;  %v3607_v35 = vmax.f32 %v3505_v39, 0.0  ;;  %v9543_v39 = vld [vmem:[#allocation2 + $0x10] ss:$8 sps:$4 sm:$0xff]  }
 0x3ef   :  { %v3609_v59 = vmax.f32 %v3507_v32, 0.0 }
 0x3f0   :  { %v3610_v33 = vmax.f32 %v3508_v57, 0.0 }
 0x3f1   :  { %v11409_v40 = vpack.c.bf16 %v3609_v59, %v3606_v25  ;;  %v9548_v25 = vld [vmem:[#allocation2 + $0x24] ss:$8 sps:$4 sm:$0xff]  }
 0x3f2   :  { %v11411_v34 = vpack.c.bf16 %v3610_v33, %v3607_v35  ;;  %v3101_v24 = vpop.f32.mrb[60].mxu0 }
 0x3f3   :  { %v3510_v61 = vadd.f32 %v11277_v27, %v3101_v24  ;;  %v3103_v22 = vpop.f32.mrb[61].mxu0 }
 0x3f4   :  { %v3511_v9 = vadd.f32 %v11282_v4, %v3103_v22  ;;  %v3105_v37 = vpop.f32.mrb[62].mxu0  ;;  %v9546_v22 = vld [vmem:[#allocation2 + $0x20] ss:$8 sps:$4 sm:$0xff]  }
 0x3f5   :  { %v3513_v44 = vadd.f32 %v11277_v27, %v3105_v37  ;;  %v3107_v51 = vpop.f32.mrb[63].mxu0  ;;  %4148 = vmatmul.mubr.bf16.vlgmr.msra.gmra.mrb[52].mxu1 %v11102_v52  ;;  %v3612_v32 = vmax.f32 %v3510_v61, 0.0 }
 0x3f6   :  { %v3514_v6 = vadd.f32 %v11282_v4, %v3107_v51  ;;  %4459 = vmatpush1.bf16.msra.mxu1 %v9540_v53  ;;  %4157 = vmatprep.mubr.bf16.mxu1 %v11720_v60  ;;  %v3613_v59 = vmax.f32 %v3511_v9, 0.0  ;;  %v9551_v53 = vld [vmem:[#allocation2 + $0x34] ss:$8 sps:$4 sm:$0xff]  }
 0x3f7   :  { %v3615_v57 = vmax.f32 %v3513_v44, 0.0  ;;  %4460 = vmatprep.subr.bf16.mxu1 %v9545_v26 }
 0x3f8   :  { %v3616_v35 = vmax.f32 %v3514_v6, 0.0  ;;  %v9549_v6 = vld [vmem:[#allocation2 + $0x30] ss:$8 sps:$4 sm:$0xff]  }
 0x3f9   :  { %v11419_v33 = vpack.c.bf16 %v3615_v57, %v3612_v32  ;;  %v9554_v57 = vld [vmem:[#allocation2 + $0x44] ss:$8 sps:$4 sm:$0xff]  }
 0x3fa   :  { %v11421_v24 = vpack.c.bf16 %v3616_v35, %v3613_v59  ;;  %4461 = vmatpush1.bf16.msra.mxu1 %v9543_v39  ;;  %v3111_v37 = vpop.f32.mrb[64].mxu0 }
 0x3fb   :  { %v3516_v52 = vadd.f32 %v11277_v27, %v3111_v37  ;;  %v3113_v51 = vpop.f32.mrb[65].mxu0  ;;  %4462 = vmatprep.subr.bf16.mxu1 %v9548_v25 }
 0x3fc   :  { %v3517_v50 = vadd.f32 %v11282_v4, %v3113_v51  ;;  %v3115_v61 = vpop.f32.mrb[66].mxu0 }
 0x3fd   :  { %v3519_v26 = vadd.f32 %v11277_v27, %v3115_v61  ;;  %v3117_v44 = vpop.f32.mrb[67].mxu0  ;;  %4158 = vmatmul.mubr.bf16.gmra.mrb[56].mxu1 %v11129_v1  ;;  %v3618_v39 = vmax.f32 %v3516_v52, 0.0  ;;  %v9552_v27 = vld [vmem:[#allocation2 + $0x40] ss:$8 sps:$4 sm:$0xff]   ;;  %v9557_v61 = vld [vmem:[#allocation2 + $0x54] ss:$8 sps:$4 sm:$0xff]  }
 0x3fe   :  { %v3520_v9 = vadd.f32 %v11282_v4, %v3117_v44  ;;  %4463 = vmatpush1.bf16.msra.mxu1 %v9546_v22  ;;  %4167 = vmatprep.mubr.bf16.mxu1 %v11720_v60  ;;  %v3619_v25 = vmax.f32 %v3517_v50, 0.0  ;;  %v9555_v52 = vld [vmem:[#allocation2 + $0x50] ss:$8 sps:$4 sm:$0xff]   ;;  %v9560_v50 = vld [vmem:[#allocation2 + $0x64] ss:$8 sps:$4 sm:$0xff]  }
 0x3ff   :  { %v3621_v32 = vmax.f32 %v3519_v26, 0.0  ;;  %4464 = vmatprep.subr.bf16.mxu1 %v9551_v53  ;;  %v9558_v53 = vld [vmem:[#allocation2 + $0x60] ss:$8 sps:$4 sm:$0xff]   ;;  %v9563_v26 = vld [vmem:[#allocation2 + $0x74] ss:$8 sps:$4 sm:$0xff]  }
 0x400   :  { %v3622_v59 = vmax.f32 %v3520_v9, 0.0  ;;  %v9561_v9 = vld [vmem:[#allocation2 + $0x70] ss:$8 sps:$4 sm:$0xff]  }
 0x401   :  { %v11429_v35 = vpack.c.bf16 %v3621_v32, %v3618_v39  ;;  %v9564_v39 = vld [vmem:[#allocation2 + $0x80] ss:$8 sps:$4 sm:$0xff]   ;;  %v9569_v32 = vld [vmem:[#allocation2 + $0x94] ss:$8 sps:$4 sm:$0xff]  }
 0x402   :  { %v11431_v37 = vpack.c.bf16 %v3622_v59, %v3619_v25  ;;  %4465 = vmatpush1.bf16.msra.mxu1 %v9549_v6  ;;  %v3121_v51 = vpop.f32.mrb[100].mxu0  ;;  %v9566_v6 = vld [vmem:[#allocation2 + $0x84] ss:$8 sps:$4 sm:$0xff]   ;;  %v9570_v59 = vld [vmem:[#allocation2 + $0xa0] ss:$8 sps:$4 sm:$0xff]  }
 0x403   :  { %4466 = vmatprep.subr.bf16.mxu1 %v9554_v57  ;;  %v3122_v4 = vpop.f32.mrb[101].mxu0  ;;  %v9567_v57 = vld [vmem:[#allocation2 + $0x90] ss:$8 sps:$4 sm:$0xff]   ;;  %v9572_v25 = vld [vmem:[#allocation2 + $0xa4] ss:$8 sps:$4 sm:$0xff]  }
 0x404   :  { %v3123_v22 = vpop.f32.mrb[102].mxu0  ;;  %v9573_v51 = vld [vmem:[#allocation2 + $0xb0] ss:$8 sps:$4 sm:$0xff]   ;;  %v9576_v4 = vld [vmem:[#allocation2 + $0xc0] ss:$8 sps:$4 sm:$0xff]  }
 0x405   :  { %4168 = vmatmul.mubr.bf16.gmra.mrb[60].mxu1 %v11152_v41  ;;  %v3124_v44 = vpop.f32.mrb[103].mxu0  ;;  %v9581_v22 = vld [vmem:[#allocation2 + $0xd4] ss:$8 sps:$4 sm:$0xff]  }
 0x406   :  { %4467 = vmatpush1.bf16.msra.mxu1 %v9552_v27  ;;  %4177 = vmatprep.mubr.bf16.mxu1 %v11720_v60  ;;  %v9575_v27 = vld [vmem:[#allocation2 + $0xb4] ss:$8 sps:$4 sm:$0xff]   ;;  %v9579_v44 = vld [vmem:[#allocation2 + $0xd0] ss:$8 sps:$4 sm:$0xff]  }
 0x407   :  { %4468 = vmatprep.subr.bf16.mxu1 %v9557_v61  ;;  %v9578_v61 = vld [vmem:[#allocation2 + $0xc4] ss:$8 sps:$4 sm:$0xff]  }
 0x40a   :  { %4469 = vmatpush1.bf16.msra.mxu1 %v9555_v52  ;;  %v9584_v52 = vld [vmem:[#allocation2 + $0xe4] ss:$8 sps:$4 sm:$0xff]  }
 0x40b   :  { %4470 = vmatprep.subr.bf16.mxu1 %v9560_v50  ;;  %v9582_v50 = vld [vmem:[#allocation2 + $0xe0] ss:$8 sps:$4 sm:$0xff]  }
 0x40d   :  { %4178 = vmatmul.mubr.bf16.gmra.mrb[64].mxu1 %v11165_v8 }
 0x40e   :  { %4471 = vmatpush1.bf16.msra.mxu1 %v9558_v53  ;;  %4187 = vmatprep.mubr.bf16.mxu1 %v11720_v60  ;;  %v9587_v53 = vld [vmem:[#allocation2 + $0xf4] ss:$8 sps:$4 sm:$0xff]  }
 0x40f   :  { %4472 = vmatprep.subr.bf16.mxu1 %v9563_v26  ;;  %v9585_v26 = vld [vmem:[#allocation2 + $0xf0] ss:$8 sps:$4 sm:$0xff]  }
 0x412   :  { %4473 = vmatpush1.bf16.msra.mxu1 %v9561_v9  ;;  %v9590_v9 = vld [vmem:[#allocation2 + $0x104] ss:$8 sps:$4 sm:$0xff]  }
 0x413   :  { %4474 = vmatprep.subr.bf16.mxu1 %v9566_v6  ;;  %v9588_v6 = vld [vmem:[#allocation2 + $0x100] ss:$8 sps:$4 sm:$0xff]  }
 0x415   :  { %4188 = vmatmul.mubr.bf16.gmra.mrb[68].mxu1 %v11185_v47 }
 0x416   :  { %4475 = vmatpush1.bf16.msra.mxu1 %v9564_v39  ;;  %4197 = vmatprep.mubr.bf16.mxu1 %v11720_v60  ;;  %v9593_v39 = vld [vmem:[#allocation2 + $0x114] ss:$8 sps:$4 sm:$0xff]  }
 0x417   :  { %4476 = vmatprep.subr.bf16.mxu1 %v9569_v32  ;;  %v9596_v32 = vld [vmem:[#allocation2 + $0x124] ss:$8 sps:$4 sm:$0xff]  }
 0x41a   :  { %4477 = vmatpush1.bf16.msra.mxu1 %v9567_v57  ;;  %v9594_v57 = vld [vmem:[#allocation2 + $0x120] ss:$8 sps:$4 sm:$0xff]  }
 0x41b   :  { %4478 = vmatprep.subr.bf16.mxu1 %v9572_v25  ;;  %v9599_v25 = vld [vmem:[#allocation2 + $0x134] ss:$8 sps:$4 sm:$0xff]  }
 0x41d   :  { %4198 = vmatmul.mubr.bf16.gmra.mrb[72].mxu1 %v11195_v48 }
 0x41e   :  { %4479 = vmatpush1.bf16.msra.mxu1 %v9570_v59  ;;  %4207 = vmatprep.mubr.bf16.mxu1 %v11720_v60  ;;  %v9597_v59 = vld [vmem:[#allocation2 + $0x130] ss:$8 sps:$4 sm:$0xff]  }
 0x41f   :  { %4480 = vmatprep.subr.bf16.mxu1 %v9575_v27  ;;  %v9602_v27 = vld [vmem:[#allocation2 + $0x144] ss:$8 sps:$4 sm:$0xff]  }
 0x422   :  { %4481 = vmatpush1.bf16.msra.mxu1 %v9573_v51  ;;  %v9605_v51 = vld [vmem:[#allocation2 + $0x154] ss:$8 sps:$4 sm:$0xff]  }
 0x423   :  { %4482 = vmatprep.subr.bf16.mxu1 %v9578_v61  ;;  %v9603_v61 = vld [vmem:[#allocation2 + $0x150] ss:$8 sps:$4 sm:$0xff]  }
 0x425   :  { %4208 = vmatmul.mubr.bf16.gmra.mrb[76].mxu1 %v11205_v45 }
 0x426   :  { %4483 = vmatpush1.bf16.msra.mxu1 %v9576_v4  ;;  %4490 = vmatprep.mubr.bf16.mxu1 %v11290_v42  ;;  %v9591_v42 = vld [vmem:[#allocation2 + $0x110] ss:$8 sps:$4 sm:$0xff]   ;;  %v9608_v4 = vld [vmem:[#allocation2 + $0x164] ss:$8 sps:$4 sm:$0xff]  }
 0x427   :  { %4484 = vmatprep.subr.bf16.mxu1 %v9581_v22  ;;  %v9606_v22 = vld [vmem:[#allocation2 + $0x160] ss:$8 sps:$4 sm:$0xff]  }
 0x42a   :  { %4485 = vmatpush1.bf16.msra.mxu1 %v9579_v44  ;;  %v9611_v44 = vld [vmem:[#allocation2 + $0x174] ss:$8 sps:$4 sm:$0xff]  }
 0x42b   :  { %4486 = vmatprep.subr.bf16.mxu1 %v9584_v52  ;;  %v9609_v52 = vld [vmem:[#allocation2 + $0x170] ss:$8 sps:$4 sm:$0xff]  }
 0x42e   :  { %4487 = vmatpush1.bf16.msra.mxu1 %v9582_v50  ;;  %v9614_v50 = vld [vmem:[#allocation2 + $0x304] ss:$8 sps:$4 sm:$0xff]  }
 0x42f   :  { %4488 = vmatprep.subr.bf16.mxu1 %v9587_v53  ;;  %v9612_v53 = vld [vmem:[#allocation2 + $0x300] ss:$8 sps:$4 sm:$0xff]  }
 0x432   :  { %4489 = vmatpush1.bf16.msra.mxu1 %v9585_v26  ;;  %v9617_v26 = vld [vmem:[#allocation2 + $0x314] ss:$8 sps:$4 sm:$0xff]  }
 0x433   :  { %4561 = vmatprep.subr.bf16.mxu1 %v9590_v9  ;;  %v9615_v9 = vld [vmem:[#allocation2 + $0x310] ss:$8 sps:$4 sm:$0xff]  }
 0x435   :  { %4491 = vmatmul.mubr.bf16.vlgmr.msra.gmra.mrb[52].mxu1 %v11288_v13  ;;  %v9600_v13 = vld [vmem:[#allocation2 + $0x140] ss:$8 sps:$4 sm:$0xff]  }
 0x436   :  { %4500 = vmatprep.mubr.bf16.mxu1 %v11302_v21  ;;  %4562 = vmatpush1.bf16.msra.mxu1 %v9588_v6  ;;  %v9620_v6 = vld [vmem:[#allocation2 + $0x324] ss:$8 sps:$4 sm:$0xff]  }
 0x437   :  { %4563 = vmatprep.subr.bf16.mxu1 %v9593_v39  ;;  %v9618_v39 = vld [vmem:[#allocation2 + $0x320] ss:$8 sps:$4 sm:$0xff]  }
 0x43a   :  { %4564 = vmatpush1.bf16.msra.mxu1 %v9591_v42  ;;  %v9623_v42 = vld [vmem:[#allocation2 + $0x334] ss:$8 sps:$4 sm:$0xff]  }
 0x43b   :  { %4565 = vmatprep.subr.bf16.mxu1 %v9596_v32  ;;  %v9621_v32 = vld [vmem:[#allocation2 + $0x330] ss:$8 sps:$4 sm:$0xff]  }
 0x43d   :  { %4501 = vmatmul.mubr.bf16.gmra.mrb[56].mxu1 %v11300_v15 }
 0x43e   :  { %4510 = vmatprep.mubr.bf16.mxu1 %v11320_v38  ;;  %4566 = vmatpush1.bf16.msra.mxu1 %v9594_v57  ;;  %v9626_v57 = vld [vmem:[#allocation2 + $0x344] ss:$8 sps:$4 sm:$0xff]  }
 0x43f   :  { %4567 = vmatprep.subr.bf16.mxu1 %v9599_v25  ;;  %v9629_v25 = vld [vmem:[#allocation2 + $0x354] ss:$8 sps:$4 sm:$0xff]  }
 0x442   :  { %4568 = vmatpush1.bf16.msra.mxu1 %v9597_v59  ;;  %v9627_v59 = vld [vmem:[#allocation2 + $0x350] ss:$8 sps:$4 sm:$0xff]  }
 0x443   :  { %4569 = vmatprep.subr.bf16.mxu1 %v9602_v27  ;;  %v9632_v27 = vld [vmem:[#allocation2 + $0x364] ss:$8 sps:$4 sm:$0xff]  }
 0x445   :  { %4511 = vmatmul.mubr.bf16.gmra.mrb[60].mxu1 %v11318_v5 }
 0x446   :  { %4520 = vmatprep.mubr.bf16.mxu1 %v11338_v10  ;;  %4570 = vmatpush1.bf16.msra.mxu1 %v9600_v13  ;;  %v9630_v13 = vld [vmem:[#allocation2 + $0x360] ss:$8 sps:$4 sm:$0xff]  }
 0x447   :  { %4571 = vmatprep.subr.bf16.mxu1 %v9605_v51  ;;  %v9635_v51 = vld [vmem:[#allocation2 + $0x374] ss:$8 sps:$4 sm:$0xff]  }
 0x44a   :  { %4572 = vmatpush1.bf16.msra.mxu1 %v9603_v61  ;;  %v9633_v61 = vld [vmem:[#allocation2 + $0x370] ss:$8 sps:$4 sm:$0xff]  }
 0x44b   :  { %4573 = vmatprep.subr.bf16.mxu1 %v9608_v4  ;;  %v9638_v4 = vld [vmem:[#allocation2 + $0x384] ss:$8 sps:$4 sm:$0xff]  }
 0x44d   :  { %4521 = vmatmul.mubr.bf16.gmra.mrb[64].mxu1 %v11336_v14 }
 0x44e   :  { %4530 = vmatprep.mubr.bf16.mxu1 %v11356_v7  ;;  %4574 = vmatpush1.bf16.msra.mxu1 %v9606_v22  ;;  %v9636_v22 = vld [vmem:[#allocation2 + $0x380] ss:$8 sps:$4 sm:$0xff]  }
 0x44f   :  { %4575 = vmatprep.subr.bf16.mxu1 %v9611_v44  ;;  %v9641_v44 = vld [vmem:[#allocation2 + $0x394] ss:$8 sps:$4 sm:$0xff]  }
 0x452   :  { %4576 = vmatpush1.bf16.msra.mxu1 %v9609_v52  ;;  %v9639_v52 = vld [vmem:[#allocation2 + $0x390] ss:$8 sps:$4 sm:$0xff]  }
 0x453   :  { %4953 = vmatprep.subr.bf16.mxu1 %v9614_v50  ;;  %v9644_v50 = vld [vmem:[#allocation2 + $0x3a4] ss:$8 sps:$4 sm:$0xff]  }
 0x455   :  { %4531 = vmatmul.mubr.bf16.gmra.mrb[68].mxu1 %v11354_v36 }
 0x456   :  { %4540 = vmatprep.mubr.bf16.mxu1 %v11374_v29 }
 0x45d   :  { %4541 = vmatmul.mubr.bf16.gmra.mrb[72].mxu1 %v11372_v2 }
 0x45e   :  { %4550 = vmatprep.mubr.bf16.mxu1 %v11392_v11 }
 0x465   :  { %4551 = vmatmul.mubr.bf16.gmra.mrb[76].mxu1 %v11390_v3 }
 0x466   :  { %4593 = vmatprep.mubr.bf16.mxu1 %v11720_v60 }
 0x46d   :  { %4594 = vmatmul.mubr.bf16.vlgmr.msra.gmra.mrb[52].mxu1 %v11105_v0  ;;  %v9624_v0 = vld [vmem:[#allocation2 + $0x340] ss:$8 sps:$4 sm:$0xff]  }
 0x46e   :  { %4954 = vmatpush1.bf16.msra.mxu1 %v9612_v53  ;;  %4603 = vmatprep.mubr.bf16.mxu1 %v11720_v60  ;;  %v9642_v53 = vld [vmem:[#allocation2 + $0x3a0] ss:$8 sps:$4 sm:$0xff]  }
 0x46f   :  { %4955 = vmatprep.subr.bf16.mxu1 %v9617_v26  ;;  %v9647_v26 = vld [vmem:[#allocation2 + $0x3b4] ss:$8 sps:$4 sm:$0xff]  }
 0x472   :  { %4956 = vmatpush1.bf16.msra.mxu1 %v9615_v9  ;;  %v9645_v9 = vld [vmem:[#allocation2 + $0x3b0] ss:$8 sps:$4 sm:$0xff]  }
 0x473   :  { %4957 = vmatprep.subr.bf16.mxu1 %v9620_v6  ;;  %v9650_v6 = vld [vmem:[#allocation2 + $0x3c4] ss:$8 sps:$4 sm:$0xff]  }
 0x475   :  { %4604 = vmatmul.mubr.bf16.gmra.mrb[56].mxu1 %v11135_v62 }
 0x476   :  { %4958 = vmatpush1.bf16.msra.mxu1 %v9618_v39  ;;  %4613 = vmatprep.mubr.bf16.mxu1 %v11720_v60  ;;  %v9648_v39 = vld [vmem:[#allocation2 + $0x3c0] ss:$8 sps:$4 sm:$0xff]  }
 0x477   :  { %4959 = vmatprep.subr.bf16.mxu1 %v9623_v42  ;;  %v9653_v42 = vld [vmem:[#allocation2 + $0x3d4] ss:$8 sps:$4 sm:$0xff]  }
 0x47a   :  { %4960 = vmatpush1.bf16.msra.mxu1 %v9621_v32  ;;  %v9651_v32 = vld [vmem:[#allocation2 + $0x3d0] ss:$8 sps:$4 sm:$0xff]  }
 0x47b   :  { %4961 = vmatprep.subr.bf16.mxu1 %v9626_v57  ;;  %v9656_v57 = vld [vmem:[#allocation2 + $0x3e4] ss:$8 sps:$4 sm:$0xff]  }
 0x47d   :  { %4614 = vmatmul.mubr.bf16.gmra.mrb[60].mxu1 %v11155_v54 }
 0x47e   :  { %4962 = vmatpush1.bf16.msra.mxu1 %v9624_v0  ;;  %4623 = vmatprep.mubr.bf16.mxu1 %v11720_v60  ;;  %v9654_v0 = vld [vmem:[#allocation2 + $0x3e0] ss:$8 sps:$4 sm:$0xff]  }
 0x47f   :  { %4963 = vmatprep.subr.bf16.mxu1 %v9629_v25  ;;  %v9659_v25 = vld [vmem:[#allocation2 + $0x3f4] ss:$8 sps:$4 sm:$0xff]  }
 0x482   :  { %4964 = vmatpush1.bf16.msra.mxu1 %v9627_v59  ;;  %v9657_v59 = vld [vmem:[#allocation2 + $0x3f0] ss:$8 sps:$4 sm:$0xff]  }
 0x483   :  { %4965 = vmatprep.subr.bf16.mxu1 %v9632_v27  ;;  %v9662_v27 = vld [vmem:[#allocation2 + $0x404] ss:$8 sps:$4 sm:$0xff]  }
 0x485   :  { %4624 = vmatmul.mubr.bf16.gmra.mrb[64].mxu1 %v11167_v58 }
 0x486   :  { %4966 = vmatpush1.bf16.msra.mxu1 %v9630_v13  ;;  %4633 = vmatprep.mubr.bf16.mxu1 %v11720_v60  ;;  %v9660_v13 = vld [vmem:[#allocation2 + $0x400] ss:$8 sps:$4 sm:$0xff]  }
 0x487   :  { %4967 = vmatprep.subr.bf16.mxu1 %v9635_v51  ;;  %v9665_v51 = vld [vmem:[#allocation2 + $0x414] ss:$8 sps:$4 sm:$0xff]  }
 0x48a   :  { %4968 = vmatpush1.bf16.msra.mxu1 %v9633_v61  ;;  %v9668_v61 = vld [vmem:[#allocation2 + $0x424] ss:$8 sps:$4 sm:$0xff]  }
 0x48b   :  { %4969 = vmatprep.subr.bf16.mxu1 %v9638_v4  ;;  %v9666_v4 = vld [vmem:[#allocation2 + $0x420] ss:$8 sps:$4 sm:$0xff]  }
 0x48d   :  { %4634 = vmatmul.mubr.bf16.gmra.mrb[68].mxu1 %v11188_v18 }
 0x48e   :  { %4970 = vmatpush1.bf16.msra.mxu1 %v9636_v22  ;;  %4643 = vmatprep.mubr.bf16.mxu1 %v11720_v60  ;;  %v9671_v22 = vld [vmem:[#allocation2 + $0x434] ss:$8 sps:$4 sm:$0xff]  }
 0x48f   :  { %4971 = vmatprep.subr.bf16.mxu1 %v9641_v44  ;;  %v9669_v44 = vld [vmem:[#allocation2 + $0x430] ss:$8 sps:$4 sm:$0xff]  }
 0x492   :  { %4972 = vmatpush1.bf16.msra.mxu1 %v9639_v52  ;;  %v9674_v52 = vld [vmem:[#allocation2 + $0x444] ss:$8 sps:$4 sm:$0xff]  }
 0x493   :  { %4973 = vmatprep.subr.bf16.mxu1 %v9644_v50  ;;  %v9677_v50 = vld [vmem:[#allocation2 + $0x454] ss:$8 sps:$4 sm:$0xff]  }
 0x495   :  { %4644 = vmatmul.mubr.bf16.gmra.mrb[72].mxu1 %v11198_v49 }
 0x496   :  { %4974 = vmatpush1.bf16.msra.mxu1 %v9642_v53  ;;  %4653 = vmatprep.mubr.bf16.mxu1 %v11720_v60  ;;  %v9675_v53 = vld [vmem:[#allocation2 + $0x450] ss:$8 sps:$4 sm:$0xff]  }
 0x497   :  { %4975 = vmatprep.subr.bf16.mxu1 %v9647_v26  ;;  %v9680_v26 = vld [vmem:[#allocation2 + $0x464] ss:$8 sps:$4 sm:$0xff]  }
 0x49a   :  { %4976 = vmatpush1.bf16.msra.mxu1 %v9645_v9  ;;  %v9678_v9 = vld [vmem:[#allocation2 + $0x460] ss:$8 sps:$4 sm:$0xff]  }
 0x49b   :  { %4977 = vmatprep.subr.bf16.mxu1 %v9650_v6  ;;  %v9683_v6 = vld [vmem:[#allocation2 + $0x474] ss:$8 sps:$4 sm:$0xff]  }
 0x49d   :  { %4654 = vmatmul.mubr.bf16.gmra.mrb[76].mxu1 %v11208_v12 }
 0x49e   :  { %4978 = vmatpush1.bf16.msra.mxu1 %v9648_v39  ;;  %4985 = vmatprep.mubr.bf16.mxu1 %v11302_v21  ;;  %v9663_v21 = vld [vmem:[#allocation2 + $0x410] ss:$8 sps:$4 sm:$0xff]  }
 0x49f   :  { %4979 = vmatprep.subr.bf16.mxu1 %v9653_v42  ;;  %v9681_v39 = vld [vmem:[#allocation2 + $0x470] ss:$8 sps:$4 sm:$0xff]   ;;  %v9686_v42 = vld [vmem:[#allocation2 + $0x484] ss:$8 sps:$4 sm:$0xff]  }
 0x4a2   :  { %4980 = vmatpush1.bf16.msra.mxu1 %v9651_v32  ;;  %v9684_v32 = vld [vmem:[#allocation2 + $0x480] ss:$8 sps:$4 sm:$0xff]  }
 0x4a3   :  { %4981 = vmatprep.subr.bf16.mxu1 %v9656_v57  ;;  %v9689_v57 = vld [vmem:[#allocation2 + $0x494] ss:$8 sps:$4 sm:$0xff]  }
 0x4a6   :  { %4982 = vmatpush1.bf16.msra.mxu1 %v9654_v0  ;;  %v9687_v0 = vld [vmem:[#allocation2 + $0x490] ss:$8 sps:$4 sm:$0xff]  }
 0x4a7   :  { %4983 = vmatprep.subr.bf16.mxu1 %v9659_v25  ;;  %v9692_v25 = vld [vmem:[#allocation2 + $0x4a4] ss:$8 sps:$4 sm:$0xff]  }
 0x4aa   :  { %4984 = vmatpush1.bf16.msra.mxu1 %v9657_v59  ;;  %v9690_v59 = vld [vmem:[#allocation2 + $0x4a0] ss:$8 sps:$4 sm:$0xff]  }
 0x4ab   :  { %5056 = vmatprep.subr.bf16.mxu1 %v9662_v27  ;;  %v9695_v27 = vld [vmem:[#allocation2 + $0x4b4] ss:$8 sps:$4 sm:$0xff]  }
 0x4ad   :  { %4986 = vmatmul.mubr.bf16.vlgmr.msra.gmra.mrb[52].mxu1 %v11300_v15  ;;  %v9672_v15 = vld [vmem:[#allocation2 + $0x440] ss:$8 sps:$4 sm:$0xff]  }
 0x4ae   :  { %4995 = vmatprep.mubr.bf16.mxu1 %v11320_v38  ;;  %5057 = vmatpush1.bf16.msra.mxu1 %v9660_v13  ;;  %v9693_v13 = vld [vmem:[#allocation2 + $0x4b0] ss:$8 sps:$4 sm:$0xff]  }
 0x4af   :  { %5058 = vmatprep.subr.bf16.mxu1 %v9665_v51  ;;  %v9698_v51 = vld [vmem:[#allocation2 + $0x4c4] ss:$8 sps:$4 sm:$0xff]  }
 0x4b2   :  { %5059 = vmatpush1.bf16.msra.mxu1 %v9663_v21  ;;  %v9701_v21 = vld [vmem:[#allocation2 + $0x4d4] ss:$8 sps:$4 sm:$0xff]  }
 0x4b3   :  { %5060 = vmatprep.subr.bf16.mxu1 %v9668_v61  ;;  %v9699_v61 = vld [vmem:[#allocation2 + $0x4d0] ss:$8 sps:$4 sm:$0xff]  }
 0x4b5   :  { %4996 = vmatmul.mubr.bf16.gmra.mrb[56].mxu1 %v11318_v5 }
 0x4b6   :  { %5005 = vmatprep.mubr.bf16.mxu1 %v11338_v10  ;;  %5061 = vmatpush1.bf16.msra.mxu1 %v9666_v4  ;;  %v9704_v4 = vld [vmem:[#allocation2 + $0x4e4] ss:$8 sps:$4 sm:$0xff]  }
 0x4b7   :  { %5062 = vmatprep.subr.bf16.mxu1 %v9671_v22  ;;  %v9702_v22 = vld [vmem:[#allocation2 + $0x4e0] ss:$8 sps:$4 sm:$0xff]  }
 0x4ba   :  { %5063 = vmatpush1.bf16.msra.mxu1 %v9669_v44  ;;  %v9707_v44 = vld [vmem:[#allocation2 + $0x4f4] ss:$8 sps:$4 sm:$0xff]  }
 0x4bb   :  { %5064 = vmatprep.subr.bf16.mxu1 %v9674_v52  ;;  %v9705_v52 = vld [vmem:[#allocation2 + $0x4f0] ss:$8 sps:$4 sm:$0xff]  }
 0x4bd   :  { %5006 = vmatmul.mubr.bf16.gmra.mrb[60].mxu1 %v11336_v14 }
 0x4be   :  { %5015 = vmatprep.mubr.bf16.mxu1 %v11356_v7  ;;  %5065 = vmatpush1.bf16.msra.mxu1 %v9672_v15  ;;  %v9710_v15 = vld [vmem:[#allocation2 + $0x504] ss:$8 sps:$4 sm:$0xff]  }
 0x4bf   :  { %5066 = vmatprep.subr.bf16.mxu1 %v9677_v50  ;;  %v9708_v50 = vld [vmem:[#allocation2 + $0x500] ss:$8 sps:$4 sm:$0xff]  }
 0x4c2   :  { %5067 = vmatpush1.bf16.msra.mxu1 %v9675_v53  ;;  %v9713_v53 = vld [vmem:[#allocation2 + $0x514] ss:$8 sps:$4 sm:$0xff]  }
 0x4c3   :  { %5068 = vmatprep.subr.bf16.mxu1 %v9680_v26  ;;  %v9711_v26 = vld [vmem:[#allocation2 + $0x510] ss:$8 sps:$4 sm:$0xff]  }
 0x4c5   :  { %5016 = vmatmul.mubr.bf16.gmra.mrb[64].mxu1 %v11354_v36 }
 0x4c6   :  { %5025 = vmatprep.mubr.bf16.mxu1 %v11374_v29  ;;  %5069 = vmatpush1.bf16.msra.mxu1 %v9678_v9  ;;  %v9716_v9 = vld [vmem:[#allocation2 + $0x524] ss:$8 sps:$4 sm:$0xff]  }
 0x4c7   :  { %5070 = vmatprep.subr.bf16.mxu1 %v9683_v6  ;;  %v9714_v6 = vld [vmem:[#allocation2 + $0x520] ss:$8 sps:$4 sm:$0xff]  }
 0x4ca   :  { %5071 = vmatpush1.bf16.msra.mxu1 %v9681_v39  ;;  %v9719_v39 = vld [vmem:[#allocation2 + $0x534] ss:$8 sps:$4 sm:$0xff]  }
 0x4cb   :  { %5476 = vmatprep.subr.bf16.mxu1 %v9686_v42  ;;  %v9717_v42 = vld [vmem:[#allocation2 + $0x530] ss:$8 sps:$4 sm:$0xff]  }
 0x4cd   :  { %5026 = vmatmul.mubr.bf16.gmra.mrb[68].mxu1 %v11372_v2 }
 0x4ce   :  { %5035 = vmatprep.mubr.bf16.mxu1 %v11392_v11 }
 0x4d5   :  { %5036 = vmatmul.mubr.bf16.gmra.mrb[72].mxu1 %v11390_v3 }
 0x4d6   :  { %5045 = vmatprep.mubr.bf16.mxu1 %v11411_v34 }
 0x4dd   :  { %5046 = vmatmul.mubr.bf16.gmra.mrb[76].mxu1 %v11409_v40 }
 0x4de   :  { %5088 = vmatprep.mubr.bf16.mxu1 %v11720_v60 }
 0x4e5   :  { %5089 = vmatmul.mubr.bf16.vlgmr.msra.gmra.mrb[52].mxu1 %v11135_v62  ;;  %v9696_v62 = vld [vmem:[#allocation2 + $0x4c0] ss:$8 sps:$4 sm:$0xff]  }
 0x4e6   :  { %5477 = vmatpush1.bf16.msra.mxu1 %v9684_v32  ;;  %5098 = vmatprep.mubr.bf16.mxu1 %v11720_v60  ;;  %v9722_v32 = vld [vmem:[#allocation2 + $0x544] ss:$8 sps:$4 sm:$0xff]  }
 0x4e7   :  { %5478 = vmatprep.subr.bf16.mxu1 %v9689_v57  ;;  %v9720_v57 = vld [vmem:[#allocation2 + $0x540] ss:$8 sps:$4 sm:$0xff]  }
 0x4ea   :  { %5479 = vmatpush1.bf16.msra.mxu1 %v9687_v0  ;;  %v9725_v0 = vld [vmem:[#allocation2 + $0x554] ss:$8 sps:$4 sm:$0xff]  }
 0x4eb   :  { %5480 = vmatprep.subr.bf16.mxu1 %v9692_v25  ;;  %v9723_v25 = vld [vmem:[#allocation2 + $0x550] ss:$8 sps:$4 sm:$0xff]  }
 0x4ed   :  { %5099 = vmatmul.mubr.bf16.gmra.mrb[56].mxu1 %v11155_v54 }
 0x4ee   :  { %5481 = vmatpush1.bf16.msra.mxu1 %v9690_v59  ;;  %5108 = vmatprep.mubr.bf16.mxu1 %v11720_v60  ;;  %v9728_v59 = vld [vmem:[#allocation2 + $0x564] ss:$8 sps:$4 sm:$0xff]  }
 0x4ef   :  { %5482 = vmatprep.subr.bf16.mxu1 %v9695_v27  ;;  %v9726_v27 = vld [vmem:[#allocation2 + $0x560] ss:$8 sps:$4 sm:$0xff]  }
 0x4f2   :  { %5483 = vmatpush1.bf16.msra.mxu1 %v9693_v13  ;;  %v9731_v13 = vld [vmem:[#allocation2 + $0x574] ss:$8 sps:$4 sm:$0xff]  }
 0x4f3   :  { %5484 = vmatprep.subr.bf16.mxu1 %v9698_v51  ;;  %v9729_v51 = vld [vmem:[#allocation2 + $0x570] ss:$8 sps:$4 sm:$0xff]  }
 0x4f5   :  { %5109 = vmatmul.mubr.bf16.gmra.mrb[60].mxu1 %v11167_v58 }
 0x4f6   :  { %5485 = vmatpush1.bf16.msra.mxu1 %v9696_v62  ;;  %5118 = vmatprep.mubr.bf16.mxu1 %v11720_v60  ;;  %v9734_v62 = vld [vmem:[#allocation2 + $0x584] ss:$8 sps:$4 sm:$0xff]  }
 0x4f7   :  { %5486 = vmatprep.subr.bf16.mxu1 %v9701_v21  ;;  %v9732_v21 = vld [vmem:[#allocation2 + $0x580] ss:$8 sps:$4 sm:$0xff]  }
 0x4fa   :  { %5487 = vmatpush1.bf16.msra.mxu1 %v9699_v61  ;;  %v9737_v61 = vld [vmem:[#allocation2 + $0x594] ss:$8 sps:$4 sm:$0xff]  }
 0x4fb   :  { %5488 = vmatprep.subr.bf16.mxu1 %v9704_v4  ;;  %v9740_v4 = vld [vmem:[#allocation2 + $0x5a4] ss:$8 sps:$4 sm:$0xff]  }
 0x4fd   :  { %5119 = vmatmul.mubr.bf16.gmra.mrb[64].mxu1 %v11188_v18 }
 0x4fe   :  { %5489 = vmatpush1.bf16.msra.mxu1 %v9702_v22  ;;  %5128 = vmatprep.mubr.bf16.mxu1 %v11720_v60  ;;  %v9738_v22 = vld [vmem:[#allocation2 + $0x5a0] ss:$8 sps:$4 sm:$0xff]  }
 0x4ff   :  { %5490 = vmatprep.subr.bf16.mxu1 %v9707_v44  ;;  %v9743_v44 = vld [vmem:[#allocation2 + $0x5b4] ss:$8 sps:$4 sm:$0xff]  }
 0x502   :  { %5491 = vmatpush1.bf16.msra.mxu1 %v9705_v52  ;;  %v9741_v52 = vld [vmem:[#allocation2 + $0x5b0] ss:$8 sps:$4 sm:$0xff]  }
 0x503   :  { %5492 = vmatprep.subr.bf16.mxu1 %v9710_v15  ;;  %v9746_v15 = vld [vmem:[#allocation2 + $0x5c4] ss:$8 sps:$4 sm:$0xff]  }
 0x505   :  { %5129 = vmatmul.mubr.bf16.gmra.mrb[68].mxu1 %v11198_v49 }
 0x506   :  { %5493 = vmatpush1.bf16.msra.mxu1 %v9708_v50  ;;  %5138 = vmatprep.mubr.bf16.mxu1 %v11720_v60  ;;  %v9747_v50 = vld [vmem:[#allocation2 + $0x5d0] ss:$8 sps:$4 sm:$0xff]  }
 0x507   :  { %5494 = vmatprep.subr.bf16.mxu1 %v9713_v53  ;;  %v9752_v53 = vld [vmem:[#allocation2 + $0x5e4] ss:$8 sps:$4 sm:$0xff]  }
 0x50a   :  { %5495 = vmatpush1.bf16.msra.mxu1 %v9711_v26  ;;  %v9753_v26 = vld [vmem:[#allocation2 + $0x5f0] ss:$8 sps:$4 sm:$0xff]  }
 0x50b   :  { %5496 = vmatprep.subr.bf16.mxu1 %v9716_v9  ;;  %v9758_v9 = vld [vmem:[#allocation2 + $0x604] ss:$8 sps:$4 sm:$0xff]  }
 0x50d   :  { %5139 = vmatmul.mubr.bf16.gmra.mrb[72].mxu1 %v11208_v12 }
 0x50e   :  { %5497 = vmatpush1.bf16.msra.mxu1 %v9714_v6  ;;  %5148 = vmatprep.mubr.bf16.mxu1 %v11720_v60  ;;  %v9771_v6 = vld [vmem:[#allocation2 + $0x650] ss:$8 sps:$4 sm:$0xff]  }
 0x50f   :  { %5498 = vmatprep.subr.bf16.mxu1 %v9719_v39  ;;  %v9776_v39 = vld [vmem:[#allocation2 + $0x664] ss:$8 sps:$4 sm:$0xff]  }
 0x512   :  { %5499 = vmatpush1.bf16.msra.mxu1 %v9717_v42  ;;  %v9779_v42 = vld [vmem:[#allocation2 + $0x674] ss:$8 sps:$4 sm:$0xff]  }
 0x513   :  { %5500 = vmatprep.subr.bf16.mxu1 %v9722_v32  ;;  %v9777_v32 = vld [vmem:[#allocation2 + $0x670] ss:$8 sps:$4 sm:$0xff]  }
 0x515   :  { %5149 = vmatmul.mubr.bf16.gmra.mrb[76].mxu1 %v11218_v56 }
 0x516   :  { %5501 = vmatpush1.bf16.msra.mxu1 %v9720_v57  ;;  %5508 = vmatprep.mubr.bf16.mxu1 %v11310_v43  ;;  %v9735_v43 = vld [vmem:[#allocation2 + $0x590] ss:$8 sps:$4 sm:$0xff]   ;;  %v9782_v57 = vld [vmem:[#allocation2 + $0x684] ss:$8 sps:$4 sm:$0xff]  }
 0x517   :  { %5502 = vmatprep.subr.bf16.mxu1 %v9725_v0  ;;  %v9785_v0 = vld [vmem:[#allocation2 + $0x694] ss:$8 sps:$4 sm:$0xff]  }
 0x51a   :  { %5503 = vmatpush1.bf16.msra.mxu1 %v9723_v25  ;;  %v9783_v25 = vld [vmem:[#allocation2 + $0x690] ss:$8 sps:$4 sm:$0xff]  }
 0x51b   :  { %5504 = vmatprep.subr.bf16.mxu1 %v9728_v59  ;;  %v9788_v59 = vld [vmem:[#allocation2 + $0x6a4] ss:$8 sps:$4 sm:$0xff]  }
 0x51e   :  { %5505 = vmatpush1.bf16.msra.mxu1 %v9726_v27  ;;  %v9791_v27 = vld [vmem:[#allocation2 + $0x6b4] ss:$8 sps:$4 sm:$0xff]  }
 0x51f   :  { %5506 = vmatprep.subr.bf16.mxu1 %v9731_v13  ;;  %v9828_v13 = vld [vmem:[#allocation4 + $0xc0] sm:$0xff]  }
 0x520   :  { %8172 = vmatprep.subr.bf16.mxu0 %v9828_v13 }
 0x522   :  { %5507 = vmatpush1.bf16.msra.mxu1 %v9729_v51  ;;  %v9829_v51 = vld [vmem:[#allocation4 + $0x80] sm:$0xff]  }
 0x523   :  { %5579 = vmatprep.subr.bf16.mxu1 %v9734_v62  ;;  %v9830_v62 = vld [vmem:[#allocation4 + $0xc8] sm:$0xff]   ;;  %8173 = vmatpush3.bf16.msra.mxu0 %v9829_v51 }
 0x524   :  { %8174 = vmatprep.subr.bf16.mxu0 %v9830_v62 }
 0x525   :  { %5509 = vmatmul.mubr.bf16.vlgmr.msra.gmra.mrb[52].mxu1 %v11308_v30  ;;  %v9744_v30 = vld [vmem:[#allocation2 + $0x5c0] ss:$8 sps:$4 sm:$0xff]  }
 0x526   :  { %5518 = vmatprep.mubr.bf16.mxu1 %v11328_v31  ;;  %5580 = vmatpush1.bf16.msra.mxu1 %v9732_v21  ;;  %v9749_v31 = vld [vmem:[#allocation2 + $0x5d4] ss:$8 sps:$4 sm:$0xff]   ;;  %v9789_v21 = vld [vmem:[#allocation2 + $0x6b0] ss:$8 sps:$4 sm:$0xff]  }
 0x527   :  { %5581 = vmatprep.subr.bf16.mxu1 %v9737_v61  ;;  %v9831_v61 = vld [vmem:[#allocation4 + $0x88] sm:$0xff]  }
 0x528   :  { %8175 = vmatpush3.bf16.msra.mxu0 %v9831_v61 }
 0x52a   :  { %5582 = vmatpush1.bf16.msra.mxu1 %v9735_v43  ;;  %v9832_v43 = vld [vmem:[#allocation4 + $0xd0] sm:$0xff]  }
 0x52b   :  { %5583 = vmatprep.subr.bf16.mxu1 %v9740_v4  ;;  %v9792_v4 = vld [vmem:[#allocation2 + $0x6c0] ss:$8 sps:$4 sm:$0xff]   ;;  %8176 = vmatprep.subr.bf16.mxu0 %v9832_v43 }
 0x52d   :  { %5519 = vmatmul.mubr.bf16.gmra.mrb[56].mxu1 %v11326_v23  ;;  %v9750_v23 = vld [vmem:[#allocation2 + $0x5e0] ss:$8 sps:$4 sm:$0xff]  }
 0x52e   :  { %5528 = vmatprep.mubr.bf16.mxu1 %v11346_v28  ;;  %5584 = vmatpush1.bf16.msra.mxu1 %v9738_v22  ;;  %v9755_v28 = vld [vmem:[#allocation2 + $0x5f4] ss:$8 sps:$4 sm:$0xff]  }
 0x52f   :  { %5585 = vmatprep.subr.bf16.mxu1 %v9743_v44  ;;  %v9797_v22 = vld [vmem:[#allocation2 + $0x6d4] ss:$8 sps:$4 sm:$0xff]   ;;  %v11727_v44 = vld [vmem:[#allocation12_spill] sm:$0xff] }
 0x532   :  { %5586 = vmatpush1.bf16.msra.mxu1 %v9741_v52  ;;  %v9834_v52 = vld [vmem:[#allocation4 + $0xd8] sm:$0xff]  }
 0x533   :  { %5587 = vmatprep.subr.bf16.mxu1 %v9746_v15  ;;  %v9795_v15 = vld [vmem:[#allocation2 + $0x6d0] ss:$8 sps:$4 sm:$0xff]  }
 0x535   :  { %5529 = vmatmul.mubr.bf16.gmra.mrb[60].mxu1 %v11344_v19  ;;  %v9756_v19 = vld [vmem:[#allocation2 + $0x600] ss:$8 sps:$4 sm:$0xff]  }
 0x536   :  { %5538 = vmatprep.mubr.bf16.mxu1 %v11364_v55  ;;  %5588 = vmatpush1.bf16.msra.mxu1 %v9744_v30  ;;  %v9759_v55 = vld [vmem:[#allocation2 + $0x610] ss:$8 sps:$4 sm:$0xff]   ;;  %v9800_v30 = vld [vmem:[#allocation2 + $0x6e4] ss:$8 sps:$4 sm:$0xff]  }
 0x537   :  { %5589 = vmatprep.subr.bf16.mxu1 %v9749_v31  ;;  %v9835_v31 = vld [vmem:[#allocation4 + $0x98] sm:$0xff]  }
 0x53a   :  { %5590 = vmatpush1.bf16.msra.mxu1 %v9747_v50  ;;  %v9836_v50 = vld [vmem:[#allocation4 + $0xe0] sm:$0xff]  }
 0x53b   :  { %5591 = vmatprep.subr.bf16.mxu1 %v9752_v53  ;;  %v9798_v53 = vld [vmem:[#allocation2 + $0x6e0] ss:$8 sps:$4 sm:$0xff]  }
 0x53d   :  { %5539 = vmatmul.mubr.bf16.gmra.mrb[64].mxu1 %v11362_v16  ;;  %v9761_v16 = vld [vmem:[#allocation2 + $0x614] ss:$8 sps:$4 sm:$0xff]  }
 0x53e   :  { %5548 = vmatprep.mubr.bf16.mxu1 %v11382_v63  ;;  %5592 = vmatpush1.bf16.msra.mxu1 %v9750_v23  ;;  %v9762_v63 = vld [vmem:[#allocation2 + $0x620] ss:$8 sps:$4 sm:$0xff]   ;;  %v9803_v23 = vld [vmem:[#allocation2 + $0x6f4] ss:$8 sps:$4 sm:$0xff]  }
 0x53f   :  { %5593 = vmatprep.subr.bf16.mxu1 %v9755_v28  ;;  %v9837_v28 = vld [vmem:[#allocation4 + $0xa0] sm:$0xff]  }
 0x542   :  { %5594 = vmatpush1.bf16.msra.mxu1 %v9753_v26  ;;  %v9838_v26 = vld [vmem:[#allocation4 + $0xe8] sm:$0xff]  }
 0x543   :  { %5999 = vmatprep.subr.bf16.mxu1 %v9758_v9  ;;  %v9801_v9 = vld [vmem:[#allocation2 + $0x6f0] ss:$8 sps:$4 sm:$0xff]  }
 0x545   :  { %5549 = vmatmul.mubr.bf16.gmra.mrb[68].mxu1 %v11380_v20  ;;  %v9764_v20 = vld [vmem:[#allocation2 + $0x624] ss:$8 sps:$4 sm:$0xff]  }
 0x546   :  { %5558 = vmatprep.mubr.bf16.mxu1 %v11400_v46  ;;  %v9765_v46 = vld [vmem:[#allocation2 + $0x630] ss:$8 sps:$4 sm:$0xff]  }
 0x54d   :  { %5559 = vmatmul.mubr.bf16.gmra.mrb[72].mxu1 %v11398_v17  ;;  %v9767_v17 = vld [vmem:[#allocation2 + $0x634] ss:$8 sps:$4 sm:$0xff]  }
 0x54e   :  { %5568 = vmatprep.mubr.bf16.mxu1 %v11421_v24  ;;  %v9773_v24 = vld [vmem:[#allocation2 + $0x654] ss:$8 sps:$4 sm:$0xff]  }
 0x555   :  { %5569 = vmatmul.mubr.bf16.gmra.mrb[76].mxu1 %v11419_v33  ;;  %v9770_v33 = vld [vmem:[#allocation2 + $0x644] ss:$8 sps:$4 sm:$0xff]  }
 0x556   :  { %5611 = vmatprep.mubr.bf16.mxu1 %v11720_v60 }
 0x55d   :  { %5612 = vmatmul.mubr.bf16.vlgmr.msra.gmra.mrb[52].mxu1 %v11129_v1  ;;  %v9768_v1 = vld [vmem:[#allocation2 + $0x640] ss:$8 sps:$4 sm:$0xff]  }
 0x55e   :  { %6000 = vmatpush1.bf16.msra.mxu1 %v9756_v19  ;;  %5621 = vmatprep.mubr.bf16.mxu1 %v11720_v60  ;;  %v9806_v19 = vld [vmem:[#allocation2 + $0x704] ss:$8 sps:$4 sm:$0xff]  }
 0x55f   :  { %6001 = vmatprep.subr.bf16.mxu1 %v9761_v16  ;;  %v9840_v16 = vld [vmem:[#allocation4 + $0xf0] sm:$0xff]  }
 0x562   :  { %6002 = vmatpush1.bf16.msra.mxu1 %v9759_v55  ;;  %v9804_v55 = vld [vmem:[#allocation2 + $0x700] ss:$8 sps:$4 sm:$0xff]  }
 0x563   :  { %6003 = vmatprep.subr.bf16.mxu1 %v9764_v20  ;;  %v9809_v20 = vld [vmem:[#allocation2 + $0x714] ss:$8 sps:$4 sm:$0xff]  }
 0x565   :  { %5622 = vmatmul.mubr.bf16.gmra.mrb[56].mxu1 %v11152_v41  ;;  %v9774_v41 = vld [vmem:[#allocation2 + $0x660] ss:$8 sps:$4 sm:$0xff]  }
 0x566   :  { %6004 = vmatpush1.bf16.msra.mxu1 %v9762_v63  ;;  %5631 = vmatprep.mubr.bf16.mxu1 %v11720_v60  ;;  %v9841_v63 = vld [vmem:[#allocation4 + $0xb0] sm:$0xff]  }
 0x567   :  { %6005 = vmatprep.subr.bf16.mxu1 %v9767_v17  ;;  %v9807_v17 = vld [vmem:[#allocation2 + $0x710] ss:$8 sps:$4 sm:$0xff]  }
 0x56a   :  { %6006 = vmatpush1.bf16.msra.mxu1 %v9765_v46  ;;  %v9812_v46 = vld [vmem:[#allocation2 + $0x724] ss:$8 sps:$4 sm:$0xff]  }
 0x56b   :  { %6007 = vmatprep.subr.bf16.mxu1 %v9770_v33  ;;  %v9810_v33 = vld [vmem:[#allocation2 + $0x720] ss:$8 sps:$4 sm:$0xff]  }
 0x56d   :  { %5632 = vmatmul.mubr.bf16.gmra.mrb[60].mxu1 %v11165_v8  ;;  %v9780_v8 = vld [vmem:[#allocation2 + $0x680] ss:$8 sps:$4 sm:$0xff]  }
 0x56e   :  { %6008 = vmatpush1.bf16.msra.mxu1 %v9768_v1  ;;  %5641 = vmatprep.mubr.bf16.mxu1 %v11720_v60  ;;  %v9815_v1 = vld [vmem:[#allocation2 + $0x734] ss:$8 sps:$4 sm:$0xff]  }
 0x56f   :  { %6009 = vmatprep.subr.bf16.mxu1 %v9773_v24  ;;  %v9813_v24 = vld [vmem:[#allocation2 + $0x730] ss:$8 sps:$4 sm:$0xff]  }
 0x572   :  { %6010 = vmatpush1.bf16.msra.mxu1 %v9771_v6  ;;  %v9816_v6 = vld [vmem:[#allocation2 + $0x740] ss:$8 sps:$4 sm:$0xff]  }
 0x573   :  { %6011 = vmatprep.subr.bf16.mxu1 %v9776_v39  ;;  %v9819_v39 = vld [vmem:[#allocation2 + $0x750] ss:$8 sps:$4 sm:$0xff]  }
 0x575   :  { %5642 = vmatmul.mubr.bf16.gmra.mrb[64].mxu1 %v11185_v47  ;;  %v9786_v47 = vld [vmem:[#allocation2 + $0x6a0] ss:$8 sps:$4 sm:$0xff]  }
 0x576   :  { %6012 = vmatpush1.bf16.msra.mxu1 %v9774_v41  ;;  %5651 = vmatprep.mubr.bf16.mxu1 %v11720_v60  ;;  %v9824_v41 = vld [vmem:[#allocation2 + $0x764] ss:$8 sps:$4 sm:$0xff]  }
 0x577   :  { %6013 = vmatprep.subr.bf16.mxu1 %v9779_v42  ;;  %v9825_v42 = vld [vmem:[#allocation2 + $0x770] ss:$8 sps:$4 sm:$0xff]  }
 0x57a   :  { %6014 = vmatpush1.bf16.msra.mxu1 %v9777_v32 }
 0x57b   :  { %6015 = vmatprep.subr.bf16.mxu1 %v9782_v57 }
 0x57d   :  { %5652 = vmatmul.mubr.bf16.gmra.mrb[68].mxu1 %v11195_v48  ;;  %v9794_v48 = vld [vmem:[#allocation2 + $0x6c4] ss:$8 sps:$4 sm:$0xff]  }
 0x57e   :  { %6016 = vmatpush1.bf16.msra.mxu1 %v9780_v8  ;;  %5661 = vmatprep.mubr.bf16.mxu1 %v11720_v60 }
 0x57f   :  { %6017 = vmatprep.subr.bf16.mxu1 %v9785_v0 }
 0x582   :  { %6018 = vmatpush1.bf16.msra.mxu1 %v9783_v25 }
 0x583   :  { %6019 = vmatprep.subr.bf16.mxu1 %v9788_v59 }
 0x585   :  { %5662 = vmatmul.mubr.bf16.gmra.mrb[72].mxu1 %v11205_v45  ;;  %v9833_v45 = vld [vmem:[#allocation4 + $0x90] sm:$0xff]  }
 0x586   :  { %6020 = vmatpush1.bf16.msra.mxu1 %v9786_v47  ;;  %5671 = vmatprep.mubr.bf16.mxu1 %v11720_v60 }
 0x587   :  { %6021 = vmatprep.subr.bf16.mxu1 %v9791_v27  ;;  %8177 = vmatpush3.bf16.msra.mxu0 %v9833_v45 }
 0x588   :  { %8178 = vmatprep.subr.bf16.mxu0 %v9834_v52 }
 0x58a   :  { %6022 = vmatpush1.bf16.msra.mxu1 %v9789_v21 }
 0x58b   :  { %6023 = vmatprep.subr.bf16.mxu1 %v9794_v48  ;;  %8179 = vmatpush3.bf16.msra.mxu0 %v9835_v31 }
 0x58c   :  { %8180 = vmatprep.subr.bf16.mxu0 %v9836_v50  ;;  %v9845_v50 = vld [vmem:[#allocation4] sm:$0xff]  }
 0x58d   :  { %5672 = vmatmul.mubr.bf16.gmra.mrb[76].mxu1 %v11727_v44 }
 0x58e   :  { %6024 = vmatpush1.bf16.msra.mxu1 %v9792_v4  ;;  %6031 = vmatprep.mubr.bf16.mxu1 %v11320_v38  ;;  %v9839_v38 = vld [vmem:[#allocation4 + $0xa8] sm:$0xff]  }
 0x58f   :  { %6025 = vmatprep.subr.bf16.mxu1 %v9797_v22  ;;  %8181 = vmatpush3.bf16.msra.mxu0 %v9837_v28  ;;  %v9846_v28 = vld [vmem:[#allocation4 + $0x48] sm:$0xff]  }
 0x590   :  { %8182 = vmatprep.subr.bf16.mxu0 %v9838_v26 }
 0x592   :  { %6026 = vmatpush1.bf16.msra.mxu1 %v9795_v15 }
 0x593   :  { %6027 = vmatprep.subr.bf16.mxu1 %v9800_v30  ;;  %8183 = vmatpush3.bf16.msra.mxu0 %v9839_v38 }
 0x594   :  { %8184 = vmatprep.subr.bf16.mxu0 %v9840_v16 }
 0x596   :  { %6028 = vmatpush1.bf16.msra.mxu1 %v9798_v53 }
 0x597   :  { %6029 = vmatprep.subr.bf16.mxu1 %v9803_v23  ;;  %8185 = vmatpush3.bf16.msra.mxu0 %v9841_v63 }
 0x59a   :  { %6030 = vmatpush1.bf16.msra.mxu1 %v9801_v9 }
 0x59b   :  { %6102 = vmatprep.subr.bf16.mxu1 %v9806_v19 }
 0x59d   :  { %6032 = vmatmul.mubr.bf16.vlgmr.msra.gmra.mrb[52].mxu1 %v11318_v5  ;;  %v9818_v5 = vld [vmem:[#allocation2 + $0x744] ss:$8 sps:$4 sm:$0xff]  }
 0x59e   :  { %6041 = vmatprep.mubr.bf16.mxu1 %v11338_v10  ;;  %6103 = vmatpush1.bf16.msra.mxu1 %v9804_v55  ;;  %v9821_v10 = vld [vmem:[#allocation2 + $0x754] ss:$8 sps:$4 sm:$0xff]   ;;  %v9847_v55 = vld [vmem:[#allocation4 + $0x8] sm:$0xff]  }
 0x59f   :  { %6104 = vmatprep.subr.bf16.mxu1 %v9809_v20 }
 0x5a2   :  { %6105 = vmatpush1.bf16.msra.mxu1 %v9807_v17  ;;  %v9848_v17 = vld [vmem:[#allocation4 + $0x50] sm:$0xff]  }
 0x5a3   :  { %6106 = vmatprep.subr.bf16.mxu1 %v9812_v46 }
 0x5a5   :  { %6042 = vmatmul.mubr.bf16.gmra.mrb[56].mxu1 %v11336_v14  ;;  %v9822_v14 = vld [vmem:[#allocation2 + $0x760] ss:$8 sps:$4 sm:$0xff]  }
 0x5a6   :  { %6051 = vmatprep.mubr.bf16.mxu1 %v11356_v7  ;;  %6107 = vmatpush1.bf16.msra.mxu1 %v9810_v33  ;;  %v9827_v7 = vld [vmem:[#allocation2 + $0x774] ss:$8 sps:$4 sm:$0xff]  }
 0x5a7   :  { %6108 = vmatprep.subr.bf16.mxu1 %v9815_v1 }
 0x5aa   :  { %6109 = vmatpush1.bf16.msra.mxu1 %v9813_v24 }
 0x5ab   :  { %6110 = vmatprep.subr.bf16.mxu1 %v9818_v5 }
 0x5ad   :  { %6052 = vmatmul.mubr.bf16.gmra.mrb[60].mxu1 %v11354_v36  ;;  %v9843_v36 = vld [vmem:[#allocation4 + $0xb8] sm:$0xff]  }
 0x5ae   :  { %6061 = vmatprep.mubr.bf16.mxu1 %v11374_v29  ;;  %6111 = vmatpush1.bf16.msra.mxu1 %v9816_v6  ;;  %v9849_v6 = vld [vmem:[#allocation4 + $0x10] sm:$0xff]  }
 0x5af   :  { %6112 = vmatprep.subr.bf16.mxu1 %v9821_v10 }
 0x5b2   :  { %6113 = vmatpush1.bf16.msra.mxu1 %v9819_v39 }
 0x5b3   :  { %6114 = vmatprep.subr.bf16.mxu1 %v9824_v41  ;;  %v9850_v41 = vld [vmem:[#allocation4 + $0x58] sm:$0xff]  }
 0x5b5   :  { %6062 = vmatmul.mubr.bf16.gmra.mrb[64].mxu1 %v11372_v2  ;;  %v11729_v2 = vld [vmem:[#allocation10_spill] sm:$0xff] }
 0x5b6   :  { %6071 = vmatprep.mubr.bf16.mxu1 %v11392_v11  ;;  %6115 = vmatpush1.bf16.msra.mxu1 %v9822_v14 }
 0x5b7   :  { %6116 = vmatprep.subr.bf16.mxu1 %v9827_v7 }
 0x5ba   :  { %6117 = vmatpush1.bf16.msra.mxu1 %v9825_v42 }
 0x5bd   :  { %6072 = vmatmul.mubr.bf16.gmra.mrb[68].mxu1 %v11390_v3 }
 0x5be   :  { %6081 = vmatprep.mubr.bf16.mxu1 %v11411_v34 }
 0x5c5   :  { %6082 = vmatmul.mubr.bf16.gmra.mrb[72].mxu1 %v11409_v40 }
 0x5c6   :  { %6091 = vmatprep.mubr.bf16.mxu1 %v11431_v37 }
 0x5cd   :  { %6092 = vmatmul.mubr.bf16.gmra.mrb[76].mxu1 %v11429_v35 }
 0x5ce   :  { %6134 = vmatprep.mubr.bf16.mxu1 %v11720_v60 }
 0x5d5   :  { %6135 = vmatmul.mubr.bf16.vlgmr.msra.gmra.mrb[52].mxu1 %v11155_v54  ;;  %v11728_v54 = vld [vmem:[#allocation13_spill] sm:$0xff] }
 0x5d6   :  { %6144 = vmatprep.mubr.bf16.mxu1 %v11720_v60 }
 0x5dd   :  { %6145 = vmatmul.mubr.bf16.gmra.mrb[56].mxu1 %v11167_v58  ;;  %v9842_v58 = vld [vmem:[#allocation4 + $0xf8] sm:$0xff]  }
 0x5de   :  { %6154 = vmatprep.mubr.bf16.mxu1 %v11720_v60  ;;  %8186 = vmatprep.subr.bf16.mxu0 %v9842_v58 }
 0x5df   :  { %8187 = vmatpush3.bf16.msra.mxu0 %v9843_v36  ;;  %v9851_v36 = vld [vmem:[#allocation4 + $0x18] sm:$0xff]  }
 0x5e5   :  { %6155 = vmatmul.mubr.bf16.gmra.mrb[60].mxu1 %v11188_v18  ;;  %v9844_v18 = vld [vmem:[#allocation4 + $0x40] sm:$0xff]  }
 0x5e6   :  { %6164 = vmatprep.mubr.bf16.mxu1 %v11720_v60  ;;  %8200 = vmatprep.subr.bf16.mxu0 %v9844_v18 }
 0x5ed   :  { %6165 = vmatmul.mubr.bf16.gmra.mrb[64].mxu1 %v11198_v49  ;;  %v6233_v49 = vld [vmem:[%s11699_s4] sm:$0x3] }
 0x5ee   :  { %6174 = vmatprep.mubr.bf16.mxu1 %v11720_v60 }
 0x5f5   :  { %6175 = vmatmul.mubr.bf16.gmra.mrb[68].mxu1 %v11208_v12  ;;  %v11730_v12 = vsub.s32 0, %v11729_v2 }
 0x5f6   :  { %6184 = vmatprep.mubr.bf16.mxu1 %v11720_v60 }
 0x5f7   :  { %v11559_v29 = vrot.slane %v6233_v49, %v11730_v12 }
 0x5fd   :  { %6185 = vmatmul.mubr.bf16.gmra.mrb[72].mxu1 %v11218_v56  ;;  %v11731_v56 = vsub.s32 1, %v11729_v2  ;;  %v9852_v2 = vld [vmem:[#allocation4 + $0x60] sm:$0xff]  }
 0x5fe   :  { %6194 = vmatprep.mubr.bf16.mxu1 %v11720_v60 }
 0x5ff   :  { %v11563_v3 = vrot.slane %v6233_v49, %v11731_v56 }
 0x605   :  { %6195 = vmatmul.mubr.bf16.gmra.mrb[76].mxu1 %v11728_v54 }
 0x6a8   :  { %v6136_v60 = vpop.f32.mrb[52].mxu1 }
 0x6a9   :  { %v6245_v11 = vadd.f32 %v11559_v29, %v6136_v60  ;;  %v6138_v40 = vpop.f32.mrb[53].mxu1 }
 0x6aa   :  { %v6246_v34 = vadd.f32 %v11563_v3, %v6138_v40  ;;  %v6140_v35 = vpop.f32.mrb[54].mxu1 }
 0x6ab   :  { %v6247_v37 = vadd.f32 %v11559_v29, %v6140_v35  ;;  %v6142_v32 = vpop.f32.mrb[55].mxu1  ;;  %v6273_v8 = vmax.f32 %v6245_v11, 0.0 }
 0x6ac   :  { %v6248_v57 = vadd.f32 %v11563_v3, %v6142_v32  ;;  %v6274_v25 = vmax.f32 %v6246_v34, 0.0  ;;  %v9853_v34 = vld [vmem:[#allocation4 + $0x20] sm:$0xff]   ;;  %v9854_v32 = vld [vmem:[#allocation4 + $0x68] sm:$0xff]  }
 0x6ad   :  { %v6275_v0 = vmax.f32 %v6247_v37, 0.0 }
 0x6ae   :  { %v6276_v59 = vmax.f32 %v6248_v57, 0.0 }
 0x6af   :  { %v11569_v47 = vpack.c.bf16 %v6275_v0, %v6273_v8 }
 0x6b0   :  { %v11571_v27 = vpack.c.bf16 %v6276_v59, %v6274_v25  ;;  %v6146_v13 = vpop.f32.mrb[56].mxu1 }
 0x6b1   :  { %v6249_v51 = vadd.f32 %v11559_v29, %v6146_v13  ;;  %v6148_v62 = vpop.f32.mrb[57].mxu1  ;;  %v9855_v13 = vld [vmem:[#allocation4 + $0x28] sm:$0xff]  }
 0x6b2   :  { %v6250_v21 = vadd.f32 %v11563_v3, %v6148_v62  ;;  %v6150_v48 = vpop.f32.mrb[58].mxu1 }
 0x6b3   :  { %v6251_v61 = vadd.f32 %v11559_v29, %v6150_v48  ;;  %v6152_v43 = vpop.f32.mrb[59].mxu1  ;;  %v6277_v22 = vmax.f32 %v6249_v51, 0.0 }
 0x6b4   :  { %v6252_v4 = vadd.f32 %v11563_v3, %v6152_v43  ;;  %v6278_v44 = vmax.f32 %v6250_v21, 0.0  ;;  %v9856_v21 = vld [vmem:[#allocation4 + $0x70] sm:$0xff]  }
 0x6b5   :  { %v6279_v45 = vmax.f32 %v6251_v61, 0.0 }
 0x6b6   :  { %v6280_v52 = vmax.f32 %v6252_v4, 0.0 }
 0x6b7   :  { %v6303_v15 = vpack.c.bf16 %v6279_v45, %v6277_v22  ;;  %v9857_v45 = vld [vmem:[#allocation4 + $0x30] sm:$0xff]  }
 0x6b8   :  { %v6304_v30 = vpack.c.bf16 %v6280_v52, %v6278_v44  ;;  %v6156_v31 = vpop.f32.mrb[60].mxu1 }
 0x6b9   :  { %v6253_v53 = vadd.f32 %v11559_v29, %v6156_v31  ;;  %v6158_v23 = vpop.f32.mrb[61].mxu1 }
 0x6ba   :  { %v6254_v26 = vadd.f32 %v11563_v3, %v6158_v23  ;;  %v6160_v9 = vpop.f32.mrb[62].mxu1  ;;  %6508 = vmatprep.mubr.bf16.mxu0 %v6304_v30  ;;  %v9859_v23 = vld [vmem:[#allocation4 + $0x38] sm:$0xff]  }
 0x6bb   :  { %v6255_v19 = vadd.f32 %v11559_v29, %v6160_v9  ;;  %v6162_v38 = vpop.f32.mrb[63].mxu1  ;;  %6509 = vmatmul.mubr.bf16.vlgmr.msra.gmra.mrb[104].mxu0 %v6303_v15  ;;  %v6281_v20 = vmax.f32 %v6253_v53, 0.0  ;;  %v9858_v15 = vld [vmem:[#allocation4 + $0x78] sm:$0xff]   ;;  %v9860_v9 = vld [vmem:[#allocation4 + $0x140] sm:$0xff]  }
 0x6bc   :  { %v6256_v16 = vadd.f32 %v11563_v3, %v6162_v38  ;;  %8201 = vmatpush3.bf16.msra.mxu0 %v9845_v50  ;;  %v6282_v46 = vmax.f32 %v6254_v26, 0.0 }
 0x6bd   :  { %v6283_v63 = vmax.f32 %v6255_v19, 0.0  ;;  %8202 = vmatprep.subr.bf16.mxu0 %v9846_v28 }
 0x6be   :  { %v6284_v33 = vmax.f32 %v6256_v16, 0.0 }
 0x6bf   :  { %v11581_v1 = vpack.c.bf16 %v6283_v63, %v6281_v20  ;;  %v9861_v63 = vld [vmem:[#allocation4 + $0x100] sm:$0xff]  }
 0x6c0   :  { %v11583_v24 = vpack.c.bf16 %v6284_v33, %v6282_v46  ;;  %8203 = vmatpush3.bf16.msra.mxu0 %v9847_v55  ;;  %v6166_v5 = vpop.f32.mrb[64].mxu1  ;;  %v9862_v33 = vld [vmem:[#allocation4 + $0x148] sm:$0xff]  }
 0x6c1   :  { %v6257_v10 = vadd.f32 %v11559_v29, %v6166_v5  ;;  %v6168_v39 = vpop.f32.mrb[65].mxu1  ;;  %8204 = vmatprep.subr.bf16.mxu0 %v9848_v17 }
 0x6c2   :  { %v6258_v14 = vadd.f32 %v11563_v3, %v6168_v39  ;;  %v6170_v7 = vpop.f32.mrb[66].mxu1 }
 0x6c3   :  { %v6259_v42 = vadd.f32 %v11559_v29, %v6170_v7  ;;  %v6172_v54 = vpop.f32.mrb[67].mxu1  ;;  %v6285_v18 = vmax.f32 %v6257_v10, 0.0 }
 0x6c4   :  { %v6260_v58 = vadd.f32 %v11563_v3, %v6172_v54  ;;  %8205 = vmatpush3.bf16.msra.mxu0 %v9849_v6  ;;  %v6286_v12 = vmax.f32 %v6258_v14, 0.0  ;;  %v9863_v14 = vld [vmem:[#allocation4 + $0x108] sm:$0xff]   ;;  %v9864_v54 = vld [vmem:[#allocation4 + $0x150] sm:$0xff]  }
 0x6c5   :  { %v6287_v49 = vmax.f32 %v6259_v42, 0.0  ;;  %8206 = vmatprep.subr.bf16.mxu0 %v9850_v41 }
 0x6c6   :  { %v6288_v56 = vmax.f32 %v6260_v58, 0.0 }
 0x6c7   :  { %v11589_v60 = vpack.c.bf16 %v6287_v49, %v6285_v18 }
 0x6c8   :  { %v11591_v11 = vpack.c.bf16 %v6288_v56, %v6286_v12  ;;  %8207 = vmatpush3.bf16.msra.mxu0 %v9851_v36  ;;  %v6176_v40 = vpop.f32.mrb[68].mxu1  ;;  %v9869_v12 = vld [vmem:[#allocation4 + $0x120] sm:$0xff]   ;;  %v9870_v56 = vld [vmem:[#allocation4 + $0x168] sm:$0xff]  }
 0x6c9   :  { %v6261_v35 = vadd.f32 %v11559_v29, %v6176_v40  ;;  %v6178_v37 = vpop.f32.mrb[69].mxu1  ;;  %8208 = vmatprep.subr.bf16.mxu0 %v9852_v2  ;;  %v9868_v2 = vld [vmem:[#allocation4 + $0x160] sm:$0xff]   ;;  %v9871_v40 = vld [vmem:[#allocation4 + $0x128] sm:$0xff]  }
 0x6ca   :  { %v6262_v57 = vadd.f32 %v11563_v3, %v6178_v37  ;;  %v6180_v8 = vpop.f32.mrb[70].mxu1  ;;  %6516 = vmatprep.mubr.bf16.mxu0 %v11591_v11  ;;  %v9874_v37 = vld [vmem:[#allocation4 + $0x178] sm:$0xff]  }
 0x6cb   :  { %v6263_v0 = vadd.f32 %v11559_v29, %v6180_v8  ;;  %v6182_v25 = vpop.f32.mrb[71].mxu1  ;;  %6517 = vmatmul.mubr.bf16.gmra.mrb[108].mxu0 %v11589_v60  ;;  %v6289_v51 = vmax.f32 %v6261_v35, 0.0  ;;  %v9873_v35 = vld [vmem:[#allocation4 + $0x130] sm:$0xff]   ;;  %v9878_v8 = vld [vmem:[#allocation4 + $0x1c8] sm:$0xff]  }
 0x6cc   :  { %v6264_v59 = vadd.f32 %v11563_v3, %v6182_v25  ;;  %8209 = vmatpush3.bf16.msra.mxu0 %v9853_v34  ;;  %6653 = vmatprep.mubr.bf16.mxu0 %v11571_v27  ;;  %v6290_v48 = vmax.f32 %v6262_v57, 0.0  ;;  %v9872_v34 = vld [vmem:[#allocation4 + $0x170] sm:$0xff]   ;;  %v9876_v57 = vld [vmem:[#allocation4 + $0x1c0] sm:$0xff]  }
 0x6cd   :  { %v6291_v62 = vmax.f32 %v6263_v0, 0.0  ;;  %8210 = vmatprep.subr.bf16.mxu0 %v9854_v32  ;;  %v9875_v32 = vld [vmem:[#allocation4 + $0x138] sm:$0xff]   ;;  %v9879_v0 = vld [vmem:[#allocation4 + $0x188] sm:$0xff]   ;;  %v9880_v25 = vld [vmem:[#allocation4 + $0x1d0] sm:$0xff]  }
 0x6ce   :  { %v6292_v61 = vmax.f32 %v6264_v59, 0.0  ;;  %v9881_v59 = vld [vmem:[#allocation4 + $0x190] sm:$0xff]  }
 0x6cf   :  { %v11600_v43 = vpack.c.bf16 %v6291_v62, %v6289_v51  ;;  %v9883_v51 = vld [vmem:[#allocation4 + $0x198] sm:$0xff]   ;;  %v9884_v62 = vld [vmem:[#allocation4 + $0x1e0] sm:$0xff]  }
 0x6d0   :  { %v11602_v4 = vpack.c.bf16 %v6292_v61, %v6290_v48  ;;  %8211 = vmatpush3.bf16.msra.mxu0 %v9855_v13  ;;  %v6186_v22 = vpop.f32.mrb[72].mxu1  ;;  %v9882_v13 = vld [vmem:[#allocation4 + $0x1d8] sm:$0xff]   ;;  %v9887_v48 = vld [vmem:[#allocation4 + $0x1a8] sm:$0xff]   ;;  %v9888_v61 = vld [vmem:[#allocation4 + $0x1f0] sm:$0xff]  }
 0x6d1   :  { %v6265_v44 = vadd.f32 %v11559_v29, %v6186_v22  ;;  %v6188_v52 = vpop.f32.mrb[73].mxu1  ;;  %8212 = vmatprep.subr.bf16.mxu0 %v9856_v21  ;;  %v9886_v21 = vld [vmem:[#allocation4 + $0x1e8] sm:$0xff]   ;;  %v9889_v22 = vld [vmem:[#allocation4 + $0x1b0] sm:$0xff]  }
 0x6d2   :  { %v6266_v27 = vadd.f32 %v11563_v3, %v6188_v52  ;;  %v6190_v30 = vpop.f32.mrb[74].mxu1  ;;  %v9892_v52 = vld [vmem:[#allocation4 + $0x240] sm:$0xff]  }
 0x6d3   :  { %v6267_v31 = vadd.f32 %v11559_v29, %v6190_v30  ;;  %v6192_v50 = vpop.f32.mrb[75].mxu1  ;;  %v6293_v28 = vmax.f32 %v6265_v44, 0.0  ;;  %v9891_v44 = vld [vmem:[#allocation4 + $0x1b8] sm:$0xff]   ;;  %v9896_v30 = vld [vmem:[#allocation4 + $0x250] sm:$0xff]  }
 0x6d4   :  { %v6268_v53 = vadd.f32 %v11563_v3, %v6192_v50  ;;  %8213 = vmatpush3.bf16.msra.mxu0 %v9857_v45  ;;  %v6294_v19 = vmax.f32 %v6266_v27, 0.0  ;;  %v9890_v45 = vld [vmem:[#allocation4 + $0x1f8] sm:$0xff]   ;;  %v9895_v27 = vld [vmem:[#allocation4 + $0x208] sm:$0xff]  }
 0x6d5   :  { %v6295_v26 = vmax.f32 %v6267_v31, 0.0  ;;  %8214 = vmatprep.subr.bf16.mxu0 %v9858_v15  ;;  %v9894_v15 = vld [vmem:[#allocation4 + $0x248] sm:$0xff]   ;;  %v9897_v31 = vld [vmem:[#allocation4 + $0x210] sm:$0xff]   ;;  %v9898_v50 = vld [vmem:[#allocation4 + $0x258] sm:$0xff]  }
 0x6d6   :  { %v6296_v38 = vmax.f32 %v6268_v53, 0.0  ;;  %v9899_v53 = vld [vmem:[#allocation4 + $0x218] sm:$0xff]  }
 0x6d7   :  { %v11608_v16 = vpack.c.bf16 %v6295_v26, %v6293_v28  ;;  %v9902_v28 = vld [vmem:[#allocation4 + $0x268] sm:$0xff]  }
 0x6d8   :  { %v11610_v55 = vpack.c.bf16 %v6296_v38, %v6294_v19  ;;  %8215 = vmatpush3.bf16.msra.mxu0 %v9859_v23  ;;  %v6196_v20 = vpop.f32.mrb[76].mxu1  ;;  %v9900_v23 = vld [vmem:[#allocation4 + $0x260] sm:$0xff]   ;;  %v9903_v26 = vld [vmem:[#allocation4 + $0x228] sm:$0xff]   ;;  %v9905_v19 = vld [vmem:[#allocation4 + $0x230] sm:$0xff]  }
 0x6d9   :  { %v6269_v17 = vadd.f32 %v11559_v29, %v6196_v20  ;;  %v6198_v46 = vpop.f32.mrb[77].mxu1  ;;  %8228 = vmatprep.subr.bf16.mxu0 %v9860_v9  ;;  %v9904_v9 = vld [vmem:[#allocation4 + $0x270] sm:$0xff]   ;;  %v9906_v38 = vld [vmem:[#allocation4 + $0x278] sm:$0xff]   ;;  %v9910_v20 = vld [vmem:[%s11702_s7 + $0x48] sm:$0xff]  }
 0x6da   :  { %v6270_v5 = vadd.f32 %v11563_v3, %v6198_v46  ;;  %v6200_v6 = vpop.f32.mrb[78].mxu1 }
 0x6db   :  { %v6271_v10 = vadd.f32 %v11559_v29, %v6200_v6  ;;  %6654 = vmatmul.mubr.bf16.vlgmr.msra.gmra.mrb[112].mxu0 %v11569_v47  ;;  %v6202_v39 = vpop.f32.mrb[79].mxu1  ;;  %v6297_v7 = vmax.f32 %v6269_v17, 0.0  ;;  %v9865_v29 = vld [vmem:[#allocation4 + $0x110] sm:$0xff]   ;;  %v9866_v47 = vld [vmem:[#allocation4 + $0x158] sm:$0xff]  }
 0x6dc   :  { %v6272_v41 = vadd.f32 %v11563_v3, %v6202_v39  ;;  %6661 = vmatprep.mubr.bf16.mxu0 %v11583_v24  ;;  %8229 = vmatpush3.bf16.msra.mxu0 %v9861_v63  ;;  %v6298_v58 = vmax.f32 %v6270_v5, 0.0  ;;  %v9867_v3 = vld [vmem:[#allocation4 + $0x118] sm:$0xff]   ;;  %v9912_v63 = vld [vmem:[%s11702_s7 + $0x50] sm:$0xff]  }
 0x6dd   :  { %v6299_v42 = vmax.f32 %v6271_v10, 0.0  ;;  %8230 = vmatprep.subr.bf16.mxu0 %v9862_v33  ;;  %v9913_v17 = vld [vmem:[%s11702_s7 + $0x10] sm:$0xff]   ;;  %v9914_v5 = vld [vmem:[%s11702_s7 + $0x58] sm:$0xff]  }
 0x6de   :  { %v6300_v36 = vmax.f32 %v6272_v41, 0.0  ;;  %v9915_v39 = vld [vmem:[%s11702_s7 + $0x18] sm:$0xff]  }
 0x6df   :  { %v11618_v18 = vpack.c.bf16 %v6299_v42, %v6297_v7  ;;  %v9916_v7 = vld [vmem:[%s11702_s7 + $0x60] sm:$0xff]  }
 0x6e0   :  { %v11620_v49 = vpack.c.bf16 %v6300_v36, %v6298_v58  ;;  %8231 = vmatpush3.bf16.msra.mxu0 %v9863_v14  ;;  %v9917_v42 = vld [vmem:[%s11702_s7 + $0x20] sm:$0xff]   ;;  %v9919_v58 = vld [vmem:[%s11702_s7 + $0x28] sm:$0xff]   ;;  %v9920_v36 = vld [vmem:[%s11702_s7 + $0x70] sm:$0xff]  }
 0x6e1   :  { %8232 = vmatprep.subr.bf16.mxu0 %v9864_v54  ;;  %v9918_v54 = vld [vmem:[%s11702_s7 + $0x68] sm:$0xff]  }
 0x6e3   :  { %6662 = vmatmul.mubr.bf16.gmra.mrb[116].mxu0 %v11581_v1 }
 0x6e4   :  { %8233 = vmatpush3.bf16.msra.mxu0 %v9865_v29  ;;  %6831 = vmatprep.mubr.bf16.mxu0 %v11583_v24  ;;  %v9877_v24 = vld [vmem:[#allocation4 + $0x180] sm:$0xff]  }
 0x6e5   :  { %8234 = vmatprep.subr.bf16.mxu0 %v9866_v47  ;;  %v9922_v47 = vld [vmem:[%s11702_s7 + $0x78] sm:$0xff]  }
 0x6e8   :  { %8235 = vmatpush3.bf16.msra.mxu0 %v9867_v3 }
 0x6e9   :  { %8236 = vmatprep.subr.bf16.mxu0 %v9868_v2 }
 0x6ec   :  { %8237 = vmatpush3.bf16.msra.mxu0 %v9869_v12  ;;  %v9923_v12 = vld [vmem:[%s11702_s7 + $0x38] sm:$0xff]  }
 0x6ed   :  { %8238 = vmatprep.subr.bf16.mxu0 %v9870_v56 }
 0x6f0   :  { %8239 = vmatpush3.bf16.msra.mxu0 %v9871_v40 }
 0x6f1   :  { %8240 = vmatprep.subr.bf16.mxu0 %v9872_v34 }
 0x6f4   :  { %8241 = vmatpush3.bf16.msra.mxu0 %v9873_v35 }
 0x6f5   :  { %8242 = vmatprep.subr.bf16.mxu0 %v9874_v37 }
 0x6f8   :  { %8243 = vmatpush3.bf16.msra.mxu0 %v9875_v32 }
 0x6f9   :  { %8256 = vmatprep.subr.bf16.mxu0 %v9876_v57 }
 0x6fb   :  { %6832 = vmatmul.mubr.bf16.vlgmr.msra.gmra.mrb[120].mxu0 %v11581_v1  ;;  %v9885_v1 = vld [vmem:[#allocation4 + $0x1a0] sm:$0xff]  }
 0x6fc   :  { %6839 = vmatprep.mubr.bf16.mxu0 %v11602_v4  ;;  %8257 = vmatpush3.bf16.msra.mxu0 %v9877_v24 }
 0x6fd   :  { %8258 = vmatprep.subr.bf16.mxu0 %v9878_v8 }
 0x700   :  { %8259 = vmatpush3.bf16.msra.mxu0 %v9879_v0 }
 0x701   :  { %8260 = vmatprep.subr.bf16.mxu0 %v9880_v25 }
 0x703   :  { %6840 = vmatmul.mubr.bf16.gmra.mrb[124].mxu0 %v11600_v43 }
 0x704   :  { %8261 = vmatpush3.bf16.msra.mxu0 %v9881_v59  ;;  %7013 = vmatprep.mubr.bf16.mxu0 %v11591_v11  ;;  %v9893_v11 = vld [vmem:[#allocation4 + $0x200] sm:$0xff]  }
 0x705   :  { %8262 = vmatprep.subr.bf16.mxu0 %v9882_v13 }
 0x708   :  { %8263 = vmatpush3.bf16.msra.mxu0 %v9883_v51 }
 0x709   :  { %8264 = vmatprep.subr.bf16.mxu0 %v9884_v62 }
 0x70c   :  { %8265 = vmatpush3.bf16.msra.mxu0 %v9885_v1 }
 0x70d   :  { %8266 = vmatprep.subr.bf16.mxu0 %v9886_v21 }
 0x710   :  { %8267 = vmatpush3.bf16.msra.mxu0 %v9887_v48 }
 0x711   :  { %8268 = vmatprep.subr.bf16.mxu0 %v9888_v61 }
 0x714   :  { %8269 = vmatpush3.bf16.msra.mxu0 %v9889_v22 }
 0x715   :  { %8270 = vmatprep.subr.bf16.mxu0 %v9890_v45 }
 0x718   :  { %8271 = vmatpush3.bf16.msra.mxu0 %v9891_v44 }
 0x719   :  { %8284 = vmatprep.subr.bf16.mxu0 %v9892_v52 }
 0x71b   :  { %7014 = vmatmul.mubr.bf16.vlgmr.msra.gmra.mrb[128].mxu0 %v11589_v60  ;;  %v9901_v60 = vld [vmem:[#allocation4 + $0x220] sm:$0xff]  }
 0x71c   :  { %7021 = vmatprep.mubr.bf16.mxu0 %v11610_v55  ;;  %8285 = vmatpush3.bf16.msra.mxu0 %v9893_v11  ;;  %v9909_v55 = vld [vmem:[%s11702_s7] sm:$0xff]  }
 0x71d   :  { %8286 = vmatprep.subr.bf16.mxu0 %v9894_v15 }
 0x720   :  { %8287 = vmatpush3.bf16.msra.mxu0 %v9895_v27 }
 0x721   :  { %8288 = vmatprep.subr.bf16.mxu0 %v9896_v30 }
 0x723   :  { %7022 = vmatmul.mubr.bf16.gmra.mrb[132].mxu0 %v11608_v16  ;;  %v9907_v16 = vld [vmem:[#allocation4 + $0x238] sm:$0xff]  }
 0x724   :  { %8289 = vmatpush3.bf16.msra.mxu0 %v9897_v31  ;;  %7195 = vmatprep.mubr.bf16.mxu0 %v11602_v4  ;;  %v9908_v4 = vld [vmem:[%s11702_s7 + $0x40] sm:$0xff]  }
 0x725   :  { %8290 = vmatprep.subr.bf16.mxu0 %v9898_v50 }
 0x728   :  { %8291 = vmatpush3.bf16.msra.mxu0 %v9899_v53 }
 0x729   :  { %8292 = vmatprep.subr.bf16.mxu0 %v9900_v23 }
 0x72c   :  { %8293 = vmatpush3.bf16.msra.mxu0 %v9901_v60 }
 0x72d   :  { %8294 = vmatprep.subr.bf16.mxu0 %v9902_v28 }
 0x730   :  { %8295 = vmatpush3.bf16.msra.mxu0 %v9903_v26 }
 0x731   :  { %8296 = vmatprep.subr.bf16.mxu0 %v9904_v9 }
 0x734   :  { %8297 = vmatpush3.bf16.msra.mxu0 %v9905_v19 }
 0x735   :  { %8298 = vmatprep.subr.bf16.mxu0 %v9906_v38 }
 0x738   :  { %8299 = vmatpush3.bf16.msra.mxu0 %v9907_v16 }
 0x739   :  { %8312 = vmatprep.subr.bf16.mxu0 %v9908_v4 }
 0x73b   :  { %7196 = vmatmul.mubr.bf16.vlgmr.msra.gmra.mrb[136].mxu0 %v11600_v43  ;;  %v9911_v43 = vld [vmem:[%s11702_s7 + $0x8] sm:$0xff]  }
 0x73c   :  { %7203 = vmatprep.mubr.bf16.mxu0 %v11620_v49  ;;  %8313 = vmatpush3.bf16.msra.mxu0 %v9909_v55 }
 0x73d   :  { %8314 = vmatprep.subr.bf16.mxu0 %v9910_v20 }
 0x740   :  { %8315 = vmatpush3.bf16.msra.mxu0 %v9911_v43 }
 0x741   :  { %8316 = vmatprep.subr.bf16.mxu0 %v9912_v63 }
 0x743   :  { %7204 = vmatmul.mubr.bf16.gmra.mrb[140].mxu0 %v11618_v18  ;;  %v9921_v18 = vld [vmem:[%s11702_s7 + $0x30] sm:$0xff]  }
 0x744   :  { %8317 = vmatpush3.bf16.msra.mxu0 %v9913_v17 }
 0x745   :  { %8318 = vmatprep.subr.bf16.mxu0 %v9914_v5 }
 0x748   :  { %8319 = vmatpush3.bf16.msra.mxu0 %v9915_v39 }
 0x749   :  { %8320 = vmatprep.subr.bf16.mxu0 %v9916_v7 }
 0x74c   :  { %8321 = vmatpush3.bf16.msra.mxu0 %v9917_v42 }
 0x74d   :  { %8322 = vmatprep.subr.bf16.mxu0 %v9918_v54  ;;  %v8024_v54 = vld [vmem:[%s11701_s6] ss:$0 sm:$0xff] }
 0x750   :  { %8323 = vmatpush3.bf16.msra.mxu0 %v9919_v58 }
 0x751   :  { %8324 = vmatprep.subr.bf16.mxu0 %v9920_v36 }
 0x754   :  { %8325 = vmatpush3.bf16.msra.mxu0 %v9921_v18 }
 0x755   :  { %8326 = vmatprep.subr.bf16.mxu0 %v9922_v47 }
 0x758   :  { %8327 = vmatpush3.bf16.msra.mxu0 %v9923_v12 }
 0x78e   :  { %v8188_v46 = vpop.f32.mrb[104].mxu0 }
 0x78f   :  { %v8189_v33 = vpop.f32.mrb[105].mxu0 }
 0x790   :  { %v8190_v6 = vadd.f32 %v8189_v33, %v8188_v46  ;;  %v8191_v10 = vpop.f32.mrb[106].mxu0 }
 0x791   :  { %v8192_v41 = vpop.f32.mrb[107].mxu0 }
 0x792   :  { %v8193_v14 = vadd.f32 %v8192_v41, %v8191_v10 }
 0x79e   :  { %v8194_v49 = vpop.f32.mrb[108].mxu0 }
 0x79f   :  { %v8195_v29 = vpop.f32.mrb[109].mxu0 }
 0x7a0   :  { %v8196_v3 = vadd.f32 %v8195_v29, %v8194_v49  ;;  %v8197_v2 = vpop.f32.mrb[110].mxu0 }
 0x7a1   :  { %v8198_v56 = vpop.f32.mrb[111].mxu0 }
 0x7a2   :  { %v8199_v40 = vadd.f32 %v8198_v56, %v8197_v2 }
 0x7ae   :  { %v8216_v34 = vpop.f32.mrb[112].mxu0 }
 0x7af   :  { %v8217_v35 = vpop.f32.mrb[113].mxu0 }
 0x7b0   :  { %v8218_v37 = vadd.f32 %v8217_v35, %v8216_v34  ;;  %v8219_v32 = vpop.f32.mrb[114].mxu0 }
 0x7b1   :  { %v8220_v57 = vpop.f32.mrb[115].mxu0 }
 0x7b2   :  { %v6656_v24 = vadd.f32 %v8218_v37, %v8190_v6  ;;  %v8221_v8 = vadd.f32 %v8220_v57, %v8219_v32 }
 0x7b4   :  { %v6659_v0 = vadd.f32 %v8221_v8, %v8193_v14 }
 0x7b6   :  { %v8222_v25 = vpop.f32.mrb[116].mxu0 }
 0x7b7   :  { %v8223_v59 = vpop.f32.mrb[117].mxu0 }
 0x7b8   :  { %v8224_v13 = vadd.f32 %v8223_v59, %v8222_v25  ;;  %v8225_v51 = vpop.f32.mrb[118].mxu0 }
 0x7b9   :  { %v8226_v62 = vpop.f32.mrb[119].mxu0 }
 0x7ba   :  { %v6664_v1 = vadd.f32 %v8224_v13, %v8196_v3  ;;  %v8227_v21 = vadd.f32 %v8226_v62, %v8225_v51  ;;  %v8025_v62 = vld [vmem:[%s11703_s8] ss:$0 sm:$0xff] }
 0x7bc   :  { %v6667_v48 = vadd.f32 %v8227_v21, %v8199_v40 }
 0x7ce   :  { %v8244_v61 = vpop.f32.mrb[120].mxu0 }
 0x7cf   :  { %v8245_v22 = vpop.f32.mrb[121].mxu0 }
 0x7d0   :  { %v8246_v45 = vadd.f32 %v8245_v22, %v8244_v61  ;;  %v8247_v44 = vpop.f32.mrb[122].mxu0 }
 0x7d1   :  { %v8248_v52 = vpop.f32.mrb[123].mxu0 }
 0x7d2   :  { %v6848_v11 = vadd.f32 %v8246_v45, %v6656_v24  ;;  %v8249_v15 = vadd.f32 %v8248_v52, %v8247_v44 }
 0x7d4   :  { %v6849_v27 = vadd.f32 %v8249_v15, %v6659_v0 }
 0x7d6   :  { %v8250_v30 = vpop.f32.mrb[124].mxu0 }
 0x7d7   :  { %v8251_v31 = vpop.f32.mrb[125].mxu0 }
 0x7d8   :  { %v8252_v50 = vadd.f32 %v8251_v31, %v8250_v30  ;;  %v8253_v53 = vpop.f32.mrb[126].mxu0 }
 0x7d9   :  { %v8254_v23 = vpop.f32.mrb[127].mxu0 }
 0x7da   :  { %v6850_v60 = vadd.f32 %v8252_v50, %v6664_v1  ;;  %v8255_v28 = vadd.f32 %v8254_v23, %v8253_v53 }
 0x7dc   :  { %v6851_v26 = vadd.f32 %v8255_v28, %v6667_v48 }
 0x7ee   :  { %v8272_v9 = vpop.f32.mrb[128].mxu0 }
 0x7ef   :  { %v8273_v19 = vpop.f32.mrb[129].mxu0 }
 0x7f0   :  { %v8274_v38 = vadd.f32 %v8273_v19, %v8272_v9  ;;  %v8275_v16 = vpop.f32.mrb[130].mxu0 }
 0x7f1   :  { %v8276_v4 = vpop.f32.mrb[131].mxu0 }
 0x7f2   :  { %v7030_v55 = vadd.f32 %v8274_v38, %v6848_v11  ;;  %v8277_v20 = vadd.f32 %v8276_v4, %v8275_v16 }
 0x7f4   :  { %v7031_v43 = vadd.f32 %v8277_v20, %v6849_v27 }
 0x7f6   :  { %v8278_v63 = vpop.f32.mrb[132].mxu0 }
 0x7f7   :  { %v8279_v17 = vpop.f32.mrb[133].mxu0 }
 0x7f8   :  { %v8280_v46 = vadd.f32 %v8279_v17, %v8278_v63  ;;  %v8281_v33 = vpop.f32.mrb[134].mxu0 }
 0x7f9   :  { %v8282_v5 = vpop.f32.mrb[135].mxu0 }
 0x7fa   :  { %v7032_v6 = vadd.f32 %v8280_v46, %v6850_v60  ;;  %v8283_v10 = vadd.f32 %v8282_v5, %v8281_v33 }
 0x7fc   :  { %v7033_v39 = vadd.f32 %v8283_v10, %v6851_v26 }
 0x80e   :  { %v8300_v41 = vpop.f32.mrb[136].mxu0 }
 0x80f   :  { %v8301_v14 = vpop.f32.mrb[137].mxu0 }
 0x810   :  { %v8302_v7 = vadd.f32 %v8301_v14, %v8300_v41  ;;  %v8303_v42 = vpop.f32.mrb[138].mxu0 }
 0x811   :  { %v8304_v58 = vpop.f32.mrb[139].mxu0 }
 0x812   :  { %v7212_v36 = vadd.f32 %v8302_v7, %v7030_v55  ;;  %v8305_v18 = vadd.f32 %v8304_v58, %v8303_v42 }
 0x814   :  { %v7223_v49 = vadd.f32 %v8024_v54, %v7212_v36  ;;  %v7213_v29 = vadd.f32 %v8305_v18, %v7031_v43 }
 0x816   :  { %v7224_v47 = vadd.f32 %v8024_v54, %v7213_v29  ;;  %v8306_v3 = vpop.f32.mrb[140].mxu0  ;;  %v7227_v12 = vmax.f32 %v7223_v49, 0.0 }
 0x817   :  { %v8307_v2 = vpop.f32.mrb[141].mxu0 }
 0x818   :  { %v7228_v56 = vmax.f32 %v7224_v47, 0.0  ;;  %v8308_v40 = vadd.f32 %v8307_v2, %v8306_v3  ;;  %v8309_v34 = vpop.f32.mrb[142].mxu0 }
 0x819   :  { %v8310_v35 = vpop.f32.mrb[143].mxu0 }
 0x81a   :  { %v7231_v37 = vpack.c.bf16 %v7228_v56, %v7227_v12  ;;  %v7214_v32 = vadd.f32 %v8308_v40, %v7032_v6  ;;  %v8311_v57 = vadd.f32 %v8310_v35, %v8309_v34 }
 0x81c   :  { %v7225_v24 = vadd.f32 %v8024_v54, %v7214_v32  ;;  %v7215_v8 = vadd.f32 %v8311_v57, %v7033_v39 }
 0x81e   :  { %v7226_v0 = vadd.f32 %v8024_v54, %v7215_v8  ;;  %v7229_v25 = vmax.f32 %v7225_v24, 0.0 }
 0x820   :  { %v7230_v59 = vmax.f32 %v7226_v0, 0.0 }
 0x822   :  { %v7232_v13 = vpack.c.bf16 %v7230_v59, %v7229_v25 }
 0x824   :  { %7400 = vmatprep.mubr.bf16.mxu0 %v7232_v13 }
 0x825   :  { %7401 = vmatmul.mubr.bf16.vlgmr.msra.gmra.mrb[144].mxu0 %v7231_v37 }
 0x8f8   :  { %v8328_v51 = vpop.f32.mrb[144].mxu0 }
 0x8f9   :  { %v8329_v1 = vpop.f32.mrb[145].mxu0 }
 0x8fa   :  { %v8330_v21 = vadd.f32 %v8329_v1, %v8328_v51  ;;  %v8331_v48 = vpop.f32.mrb[146].mxu0 }
 0x8fb   :  { %v8332_v61 = vpop.f32.mrb[147].mxu0 }
 0x8fc   :  { %v7403_v22 = vadd.f32 %v8330_v21, %v8025_v62  ;;  %v8333_v45 = vadd.f32 %v8332_v61, %v8331_v48 }
 0x8fe   :  { %7409 = vst [vmem:[%s11704_s9] sm:$0xff] %v7403_v22  ;;  %v7406_v44 = vadd.f32 %v8333_v45, %v8025_v62 }
 0x900   :  { %7410 = vst [vmem:[%s11704_s9 + $0x8] sm:$0xff] %v7406_v44 }
 0x901   :  { %7415 = vsyncpa [#allocation3], 1 }
 0x902   :  { %7416 = vsyncpa [#allocation5], 1 }

</bundles_post_ra>
